<compile_context>
chip_gen: v7x
topology: tpu7x:2x2x1
jax: 0.10.0
libtpu: 0.0.40
codegen_flags: <defaults>
</compile_context>

<pallas_src>
from functools import partial

import jax
import jax.numpy as jnp
from jax.experimental import pallas as pl
from jax.experimental.pallas import tpu as pltpu


# ----------------------------------------------------------------------------
# Small config (real ConvTasNet: L=20, N=B=256, H=512, X=8, R=4; this is a
# scaled-down but structurally identical configuration).
# ----------------------------------------------------------------------------
CONFIG = {
    "tasnet": {
        "kernel_size": 16,        # L (even -> encoder stride = L//2)
        "enc_channels": 32,       # N
        "in_channels": 32,        # B (bottleneck channels)
        "conv_channels": 64,      # H
        "num_blocks": 2,          # X
        "block_kernel_size": 3,   # P
        "num_repeats": 2,         # R
        "num_speakers": 4,
        "resample": 1,
    },
    "speaker": {"adpt_type": "mul"},
}

PRELU_INIT = 0.25            # nn.PReLU() default init (stored as a parameter)
EPS = 1e-5
LANE_ALIGN = 256             # MXU consumes RHS in 256-wide passes on v6e/v7x
VMEM_LIMIT = 64 * 1024 * 1024


def _round_up(n, m):
    return ((n + m - 1) // m) * m


# ----------------------------------------------------------------------------
# Fused ConvTasNet kernel.
# ----------------------------------------------------------------------------
def _tasnet_kernel(num_x, ksize, eps, t_valid,
                   frames_ref, spk_ref,
                   encw_ref, encb_ref, projw_ref, projb_ref,
                   maskw_ref, maskb_ref, decw_ref,
                   w1_ref, pp_ref, w2_ref, b2_ref,
                   o_ref,
                   y_scr, w_scr):
    r = pl.program_id(1)
    num_r = pl.num_programs(1)
    Tp = frames_ref.shape[-1]
    P = ksize
    center = (P - 1) // 2

    # valid-time mask (1 for real frames, 0 for lane padding)
    tmask = (jax.lax.broadcasted_iota(jnp.int32, (1, Tp), 1) < t_valid
             ).astype(jnp.float32)

    def cln(v):
        # channel-wise LayerNorm, no affine (affine folded / applied by caller).
        # Two-pass variance for numerical robustness.
        m = jnp.mean(v, axis=0, keepdims=True)
        d = v - m
        var = jnp.mean(d * d, axis=0, keepdims=True)
        return d * jax.lax.rsqrt(var + eps)

    # ----- repeat 0 prologue: encoder -> cLN -> 1x1 projection --------------
    @pl.when(r == 0)
    def _():
        fr = frames_ref[0]                                     # (L, Tp) bf16
        w = jnp.dot(encw_ref[...], fr,
                    preferred_element_type=jnp.float32) + encb_ref[...]
        w = jnp.maximum(w, 0.0)                                # (N, Tp)
        w_scr[...] = w                                         # read again only in epilogue
        # encoder-cLN gain/bias are folded into proj_w / proj_b at prep time
        y0 = jnp.dot(projw_ref[...], cln(w).astype(jnp.bfloat16),
                     preferred_element_type=jnp.float32) + projb_ref[...]
        y_scr[...] = y0                                        # (Bc, Tp)

    # ----- the X Conv1DBlocks of this repeat (static dilations 1,2,4,...) ---
    y = y_scr[...]
    for jj in range(num_x):
        dil = 2 ** jj
        ppj = pp_ref[jj]                        # (H, P+6) packed per-channel params
        dwj = ppj[:, 0:P]                       # depthwise taps
        db = ppj[:, P:P + 1]                    # depthwise bias
        b1 = ppj[:, P + 1:P + 2]                # conv1x1 bias
        g1 = ppj[:, P + 2:P + 3]                # lnorm1 gain
        be1 = ppj[:, P + 3:P + 4]               # lnorm1 beta
        s1 = ppj[:, P + 4:P + 5]                # PReLU1 slope
        s2 = ppj[:, P + 5:P + 6]                # PReLU2 slope

        # conv1x1 (Bc -> H) + PReLU + cLN (with affine)
        h = jnp.dot(w1_ref[jj], y.astype(jnp.bfloat16),
                    preferred_element_type=jnp.float32) + b1
        h = jnp.where(h >= 0, h, s1 * h)
        h = cln(h) * g1 + be1
        # zero the padded time columns so the rolls emulate 'same' zero padding
        hz = h * tmask
        # depthwise dilated conv via XLU rolls (no padded temporary)
        acc = db + dwj[:, center:center + 1] * hz
        for k in range(P):
            if k == center:
                continue
            off = (k - center) * dil
            acc = acc + dwj[:, k:k + 1] * pltpu.roll(hz, (-off) % Tp, 1)
        # PReLU + cLN (gain/beta folded into sconv) + sconv (H -> Bc) + residual
        h = jnp.where(acc >= 0, acc, s2 * acc)
        h = cln(h)
        y = y + jnp.dot(w2_ref[jj], h.astype(jnp.bfloat16),
                        preferred_element_type=jnp.float32) + b2_ref[jj]
    y_scr[...] = y

    # ----- multiplicative speaker adaptation after the first repeat ---------
    @pl.when(r == 0)
    def _():
        y_scr[...] = y_scr[...] * spk_ref[0]                   # (Bc,1) broadcast

    # ----- last repeat epilogue: mask -> apply -> decoder frames ------------
    @pl.when(r == num_r - 1)
    def _():
        m = jnp.dot(maskw_ref[...], y_scr[...].astype(jnp.bfloat16),
                    preferred_element_type=jnp.float32) + maskb_ref[...]
        m = jnp.maximum(m, 0.0)
        sm = w_scr[...] * m                                    # (N, Tp)
        o_ref[0] = jnp.dot(decw_ref[...], sm.astype(jnp.bfloat16),
                           preferred_element_type=jnp.float32)  # (L, Tp)


def fused_tasnet(params, cfg, frames_p, spk, t_valid):
    t = cfg["tasnet"]
    L, N, Bc = t["kernel_size"], t["enc_channels"], t["in_channels"]
    H, X, P = t["conv_channels"], t["num_blocks"], t["block_kernel_size"]
    R = t["num_repeats"]
    Bn, _, Tp = frames_p.shape
    NB = X * R
    C = P + 6

    f32, bf = jnp.float32, jnp.bfloat16

    # ---- exact affine folds (prep-time XLA, outside the kernel) ------------
    # encoder-cLN gain/bias -> 1x1 projection (proj is a pure 1x1 linear)
    proj_w = params["proj_w"] * params["ln_g"][:, 0][None, :]
    proj_b = params["proj_b"] + params["proj_w"] @ params["ln_b"]
    # lnorm2 gain/beta -> sconv weight/bias (sconv is a 1x1 linear, exact)
    w2 = params["blk_w2"] * jnp.swapaxes(params["blk_g2"], 1, 2)
    b2 = params["blk_b2"] + jnp.matmul(params["blk_w2"], params["blk_be2"])

    # ---- pack all per-channel block params into ONE lane-padded array ------
    # columns: [dw taps (P) | db | b1 | g1 | be1 | prelu1 | prelu2]
    ones_h = jnp.ones((NB, H, 1), f32)
    pp = jnp.concatenate(
        [params["blk_dw"], params["blk_db"], params["blk_b1"],
         params["blk_g1"], params["blk_be1"],
         params["blk_p1"] * ones_h, params["blk_p2"] * ones_h], axis=2)

    def _const(shape):
        nd = len(shape)
        return pl.BlockSpec(shape, lambda b, r, _nd=nd: (0,) * _nd)

    in_specs = [
        pl.BlockSpec((1, L, Tp), lambda b, r: (b, 0, 0)),      # frames (bf16)
        pl.BlockSpec((1, Bc, 1), lambda b, r: (b, 0, 0)),      # speaker embedding
        _const((N, L)), _const((N, 1)),                        # enc_w, enc_b
        _const((Bc, N)), _const((Bc, 1)),                      # proj_w, proj_b (folded)
        _const((N, Bc)), _const((N, 1)),                       # mask_w, mask_b
        _const((L, N)),                                        # dec_w
        # per-repeat streamed block weights (double-buffered by the pipeline)
        pl.BlockSpec((X, H, Bc), lambda b, r: (r, 0, 0)),      # w1
        pl.BlockSpec((X, H, C), lambda b, r: (r, 0, 0)),       # packed per-channel
        pl.BlockSpec((X, Bc, H), lambda b, r: (r, 0, 0)),      # w2 (g2 folded)
        pl.BlockSpec((X, Bc, 1), lambda b, r: (r, 0, 0)),      # b2 (be2 folded)
    ]

    return pl.pallas_call(
        partial(_tasnet_kernel, X, P, EPS, t_valid),
        out_shape=jax.ShapeDtypeStruct((Bn, L, Tp), jnp.float32),
        grid=(Bn, R),
        in_specs=in_specs,
        out_specs=pl.BlockSpec((1, L, Tp), lambda b, r: (b, 0, 0)),
        scratch_shapes=[pltpu.VMEM((Bc, Tp), f32),    # TCN activation carry
                        pltpu.VMEM((N, Tp), f32)],    # encoder output w
        compiler_params=pltpu.CompilerParams(
            dimension_semantics=("parallel", "arbitrary"),
            vmem_limit_bytes=VMEM_LIMIT),
    )(frames_p.astype(bf),
      spk,
      params["enc_w"].astype(bf), params["enc_b"],
      proj_w.astype(bf), proj_b,
      params["mask_w"].astype(bf), params["mask_b"],
      params["dec_wT"].astype(bf),
      params["blk_w1"].astype(bf), pp, w2.astype(bf), b2)


# ----------------------------------------------------------------------------
# Fused speaker-network kernel: encoder conv + ReLU -> 1x1 conv + ReLU ->
# masked mean-pool over time.  The tiny (S, Bc) logits matmul stays in JAX.
# ----------------------------------------------------------------------------
def _spk_kernel(t_valid, fr_ref, w1_ref, b1_ref, w2_ref, b2_ref, o_ref):
    Tp = fr_ref.shape[-1]
    tmask = (jax.lax.broadcasted_iota(jnp.int32, (1, Tp), 1) < t_valid
             ).astype(jnp.float32)
    f = jnp.dot(w1_ref[...], fr_ref[0],
                preferred_element_type=jnp.float32) + b1_ref[...]
    f = jnp.maximum(f, 0.0)
    f = jnp.dot(w2_ref[...], f.astype(jnp.bfloat16),
                preferred_element_type=jnp.float32) + b2_ref[...]
    f = jnp.maximum(f, 0.0)
    o_ref[0] = jnp.sum(f * tmask, axis=1, keepdims=True) * (1.0 / t_valid)


def speaker_embed(params, frames_p, t_valid):
    Bn, L, Tp = frames_p.shape
    Bc = params["spk_enc_w"].shape[0]

    def _const(shape):
        nd = len(shape)
        return pl.BlockSpec(shape, lambda i, _nd=nd: (0,) * _nd)

    return pl.pallas_call(
        partial(_spk_kernel, t_valid),
        out_shape=jax.ShapeDtypeStruct((Bn, Bc, 1), jnp.float32),
        grid=(Bn,),
        in_specs=[
            pl.BlockSpec((1, L, Tp), lambda i: (i, 0, 0)),
            _const((Bc, L)), _const((Bc, 1)),
            _const((Bc, Bc)), _const((Bc, 1)),
        ],
        out_specs=pl.BlockSpec((1, Bc, 1), lambda i: (i, 0, 0)),
        compiler_params=pltpu.CompilerParams(
            dimension_semantics=("parallel",)),
    )(frames_p.astype(jnp.bfloat16),
      params["spk_enc_w"].astype(jnp.bfloat16), params["spk_enc_b"],
      params["spk_conv_w"].astype(jnp.bfloat16), params["spk_conv_b"])


# ----------------------------------------------------------------------------
# JAX glue: gather-free framing, scatter-free overlap-add, parameter init.
# ----------------------------------------------------------------------------
def frame_signal(x, L, hop):
    """x: (B, T_in) -> (B, L, n_frames) for a 50%-overlap conv1d (no gather)."""
    assert L == 2 * hop, "kernel_size must equal 2 * stride"
    Bn, T_in = x.shape
    n_frames = (T_in - L) // hop + 1
    need = (n_frames + 1) * hop                         # always <= T_in for L == 2*hop
    xs = x[:, :need].reshape(Bn, n_frames + 1, hop)
    fr = jnp.concatenate([xs[:, :-1, :], xs[:, 1:, :]], axis=2)  # (B, n_frames, L)
    return jnp.transpose(fr, (0, 2, 1))                          # (B, L, n_frames)


def pad_time(frames, Tp):
    Bn, L, T = frames.shape
    return jnp.pad(frames, ((0, 0), (0, 0), (0, Tp - T)))


def overlap_add(frames, hop, bias):
    """frames: (B, L, T) with L == 2*hop -> (B, (T-1)*hop + L).  Shift-and-add
    of the two frame halves (no scatter)."""
    Bn, L, T = frames.shape
    assert L == 2 * hop
    first = jnp.transpose(frames[:, :hop, :], (0, 2, 1)).reshape(Bn, T * hop)
    second = jnp.transpose(frames[:, hop:, :], (0, 2, 1)).reshape(Bn, T * hop)
    out = (jnp.pad(first, ((0, 0), (0, hop)))
           + jnp.pad(second, ((0, 0), (hop, 0))))
    return out + bias


def _dense(key, shape, scale=0.1):
    return scale * jax.random.normal(key, shape, dtype=jnp.float32)


def init_params(key, cfg):
    t = cfg["tasnet"]
    L, N, Bc, H = (t["kernel_size"], t["enc_channels"], t["in_channels"],
                   t["conv_channels"])
    P, X, R, S = (t["block_kernel_size"], t["num_blocks"], t["num_repeats"],
                  t["num_speakers"])
    NB = X * R
    keys = jax.random.split(key, 20)
    return dict(
        enc_w=_dense(keys[0], (N, L)), enc_b=_dense(keys[1], (N, 1)),
        ln_g=jnp.ones((N, 1), jnp.float32), ln_b=jnp.zeros((N, 1), jnp.float32),
        proj_w=_dense(keys[2], (Bc, N)), proj_b=_dense(keys[3], (Bc, 1)),
        spk_enc_w=_dense(keys[4], (Bc, L)), spk_enc_b=_dense(keys[5], (Bc, 1)),
        spk_conv_w=_dense(keys[6], (Bc, Bc)), spk_conv_b=_dense(keys[7], (Bc, 1)),
        spk_cls_w=_dense(keys[8], (S, Bc)), spk_cls_b=_dense(keys[9], (S,)),
        mask_w=_dense(keys[10], (N, Bc)), mask_b=_dense(keys[11], (N, 1)),
        dec_wT=_dense(keys[12], (L, N)),      # ConvTranspose1d weight (N,1,L) -> (L,N)
        dec_b=_dense(keys[13], (1,))[0],
        # stacked Conv1DBlock parameters (block index leading)
        blk_w1=_dense(keys[14], (NB, H, Bc)), blk_b1=_dense(keys[15], (NB, H, 1)),
        blk_g1=jnp.ones((NB, H, 1), jnp.float32),
        blk_be1=jnp.zeros((NB, H, 1), jnp.float32),
        blk_dw=_dense(keys[16], (NB, H, P)), blk_db=_dense(keys[17], (NB, H, 1)),
        blk_g2=jnp.ones((NB, H, 1), jnp.float32),
        blk_be2=jnp.zeros((NB, H, 1), jnp.float32),
        blk_w2=_dense(keys[18], (NB, Bc, H)), blk_b2=_dense(keys[19], (NB, Bc, 1)),
        # learned PReLU slopes (nn.PReLU default init 0.25, one scalar per module)
        blk_p1=PRELU_INIT * jnp.ones((NB, 1, 1), jnp.float32),
        blk_p2=PRELU_INIT * jnp.ones((NB, 1, 1), jnp.float32),
    )


# TODO(synk): SpeakerNetwork / SpeakerAdaptationLayer definitions are not part
# of the provided module; implemented here as (encoder -> 1x1 conv+ReLU ->
# masked mean pool -> linear logits) with multiplicative ('mul') adaptation.
def conv_tasnet_forward(params, cfg, x, s):
    t = cfg["tasnet"]
    L = t["kernel_size"]
    hop = L // 2
    X, P = t["num_blocks"], t["block_kernel_size"]
    Bn, input_length = x.shape

    # ----- framing (encoder im2col), lane-padded to a multiple of 256 -------
    frames = frame_signal(x, L, hop)                  # (B, L, T_valid)
    T_valid = frames.shape[-1]
    max_pad = (2 ** (X - 1)) * (P - 1) // 2
    Tp = _round_up(T_valid + max_pad, LANE_ALIGN)
    frames_p = pad_time(frames, Tp)

    # ----- speaker network (padding = L//2 as in the Encoder module) --------
    s_pad = jnp.pad(s, ((0, 0), (hop, hop)))
    s_frames = frame_signal(s_pad, L, hop)
    Ts_valid = s_frames.shape[-1]
    s_frames_p = pad_time(s_frames, _round_up(Ts_valid, LANE_ALIGN))
    spk = speaker_embed(params, s_frames_p, Ts_valid)            # (B, Bc, 1)
    z = spk[:, :, 0] @ params["spk_cls_w"].T + params["spk_cls_b"]

    # ----- fused encoder + TCN + mask + decoder-frame kernel ----------------
    dec_frames = fused_tasnet(params, cfg, frames_p, spk, T_valid)  # (B, L, Tp)
    dec_frames = dec_frames[:, :, :T_valid]

    # ----- overlap-add + length matching -------------------------------------
    out = overlap_add(dec_frames, hop, params["dec_b"])          # (B, out_len)
    out_len = out.shape[1]
    if out_len > input_length:
        out = out[:, :input_length]
    elif out_len < input_length:
        out = jnp.pad(out, ((0, 0), (0, input_length - out_len)))
    return out, z


# ----------------------------------------------------------------------------
# main
# ----------------------------------------------------------------------------
if __name__ == "__main__":
    key = jax.random.PRNGKey(0)
    kx, ks, kp = jax.random.split(key, 3)

    B, T_IN = 2, 128
    x = jax.random.normal(kx, (B, T_IN), dtype=jnp.float32)      # mixture waveform
    s_ref = jax.random.normal(ks, (B, T_IN), dtype=jnp.float32)  # speaker reference

    params = init_params(kp, CONFIG)

    fwd = jax.jit(lambda p, a, b: conv_tasnet_forward(p, CONFIG, a, b))
    out, z = fwd(params, x, s_ref)
    out = jax.block_until_ready(out)
    z = jax.block_until_ready(z)

    assert out.shape == (B, T_IN), out.shape
    assert z.shape == (B, CONFIG["tasnet"]["num_speakers"]), z.shape
    assert bool(jnp.all(jnp.isfinite(out))) and bool(jnp.all(jnp.isfinite(z)))
    print("KERNEL_OK")
</pallas_src>

<mosaic_0001>
module attributes {stable_mosaic.version = 11 : i64} {
  func.func @_spk_kernel(%arg0: i32, %arg1: memref<1x16x256xbf16, #tpu.memory_space<vmem>>, %arg2: memref<32x16xbf16, #tpu.memory_space<vmem>>, %arg3: memref<32x1xf32, #tpu.memory_space<vmem>>, %arg4: memref<32x32xbf16, #tpu.memory_space<vmem>>, %arg5: memref<32x1xf32, #tpu.memory_space<vmem>>, %arg6: memref<1x32x1xf32, #tpu.memory_space<vmem>>) attributes {dimension_semantics = [#tpu.dimension_semantics<parallel>], iteration_bounds = array<i64: 2>, scalar_prefetch = 0 : i64, scratch_operands = 0 : i64, tpu.core_type = #tpu.core_type<tc>, window_params = [{transform_indices = @transform_0, window_bounds = array<i64: 1, 16, 256>}, {pipeline_mode = #tpu.pipeline_mode<synchronous>, transform_indices = @transform_1, window_bounds = array<i64: 32, 16>}, {pipeline_mode = #tpu.pipeline_mode<synchronous>, transform_indices = @transform_2, window_bounds = array<i64: 32, 1>}, {pipeline_mode = #tpu.pipeline_mode<synchronous>, transform_indices = @transform_3, window_bounds = array<i64: 32, 32>}, {pipeline_mode = #tpu.pipeline_mode<synchronous>, transform_indices = @transform_4, window_bounds = array<i64: 32, 1>}, {transform_indices = @transform_5, window_bounds = array<i64: 1, 32, 1>}]} {
    %0 = tpu.iota {dimensions = array<i32: 1>} : vector<1x256xi32>
    %c17_i32 = arith.constant 17 : i32
    %1 = vector.broadcast %c17_i32 : i32 to vector<1x256xi32>
    %2 = arith.cmpi slt, %0, %1 : vector<1x256xi32>
    %3 = arith.extui %2 : vector<1x256xi1> to vector<1x256xi32>
    %4 = arith.sitofp %3 : vector<1x256xi32> to vector<1x256xf32>
    %c0 = arith.constant 0 : index
    %c0_0 = arith.constant 0 : index
    %5 = vector.load %arg2[%c0, %c0_0] : memref<32x16xbf16, #tpu.memory_space<vmem>>, vector<32x16xbf16>
    %c0_1 = arith.constant 0 : index
    %c0_2 = arith.constant 0 : index
    %c0_3 = arith.constant 0 : index
    %6 = vector.load %arg1[%c0_1, %c0_2, %c0_3] : memref<1x16x256xbf16, #tpu.memory_space<vmem>>, vector<1x16x256xbf16>
    %7 = vector.shape_cast %6 : vector<1x16x256xbf16> to vector<16x256xbf16>
    %cst = arith.constant dense<0.000000e+00> : vector<32x256xf32>
    %8 = tpu.matmul %5, %7, %cst {dimension_numbers = #tpu.dot_dimension_numbers<[1], [0], [0], [1], [0, 0, 1, 1], [], []>} : vector<32x16xbf16>, vector<16x256xbf16>, vector<32x256xf32> -> vector<32x256xf32>
    %c0_4 = arith.constant 0 : index
    %c0_5 = arith.constant 0 : index
    %9 = vector.load %arg3[%c0_4, %c0_5] : memref<32x1xf32, #tpu.memory_space<vmem>>, vector<32x1xf32>
    %10 = vector.broadcast %9 : vector<32x1xf32> to vector<32x256xf32>
    %11 = arith.addf %8, %10 : vector<32x256xf32>
    %cst_6 = arith.constant 0.000000e+00 : f32
    %12 = vector.broadcast %cst_6 : f32 to vector<32x256xf32>
    %13 = arith.maximumf %11, %12 : vector<32x256xf32>
    %c0_7 = arith.constant 0 : index
    %c0_8 = arith.constant 0 : index
    %14 = vector.load %arg4[%c0_7, %c0_8] : memref<32x32xbf16, #tpu.memory_space<vmem>>, vector<32x32xbf16>
    %15 = arith.truncf %13 : vector<32x256xf32> to vector<32x256xbf16>
    %cst_9 = arith.constant dense<0.000000e+00> : vector<32x256xf32>
    %16 = tpu.matmul %14, %15, %cst_9 {dimension_numbers = #tpu.dot_dimension_numbers<[1], [0], [0], [1], [0, 0, 1, 1], [], []>} : vector<32x32xbf16>, vector<32x256xbf16>, vector<32x256xf32> -> vector<32x256xf32>
    %c0_10 = arith.constant 0 : index
    %c0_11 = arith.constant 0 : index
    %17 = vector.load %arg5[%c0_10, %c0_11] : memref<32x1xf32, #tpu.memory_space<vmem>>, vector<32x1xf32>
    %18 = vector.broadcast %17 : vector<32x1xf32> to vector<32x256xf32>
    %19 = arith.addf %16, %18 : vector<32x256xf32>
    %cst_12 = arith.constant 0.000000e+00 : f32
    %20 = vector.broadcast %cst_12 : f32 to vector<32x256xf32>
    %21 = arith.maximumf %19, %20 : vector<32x256xf32>
    %22 = vector.broadcast %4 : vector<1x256xf32> to vector<32x256xf32>
    %23 = arith.mulf %21, %22 : vector<32x256xf32>
    %cst_13 = arith.constant dense<0.000000e+00> : vector<32xf32>
    %24 = vector.multi_reduction <add>, %23, %cst_13 [1] : vector<32x256xf32> to vector<32xf32>
    %25 = vector.shape_cast %24 : vector<32xf32> to vector<32x1xf32>
    %cst_14 = arith.constant 0.0588235296 : f32
    %26 = vector.broadcast %cst_14 : f32 to vector<32x1xf32>
    %27 = arith.mulf %25, %26 : vector<32x1xf32>
    %c0_15 = arith.constant 0 : index
    %c0_16 = arith.constant 0 : index
    %c0_17 = arith.constant 0 : index
    %28 = vector.load %arg6[%c0_15, %c0_16, %c0_17] : memref<1x32x1xf32, #tpu.memory_space<vmem>>, vector<1x32x1xf32>
    %29 = vector.shape_cast %28 : vector<1x32x1xf32> to vector<32x1xf32>
    %30 = vector.shape_cast %27 : vector<32x1xf32> to vector<1x32x1xf32>
    tpu.vector_store %arg6[%c0_15, %c0_16, %c0_17], %30 {strides = array<i32>} : memref<1x32x1xf32, #tpu.memory_space<vmem>>, vector<1x32x1xf32>,
    return
  }
  func.func @transform_0(%arg0: i32) -> (i32, i32, i32) {
    %c0_i32 = arith.constant 0 : i32
    %c0_i32_0 = arith.constant 0 : i32
    %c0_i32_1 = arith.constant 0 : i32
    return %arg0, %c0_i32, %c0_i32_0 : i32, i32, i32
  }
  func.func @transform_1(%arg0: i32) -> (i32, i32) {
    %c0_i32 = arith.constant 0 : i32
    %c0_i32_0 = arith.constant 0 : i32
    %c0_i32_1 = arith.constant 0 : i32
    return %c0_i32, %c0_i32_0 : i32, i32
  }
  func.func @transform_2(%arg0: i32) -> (i32, i32) {
    %c0_i32 = arith.constant 0 : i32
    %c0_i32_0 = arith.constant 0 : i32
    %c0_i32_1 = arith.constant 0 : i32
    return %c0_i32, %c0_i32_0 : i32, i32
  }
  func.func @transform_3(%arg0: i32) -> (i32, i32) {
    %c0_i32 = arith.constant 0 : i32
    %c0_i32_0 = arith.constant 0 : i32
    %c0_i32_1 = arith.constant 0 : i32
    return %c0_i32, %c0_i32_0 : i32, i32
  }
  func.func @transform_4(%arg0: i32) -> (i32, i32) {
    %c0_i32 = arith.constant 0 : i32
    %c0_i32_0 = arith.constant 0 : i32
    %c0_i32_1 = arith.constant 0 : i32
    return %c0_i32, %c0_i32_0 : i32, i32
  }
  func.func @transform_5(%arg0: i32) -> (i32, i32, i32) {
    %c0_i32 = arith.constant 0 : i32
    %c0_i32_0 = arith.constant 0 : i32
    %c0_i32_1 = arith.constant 0 : i32
    return %arg0, %c0_i32, %c0_i32_0 : i32, i32, i32
  }
}

module attributes {stable_mosaic.version = 11 : i64} {
  func.func @_tasnet_kernel(%arg0: i32, %arg1: i32, %arg2: memref<1x16x256xbf16, #tpu.memory_space<vmem>>, %arg3: memref<1x32x1xf32, #tpu.memory_space<vmem>>, %arg4: memref<32x16xbf16, #tpu.memory_space<vmem>>, %arg5: memref<32x1xf32, #tpu.memory_space<vmem>>, %arg6: memref<32x32xbf16, #tpu.memory_space<vmem>>, %arg7: memref<32x1xf32, #tpu.memory_space<vmem>>, %arg8: memref<32x32xbf16, #tpu.memory_space<vmem>>, %arg9: memref<32x1xf32, #tpu.memory_space<vmem>>, %arg10: memref<16x32xbf16, #tpu.memory_space<vmem>>, %arg11: memref<2x64x32xbf16, #tpu.memory_space<vmem>>, %arg12: memref<2x64x9xf32, #tpu.memory_space<vmem>>, %arg13: memref<2x32x64xbf16, #tpu.memory_space<vmem>>, %arg14: memref<2x32x1xf32, #tpu.memory_space<vmem>>, %arg15: memref<1x16x256xf32, #tpu.memory_space<vmem>>, %arg16: memref<32x256xf32, #tpu.memory_space<vmem>>, %arg17: memref<32x256xf32, #tpu.memory_space<vmem>>) attributes {dimension_semantics = [#tpu.dimension_semantics<parallel>, #tpu.dimension_semantics<arbitrary>], iteration_bounds = array<i64: 2, 2>, scalar_prefetch = 0 : i64, scratch_operands = 2 : i64, tpu.core_type = #tpu.core_type<tc>, window_params = [{transform_indices = @transform_0, window_bounds = array<i64: 1, 16, 256>}, {transform_indices = @transform_1, window_bounds = array<i64: 1, 32, 1>}, {pipeline_mode = #tpu.pipeline_mode<synchronous>, transform_indices = @transform_2, window_bounds = array<i64: 32, 16>}, {pipeline_mode = #tpu.pipeline_mode<synchronous>, transform_indices = @transform_3, window_bounds = array<i64: 32, 1>}, {pipeline_mode = #tpu.pipeline_mode<synchronous>, transform_indices = @transform_4, window_bounds = array<i64: 32, 32>}, {pipeline_mode = #tpu.pipeline_mode<synchronous>, transform_indices = @transform_5, window_bounds = array<i64: 32, 1>}, {pipeline_mode = #tpu.pipeline_mode<synchronous>, transform_indices = @transform_6, window_bounds = array<i64: 32, 32>}, {pipeline_mode = #tpu.pipeline_mode<synchronous>, transform_indices = @transform_7, window_bounds = array<i64: 32, 1>}, {pipeline_mode = #tpu.pipeline_mode<synchronous>, transform_indices = @transform_8, window_bounds = array<i64: 16, 32>}, {transform_indices = @transform_9, window_bounds = array<i64: 2, 64, 32>}, {transform_indices = @transform_10, window_bounds = array<i64: 2, 64, 9>}, {transform_indices = @transform_11, window_bounds = array<i64: 2, 32, 64>}, {transform_indices = @transform_12, window_bounds = array<i64: 2, 32, 1>}, {transform_indices = @transform_13, window_bounds = array<i64: 1, 16, 256>}]} {
    %0 = tpu.iota {dimensions = array<i32: 1>} : vector<1x256xi32>
    %c15_i32 = arith.constant 15 : i32
    %1 = vector.broadcast %c15_i32 : i32 to vector<1x256xi32>
    %2 = arith.cmpi slt, %0, %1 : vector<1x256xi32>
    %3 = arith.extui %2 : vector<1x256xi1> to vector<1x256xi32>
    %4 = arith.sitofp %3 : vector<1x256xi32> to vector<1x256xf32>
    %c0_i32 = arith.constant 0 : i32
    %5 = arith.cmpi eq, %arg1, %c0_i32 : i32
    %6 = arith.extui %5 : i1 to i32
    %c0_i32_0 = arith.constant 0 : i32
    %7 = arith.cmpi ne, %6, %c0_i32_0 : i32
    scf.if %7 {
      %c0_58 = arith.constant 0 : index
      %c0_59 = arith.constant 0 : index
      %c0_60 = arith.constant 0 : index
      %190 = vector.load %arg2[%c0_58, %c0_59, %c0_60] : memref<1x16x256xbf16, #tpu.memory_space<vmem>>, vector<1x16x256xbf16>
      %191 = vector.shape_cast %190 : vector<1x16x256xbf16> to vector<16x256xbf16>
      %c0_61 = arith.constant 0 : index
      %c0_62 = arith.constant 0 : index
      %192 = vector.load %arg4[%c0_61, %c0_62] : memref<32x16xbf16, #tpu.memory_space<vmem>>, vector<32x16xbf16>
      %cst_63 = arith.constant dense<0.000000e+00> : vector<32x256xf32>
      %193 = tpu.matmul %192, %191, %cst_63 {dimension_numbers = #tpu.dot_dimension_numbers<[1], [0], [0], [1], [0, 0, 1, 1], [], []>} : vector<32x16xbf16>, vector<16x256xbf16>, vector<32x256xf32> -> vector<32x256xf32>
      %c0_64 = arith.constant 0 : index
      %c0_65 = arith.constant 0 : index
      %194 = vector.load %arg5[%c0_64, %c0_65] : memref<32x1xf32, #tpu.memory_space<vmem>>, vector<32x1xf32>
      %195 = vector.broadcast %194 : vector<32x1xf32> to vector<32x256xf32>
      %196 = arith.addf %193, %195 : vector<32x256xf32>
      %cst_66 = arith.constant 0.000000e+00 : f32
      %197 = vector.broadcast %cst_66 : f32 to vector<32x256xf32>
      %198 = arith.maximumf %196, %197 : vector<32x256xf32>
      %c0_67 = arith.constant 0 : index
      %c0_68 = arith.constant 0 : index
      %199 = vector.load %arg17[%c0_67, %c0_68] : memref<32x256xf32, #tpu.memory_space<vmem>>, vector<32x256xf32>
      tpu.vector_store %arg17[%c0_67, %c0_68], %198 {strides = array<i32>} : memref<32x256xf32, #tpu.memory_space<vmem>>, vector<32x256xf32>,
      %c0_69 = arith.constant 0 : index
      %c0_70 = arith.constant 0 : index
      %200 = vector.load %arg6[%c0_69, %c0_70] : memref<32x32xbf16, #tpu.memory_space<vmem>>, vector<32x32xbf16>
      %cst_71 = arith.constant dense<0.000000e+00> : vector<256xf32>
      %201 = vector.multi_reduction <add>, %198, %cst_71 [0] : vector<32x256xf32> to vector<256xf32>
      %202 = vector.shape_cast %201 : vector<256xf32> to vector<1x256xf32>
      %cst_72 = arith.constant 3.200000e+01 : f32
      %203 = vector.broadcast %cst_72 : f32 to vector<1x256xf32>
      %204 = arith.divf %202, %203 : vector<1x256xf32>
      %205 = vector.broadcast %204 : vector<1x256xf32> to vector<32x256xf32>
      %206 = arith.subf %198, %205 : vector<32x256xf32>
      %207 = arith.mulf %206, %206 : vector<32x256xf32>
      %cst_73 = arith.constant dense<0.000000e+00> : vector<256xf32>
      %208 = vector.multi_reduction <add>, %207, %cst_73 [0] : vector<32x256xf32> to vector<256xf32>
      %209 = vector.shape_cast %208 : vector<256xf32> to vector<1x256xf32>
      %cst_74 = arith.constant 3.200000e+01 : f32
      %210 = vector.broadcast %cst_74 : f32 to vector<1x256xf32>
      %211 = arith.divf %209, %210 : vector<1x256xf32>
      %cst_75 = arith.constant 9.99999974E-6 : f32
      %212 = vector.broadcast %cst_75 : f32 to vector<1x256xf32>
      %213 = arith.addf %211, %212 : vector<1x256xf32>
      %214 = math.rsqrt %213 : vector<1x256xf32>
      %215 = vector.broadcast %214 : vector<1x256xf32> to vector<32x256xf32>
      %216 = arith.mulf %206, %215 : vector<32x256xf32>
      %217 = arith.truncf %216 : vector<32x256xf32> to vector<32x256xbf16>
      %cst_76 = arith.constant dense<0.000000e+00> : vector<32x256xf32>
      %218 = tpu.matmul %200, %217, %cst_76 {dimension_numbers = #tpu.dot_dimension_numbers<[1], [0], [0], [1], [0, 0, 1, 1], [], []>} : vector<32x32xbf16>, vector<32x256xbf16>, vector<32x256xf32> -> vector<32x256xf32>
      %c0_77 = arith.constant 0 : index
      %c0_78 = arith.constant 0 : index
      %219 = vector.load %arg7[%c0_77, %c0_78] : memref<32x1xf32, #tpu.memory_space<vmem>>, vector<32x1xf32>
      %220 = vector.broadcast %219 : vector<32x1xf32> to vector<32x256xf32>
      %221 = arith.addf %218, %220 : vector<32x256xf32>
      %c0_79 = arith.constant 0 : index
      %c0_80 = arith.constant 0 : index
      %222 = vector.load %arg16[%c0_79, %c0_80] : memref<32x256xf32, #tpu.memory_space<vmem>>, vector<32x256xf32>
      tpu.vector_store %arg16[%c0_79, %c0_80], %221 {strides = array<i32>} : memref<32x256xf32, #tpu.memory_space<vmem>>, vector<32x256xf32>,
    } else {
    }
    %c0 = arith.constant 0 : index
    %c0_1 = arith.constant 0 : index
    %8 = vector.load %arg16[%c0, %c0_1] : memref<32x256xf32, #tpu.memory_space<vmem>>, vector<32x256xf32>
    %c0_2 = arith.constant 0 : index
    %c0_3 = arith.constant 0 : index
    %c0_4 = arith.constant 0 : index
    %9 = vector.load %arg12[%c0_2, %c0_3, %c0_4] : memref<2x64x9xf32, #tpu.memory_space<vmem>>, vector<1x64x9xf32>
    %10 = vector.shape_cast %9 : vector<1x64x9xf32> to vector<64x9xf32>
    %11 = vector.extract_strided_slice %10 {offsets = [0, 0], sizes = [64, 3], strides = [1, 1]} : vector<64x9xf32> to vector<64x3xf32>
    %12 = vector.extract_strided_slice %10 {offsets = [0, 3], sizes = [64, 1], strides = [1, 1]} : vector<64x9xf32> to vector<64x1xf32>
    %13 = vector.extract_strided_slice %10 {offsets = [0, 4], sizes = [64, 1], strides = [1, 1]} : vector<64x9xf32> to vector<64x1xf32>
    %14 = vector.extract_strided_slice %10 {offsets = [0, 5], sizes = [64, 1], strides = [1, 1]} : vector<64x9xf32> to vector<64x1xf32>
    %15 = vector.extract_strided_slice %10 {offsets = [0, 6], sizes = [64, 1], strides = [1, 1]} : vector<64x9xf32> to vector<64x1xf32>
    %16 = vector.extract_strided_slice %10 {offsets = [0, 7], sizes = [64, 1], strides = [1, 1]} : vector<64x9xf32> to vector<64x1xf32>
    %17 = vector.extract_strided_slice %10 {offsets = [0, 8], sizes = [64, 1], strides = [1, 1]} : vector<64x9xf32> to vector<64x1xf32>
    %c0_5 = arith.constant 0 : index
    %c0_6 = arith.constant 0 : index
    %c0_7 = arith.constant 0 : index
    %18 = vector.load %arg11[%c0_5, %c0_6, %c0_7] : memref<2x64x32xbf16, #tpu.memory_space<vmem>>, vector<1x64x32xbf16>
    %19 = vector.shape_cast %18 : vector<1x64x32xbf16> to vector<64x32xbf16>
    %20 = arith.truncf %8 : vector<32x256xf32> to vector<32x256xbf16>
    %cst = arith.constant dense<0.000000e+00> : vector<64x256xf32>
    %21 = tpu.matmul %19, %20, %cst {dimension_numbers = #tpu.dot_dimension_numbers<[1], [0], [0], [1], [0, 0, 1, 1], [], []>} : vector<64x32xbf16>, vector<32x256xbf16>, vector<64x256xf32> -> vector<64x256xf32>
    %22 = vector.broadcast %13 : vector<64x1xf32> to vector<64x256xf32>
    %23 = arith.addf %21, %22 : vector<64x256xf32>
    %cst_8 = arith.constant 0.000000e+00 : f32
    %24 = vector.broadcast %cst_8 : f32 to vector<64x256xf32>
    %25 = arith.cmpf oge, %23, %24 : vector<64x256xf32>
    %26 = vector.broadcast %16 : vector<64x1xf32> to vector<64x256xf32>
    %27 = arith.mulf %26, %23 : vector<64x256xf32>
    %28 = arith.select %25, %23, %27 : vector<64x256xi1>, vector<64x256xf32>
    %cst_9 = arith.constant dense<0.000000e+00> : vector<256xf32>
    %29 = vector.multi_reduction <add>, %28, %cst_9 [0] : vector<64x256xf32> to vector<256xf32>
    %30 = vector.shape_cast %29 : vector<256xf32> to vector<1x256xf32>
    %cst_10 = arith.constant 6.400000e+01 : f32
    %31 = vector.broadcast %cst_10 : f32 to vector<1x256xf32>
    %32 = arith.divf %30, %31 : vector<1x256xf32>
    %33 = vector.broadcast %32 : vector<1x256xf32> to vector<64x256xf32>
    %34 = arith.subf %28, %33 : vector<64x256xf32>
    %35 = arith.mulf %34, %34 : vector<64x256xf32>
    %cst_11 = arith.constant dense<0.000000e+00> : vector<256xf32>
    %36 = vector.multi_reduction <add>, %35, %cst_11 [0] : vector<64x256xf32> to vector<256xf32>
    %37 = vector.shape_cast %36 : vector<256xf32> to vector<1x256xf32>
    %cst_12 = arith.constant 6.400000e+01 : f32
    %38 = vector.broadcast %cst_12 : f32 to vector<1x256xf32>
    %39 = arith.divf %37, %38 : vector<1x256xf32>
    %cst_13 = arith.constant 9.99999974E-6 : f32
    %40 = vector.broadcast %cst_13 : f32 to vector<1x256xf32>
    %41 = arith.addf %39, %40 : vector<1x256xf32>
    %42 = math.rsqrt %41 : vector<1x256xf32>
    %43 = vector.broadcast %42 : vector<1x256xf32> to vector<64x256xf32>
    %44 = arith.mulf %34, %43 : vector<64x256xf32>
    %45 = vector.broadcast %14 : vector<64x1xf32> to vector<64x256xf32>
    %46 = arith.mulf %44, %45 : vector<64x256xf32>
    %47 = vector.broadcast %15 : vector<64x1xf32> to vector<64x256xf32>
    %48 = arith.addf %46, %47 : vector<64x256xf32>
    %49 = vector.broadcast %4 : vector<1x256xf32> to vector<64x256xf32>
    %50 = arith.mulf %48, %49 : vector<64x256xf32>
    %51 = vector.extract_strided_slice %11 {offsets = [0, 1], sizes = [64, 1], strides = [1, 1]} : vector<64x3xf32> to vector<64x1xf32>
    %52 = vector.broadcast %51 : vector<64x1xf32> to vector<64x256xf32>
    %53 = arith.mulf %52, %50 : vector<64x256xf32>
    %54 = vector.broadcast %12 : vector<64x1xf32> to vector<64x256xf32>
    %55 = arith.addf %54, %53 : vector<64x256xf32>
    %56 = vector.extract_strided_slice %11 {offsets = [0, 0], sizes = [64, 1], strides = [1, 1]} : vector<64x3xf32> to vector<64x1xf32>
    %c1_i32 = arith.constant 1 : i32
    %57 = tpu.dynamic_rotate %50 by %c1_i32 dim 1 : vector<64x256xf32>, i32 -> vector<64x256xf32>
    %58 = vector.broadcast %56 : vector<64x1xf32> to vector<64x256xf32>
    %59 = arith.mulf %58, %57 : vector<64x256xf32>
    %60 = arith.addf %55, %59 : vector<64x256xf32>
    %61 = vector.extract_strided_slice %11 {offsets = [0, 2], sizes = [64, 1], strides = [1, 1]} : vector<64x3xf32> to vector<64x1xf32>
    %c255_i32 = arith.constant 255 : i32
    %62 = tpu.dynamic_rotate %50 by %c255_i32 dim 1 : vector<64x256xf32>, i32 -> vector<64x256xf32>
    %63 = vector.broadcast %61 : vector<64x1xf32> to vector<64x256xf32>
    %64 = arith.mulf %63, %62 : vector<64x256xf32>
    %65 = arith.addf %60, %64 : vector<64x256xf32>
    %cst_14 = arith.constant 0.000000e+00 : f32
    %66 = vector.broadcast %cst_14 : f32 to vector<64x256xf32>
    %67 = arith.cmpf oge, %65, %66 : vector<64x256xf32>
    %68 = vector.broadcast %17 : vector<64x1xf32> to vector<64x256xf32>
    %69 = arith.mulf %68, %65 : vector<64x256xf32>
    %70 = arith.select %67, %65, %69 : vector<64x256xi1>, vector<64x256xf32>
    %cst_15 = arith.constant dense<0.000000e+00> : vector<256xf32>
    %71 = vector.multi_reduction <add>, %70, %cst_15 [0] : vector<64x256xf32> to vector<256xf32>
    %72 = vector.shape_cast %71 : vector<256xf32> to vector<1x256xf32>
    %cst_16 = arith.constant 6.400000e+01 : f32
    %73 = vector.broadcast %cst_16 : f32 to vector<1x256xf32>
    %74 = arith.divf %72, %73 : vector<1x256xf32>
    %75 = vector.broadcast %74 : vector<1x256xf32> to vector<64x256xf32>
    %76 = arith.subf %70, %75 : vector<64x256xf32>
    %77 = arith.mulf %76, %76 : vector<64x256xf32>
    %cst_17 = arith.constant dense<0.000000e+00> : vector<256xf32>
    %78 = vector.multi_reduction <add>, %77, %cst_17 [0] : vector<64x256xf32> to vector<256xf32>
    %79 = vector.shape_cast %78 : vector<256xf32> to vector<1x256xf32>
    %cst_18 = arith.constant 6.400000e+01 : f32
    %80 = vector.broadcast %cst_18 : f32 to vector<1x256xf32>
    %81 = arith.divf %79, %80 : vector<1x256xf32>
    %cst_19 = arith.constant 9.99999974E-6 : f32
    %82 = vector.broadcast %cst_19 : f32 to vector<1x256xf32>
    %83 = arith.addf %81, %82 : vector<1x256xf32>
    %84 = math.rsqrt %83 : vector<1x256xf32>
    %85 = vector.broadcast %84 : vector<1x256xf32> to vector<64x256xf32>
    %86 = arith.mulf %76, %85 : vector<64x256xf32>
    %c0_20 = arith.constant 0 : index
    %c0_21 = arith.constant 0 : index
    %c0_22 = arith.constant 0 : index
    %87 = vector.load %arg13[%c0_20, %c0_21, %c0_22] : memref<2x32x64xbf16, #tpu.memory_space<vmem>>, vector<1x32x64xbf16>
    %88 = vector.shape_cast %87 : vector<1x32x64xbf16> to vector<32x64xbf16>
    %89 = arith.truncf %86 : vector<64x256xf32> to vector<64x256xbf16>
    %cst_23 = arith.constant dense<0.000000e+00> : vector<32x256xf32>
    %90 = tpu.matmul %88, %89, %cst_23 {dimension_numbers = #tpu.dot_dimension_numbers<[1], [0], [0], [1], [0, 0, 1, 1], [], []>} : vector<32x64xbf16>, vector<64x256xbf16>, vector<32x256xf32> -> vector<32x256xf32>
    %91 = arith.addf %8, %90 : vector<32x256xf32>
    %c0_24 = arith.constant 0 : index
    %c0_25 = arith.constant 0 : index
    %c0_26 = arith.constant 0 : index
    %92 = vector.load %arg14[%c0_24, %c0_25, %c0_26] : memref<2x32x1xf32, #tpu.memory_space<vmem>>, vector<1x32x1xf32>
    %93 = vector.shape_cast %92 : vector<1x32x1xf32> to vector<32x1xf32>
    %94 = vector.broadcast %93 : vector<32x1xf32> to vector<32x256xf32>
    %95 = arith.addf %91, %94 : vector<32x256xf32>
    %c1 = arith.constant 1 : index
    %c0_27 = arith.constant 0 : index
    %c0_28 = arith.constant 0 : index
    %96 = vector.load %arg12[%c1, %c0_27, %c0_28] : memref<2x64x9xf32, #tpu.memory_space<vmem>>, vector<1x64x9xf32>
    %97 = vector.shape_cast %96 : vector<1x64x9xf32> to vector<64x9xf32>
    %98 = vector.extract_strided_slice %97 {offsets = [0, 0], sizes = [64, 3], strides = [1, 1]} : vector<64x9xf32> to vector<64x3xf32>
    %99 = vector.extract_strided_slice %97 {offsets = [0, 3], sizes = [64, 1], strides = [1, 1]} : vector<64x9xf32> to vector<64x1xf32>
    %100 = vector.extract_strided_slice %97 {offsets = [0, 4], sizes = [64, 1], strides = [1, 1]} : vector<64x9xf32> to vector<64x1xf32>
    %101 = vector.extract_strided_slice %97 {offsets = [0, 5], sizes = [64, 1], strides = [1, 1]} : vector<64x9xf32> to vector<64x1xf32>
    %102 = vector.extract_strided_slice %97 {offsets = [0, 6], sizes = [64, 1], strides = [1, 1]} : vector<64x9xf32> to vector<64x1xf32>
    %103 = vector.extract_strided_slice %97 {offsets = [0, 7], sizes = [64, 1], strides = [1, 1]} : vector<64x9xf32> to vector<64x1xf32>
    %104 = vector.extract_strided_slice %97 {offsets = [0, 8], sizes = [64, 1], strides = [1, 1]} : vector<64x9xf32> to vector<64x1xf32>
    %c1_29 = arith.constant 1 : index
    %c0_30 = arith.constant 0 : index
    %c0_31 = arith.constant 0 : index
    %105 = vector.load %arg11[%c1_29, %c0_30, %c0_31] : memref<2x64x32xbf16, #tpu.memory_space<vmem>>, vector<1x64x32xbf16>
    %106 = vector.shape_cast %105 : vector<1x64x32xbf16> to vector<64x32xbf16>
    %107 = arith.truncf %95 : vector<32x256xf32> to vector<32x256xbf16>
    %cst_32 = arith.constant dense<0.000000e+00> : vector<64x256xf32>
    %108 = tpu.matmul %106, %107, %cst_32 {dimension_numbers = #tpu.dot_dimension_numbers<[1], [0], [0], [1], [0, 0, 1, 1], [], []>} : vector<64x32xbf16>, vector<32x256xbf16>, vector<64x256xf32> -> vector<64x256xf32>
    %109 = vector.broadcast %100 : vector<64x1xf32> to vector<64x256xf32>
    %110 = arith.addf %108, %109 : vector<64x256xf32>
    %cst_33 = arith.constant 0.000000e+00 : f32
    %111 = vector.broadcast %cst_33 : f32 to vector<64x256xf32>
    %112 = arith.cmpf oge, %110, %111 : vector<64x256xf32>
    %113 = vector.broadcast %103 : vector<64x1xf32> to vector<64x256xf32>
    %114 = arith.mulf %113, %110 : vector<64x256xf32>
    %115 = arith.select %112, %110, %114 : vector<64x256xi1>, vector<64x256xf32>
    %cst_34 = arith.constant dense<0.000000e+00> : vector<256xf32>
    %116 = vector.multi_reduction <add>, %115, %cst_34 [0] : vector<64x256xf32> to vector<256xf32>
    %117 = vector.shape_cast %116 : vector<256xf32> to vector<1x256xf32>
    %cst_35 = arith.constant 6.400000e+01 : f32
    %118 = vector.broadcast %cst_35 : f32 to vector<1x256xf32>
    %119 = arith.divf %117, %118 : vector<1x256xf32>
    %120 = vector.broadcast %119 : vector<1x256xf32> to vector<64x256xf32>
    %121 = arith.subf %115, %120 : vector<64x256xf32>
    %122 = arith.mulf %121, %121 : vector<64x256xf32>
    %cst_36 = arith.constant dense<0.000000e+00> : vector<256xf32>
    %123 = vector.multi_reduction <add>, %122, %cst_36 [0] : vector<64x256xf32> to vector<256xf32>
    %124 = vector.shape_cast %123 : vector<256xf32> to vector<1x256xf32>
    %cst_37 = arith.constant 6.400000e+01 : f32
    %125 = vector.broadcast %cst_37 : f32 to vector<1x256xf32>
    %126 = arith.divf %124, %125 : vector<1x256xf32>
    %cst_38 = arith.constant 9.99999974E-6 : f32
    %127 = vector.broadcast %cst_38 : f32 to vector<1x256xf32>
    %128 = arith.addf %126, %127 : vector<1x256xf32>
    %129 = math.rsqrt %128 : vector<1x256xf32>
    %130 = vector.broadcast %129 : vector<1x256xf32> to vector<64x256xf32>
    %131 = arith.mulf %121, %130 : vector<64x256xf32>
    %132 = vector.broadcast %101 : vector<64x1xf32> to vector<64x256xf32>
    %133 = arith.mulf %131, %132 : vector<64x256xf32>
    %134 = vector.broadcast %102 : vector<64x1xf32> to vector<64x256xf32>
    %135 = arith.addf %133, %134 : vector<64x256xf32>
    %136 = vector.broadcast %4 : vector<1x256xf32> to vector<64x256xf32>
    %137 = arith.mulf %135, %136 : vector<64x256xf32>
    %138 = vector.extract_strided_slice %98 {offsets = [0, 1], sizes = [64, 1], strides = [1, 1]} : vector<64x3xf32> to vector<64x1xf32>
    %139 = vector.broadcast %138 : vector<64x1xf32> to vector<64x256xf32>
    %140 = arith.mulf %139, %137 : vector<64x256xf32>
    %141 = vector.broadcast %99 : vector<64x1xf32> to vector<64x256xf32>
    %142 = arith.addf %141, %140 : vector<64x256xf32>
    %143 = vector.extract_strided_slice %98 {offsets = [0, 0], sizes = [64, 1], strides = [1, 1]} : vector<64x3xf32> to vector<64x1xf32>
    %c2_i32 = arith.constant 2 : i32
    %144 = tpu.dynamic_rotate %137 by %c2_i32 dim 1 : vector<64x256xf32>, i32 -> vector<64x256xf32>
    %145 = vector.broadcast %143 : vector<64x1xf32> to vector<64x256xf32>
    %146 = arith.mulf %145, %144 : vector<64x256xf32>
    %147 = arith.addf %142, %146 : vector<64x256xf32>
    %148 = vector.extract_strided_slice %98 {offsets = [0, 2], sizes = [64, 1], strides = [1, 1]} : vector<64x3xf32> to vector<64x1xf32>
    %c254_i32 = arith.constant 254 : i32
    %149 = tpu.dynamic_rotate %137 by %c254_i32 dim 1 : vector<64x256xf32>, i32 -> vector<64x256xf32>
    %150 = vector.broadcast %148 : vector<64x1xf32> to vector<64x256xf32>
    %151 = arith.mulf %150, %149 : vector<64x256xf32>
    %152 = arith.addf %147, %151 : vector<64x256xf32>
    %cst_39 = arith.constant 0.000000e+00 : f32
    %153 = vector.broadcast %cst_39 : f32 to vector<64x256xf32>
    %154 = arith.cmpf oge, %152, %153 : vector<64x256xf32>
    %155 = vector.broadcast %104 : vector<64x1xf32> to vector<64x256xf32>
    %156 = arith.mulf %155, %152 : vector<64x256xf32>
    %157 = arith.select %154, %152, %156 : vector<64x256xi1>, vector<64x256xf32>
    %cst_40 = arith.constant dense<0.000000e+00> : vector<256xf32>
    %158 = vector.multi_reduction <add>, %157, %cst_40 [0] : vector<64x256xf32> to vector<256xf32>
    %159 = vector.shape_cast %158 : vector<256xf32> to vector<1x256xf32>
    %cst_41 = arith.constant 6.400000e+01 : f32
    %160 = vector.broadcast %cst_41 : f32 to vector<1x256xf32>
    %161 = arith.divf %159, %160 : vector<1x256xf32>
    %162 = vector.broadcast %161 : vector<1x256xf32> to vector<64x256xf32>
    %163 = arith.subf %157, %162 : vector<64x256xf32>
    %164 = arith.mulf %163, %163 : vector<64x256xf32>
    %cst_42 = arith.constant dense<0.000000e+00> : vector<256xf32>
    %165 = vector.multi_reduction <add>, %164, %cst_42 [0] : vector<64x256xf32> to vector<256xf32>
    %166 = vector.shape_cast %165 : vector<256xf32> to vector<1x256xf32>
    %cst_43 = arith.constant 6.400000e+01 : f32
    %167 = vector.broadcast %cst_43 : f32 to vector<1x256xf32>
    %168 = arith.divf %166, %167 : vector<1x256xf32>
    %cst_44 = arith.constant 9.99999974E-6 : f32
    %169 = vector.broadcast %cst_44 : f32 to vector<1x256xf32>
    %170 = arith.addf %168, %169 : vector<1x256xf32>
    %171 = math.rsqrt %170 : vector<1x256xf32>
    %172 = vector.broadcast %171 : vector<1x256xf32> to vector<64x256xf32>
    %173 = arith.mulf %163, %172 : vector<64x256xf32>
    %c1_45 = arith.constant 1 : index
    %c0_46 = arith.constant 0 : index
    %c0_47 = arith.constant 0 : index
    %174 = vector.load %arg13[%c1_45, %c0_46, %c0_47] : memref<2x32x64xbf16, #tpu.memory_space<vmem>>, vector<1x32x64xbf16>
    %175 = vector.shape_cast %174 : vector<1x32x64xbf16> to vector<32x64xbf16>
    %176 = arith.truncf %173 : vector<64x256xf32> to vector<64x256xbf16>
    %cst_48 = arith.constant dense<0.000000e+00> : vector<32x256xf32>
    %177 = tpu.matmul %175, %176, %cst_48 {dimension_numbers = #tpu.dot_dimension_numbers<[1], [0], [0], [1], [0, 0, 1, 1], [], []>} : vector<32x64xbf16>, vector<64x256xbf16>, vector<32x256xf32> -> vector<32x256xf32>
    %178 = arith.addf %95, %177 : vector<32x256xf32>
    %c1_49 = arith.constant 1 : index
    %c0_50 = arith.constant 0 : index
    %c0_51 = arith.constant 0 : index
    %179 = vector.load %arg14[%c1_49, %c0_50, %c0_51] : memref<2x32x1xf32, #tpu.memory_space<vmem>>, vector<1x32x1xf32>
    %180 = vector.shape_cast %179 : vector<1x32x1xf32> to vector<32x1xf32>
    %181 = vector.broadcast %180 : vector<32x1xf32> to vector<32x256xf32>
    %182 = arith.addf %178, %181 : vector<32x256xf32>
    %c0_52 = arith.constant 0 : index
    %c0_53 = arith.constant 0 : index
    %183 = vector.load %arg16[%c0_52, %c0_53] : memref<32x256xf32, #tpu.memory_space<vmem>>, vector<32x256xf32>
    tpu.vector_store %arg16[%c0_52, %c0_53], %182 {strides = array<i32>} : memref<32x256xf32, #tpu.memory_space<vmem>>, vector<32x256xf32>,
    %c0_i32_54 = arith.constant 0 : i32
    %184 = arith.cmpi eq, %arg1, %c0_i32_54 : i32
    %185 = arith.extui %184 : i1 to i32
    %c0_i32_55 = arith.constant 0 : i32
    %186 = arith.cmpi ne, %185, %c0_i32_55 : i32
    scf.if %186 {
      %c0_58 = arith.constant 0 : index
      %c0_59 = arith.constant 0 : index
      %190 = vector.load %arg16[%c0_58, %c0_59] : memref<32x256xf32, #tpu.memory_space<vmem>>, vector<32x256xf32>
      %c0_60 = arith.constant 0 : index
      %c0_61 = arith.constant 0 : index
      %c0_62 = arith.constant 0 : index
      %191 = vector.load %arg3[%c0_60, %c0_61, %c0_62] : memref<1x32x1xf32, #tpu.memory_space<vmem>>, vector<1x32x1xf32>
      %192 = vector.shape_cast %191 : vector<1x32x1xf32> to vector<32x1xf32>
      %193 = vector.broadcast %192 : vector<32x1xf32> to vector<32x256xf32>
      %194 = arith.mulf %190, %193 : vector<32x256xf32>
      %c0_63 = arith.constant 0 : index
      %c0_64 = arith.constant 0 : index
      %195 = vector.load %arg16[%c0_63, %c0_64] : memref<32x256xf32, #tpu.memory_space<vmem>>, vector<32x256xf32>
      tpu.vector_store %arg16[%c0_63, %c0_64], %194 {strides = array<i32>} : memref<32x256xf32, #tpu.memory_space<vmem>>, vector<32x256xf32>,
    } else {
    }
    %c1_i32_56 = arith.constant 1 : i32
    %187 = arith.cmpi eq, %arg1, %c1_i32_56 : i32
    %188 = arith.extui %187 : i1 to i32
    %c0_i32_57 = arith.constant 0 : i32
    %189 = arith.cmpi ne, %188, %c0_i32_57 : i32
    scf.if %189 {
      %c0_58 = arith.constant 0 : index
      %c0_59 = arith.constant 0 : index
      %190 = vector.load %arg8[%c0_58, %c0_59] : memref<32x32xbf16, #tpu.memory_space<vmem>>, vector<32x32xbf16>
      %c0_60 = arith.constant 0 : index
      %c0_61 = arith.constant 0 : index
      %191 = vector.load %arg16[%c0_60, %c0_61] : memref<32x256xf32, #tpu.memory_space<vmem>>, vector<32x256xf32>
      %192 = arith.truncf %191 : vector<32x256xf32> to vector<32x256xbf16>
      %cst_62 = arith.constant dense<0.000000e+00> : vector<32x256xf32>
      %193 = tpu.matmul %190, %192, %cst_62 {dimension_numbers = #tpu.dot_dimension_numbers<[1], [0], [0], [1], [0, 0, 1, 1], [], []>} : vector<32x32xbf16>, vector<32x256xbf16>, vector<32x256xf32> -> vector<32x256xf32>
      %c0_63 = arith.constant 0 : index
      %c0_64 = arith.constant 0 : index
      %194 = vector.load %arg9[%c0_63, %c0_64] : memref<32x1xf32, #tpu.memory_space<vmem>>, vector<32x1xf32>
      %195 = vector.broadcast %194 : vector<32x1xf32> to vector<32x256xf32>
      %196 = arith.addf %193, %195 : vector<32x256xf32>
      %cst_65 = arith.constant 0.000000e+00 : f32
      %197 = vector.broadcast %cst_65 : f32 to vector<32x256xf32>
      %198 = arith.maximumf %196, %197 : vector<32x256xf32>
      %c0_66 = arith.constant 0 : index
      %c0_67 = arith.constant 0 : index
      %199 = vector.load %arg17[%c0_66, %c0_67] : memref<32x256xf32, #tpu.memory_space<vmem>>, vector<32x256xf32>
      %200 = arith.mulf %199, %198 : vector<32x256xf32>
      %c0_68 = arith.constant 0 : index
      %c0_69 = arith.constant 0 : index
      %201 = vector.load %arg10[%c0_68, %c0_69] : memref<16x32xbf16, #tpu.memory_space<vmem>>, vector<16x32xbf16>
      %202 = arith.truncf %200 : vector<32x256xf32> to vector<32x256xbf16>
      %cst_70 = arith.constant dense<0.000000e+00> : vector<16x256xf32>
      %203 = tpu.matmul %201, %202, %cst_70 {dimension_numbers = #tpu.dot_dimension_numbers<[1], [0], [0], [1], [0, 0, 1, 1], [], []>} : vector<16x32xbf16>, vector<32x256xbf16>, vector<16x256xf32> -> vector<16x256xf32>
      %c0_71 = arith.constant 0 : index
      %c0_72 = arith.constant 0 : index
      %c0_73 = arith.constant 0 : index
      %204 = vector.load %arg15[%c0_71, %c0_72, %c0_73] : memref<1x16x256xf32, #tpu.memory_space<vmem>>, vector<1x16x256xf32>
      %205 = vector.shape_cast %204 : vector<1x16x256xf32> to vector<16x256xf32>
      %206 = vector.shape_cast %203 : vector<16x256xf32> to vector<1x16x256xf32>
      tpu.vector_store %arg15[%c0_71, %c0_72, %c0_73], %206 {strides = array<i32>} : memref<1x16x256xf32, #tpu.memory_space<vmem>>, vector<1x16x256xf32>,
    } else {
    }
    return
  }
  func.func @transform_0(%arg0: i32, %arg1: i32) -> (i32, i32, i32) {
    %c0_i32 = arith.constant 0 : i32
    %c0_i32_0 = arith.constant 0 : i32
    %c0_i32_1 = arith.constant 0 : i32
    return %arg0, %c0_i32, %c0_i32_0 : i32, i32, i32
  }
  func.func @transform_1(%arg0: i32, %arg1: i32) -> (i32, i32, i32) {
    %c0_i32 = arith.constant 0 : i32
    %c0_i32_0 = arith.constant 0 : i32
    %c0_i32_1 = arith.constant 0 : i32
    return %arg0, %c0_i32, %c0_i32_0 : i32, i32, i32
  }
  func.func @transform_2(%arg0: i32, %arg1: i32) -> (i32, i32) {
    %c0_i32 = arith.constant 0 : i32
    %c0_i32_0 = arith.constant 0 : i32
    %c0_i32_1 = arith.constant 0 : i32
    return %c0_i32, %c0_i32_0 : i32, i32
  }
  func.func @transform_3(%arg0: i32, %arg1: i32) -> (i32, i32) {
    %c0_i32 = arith.constant 0 : i32
    %c0_i32_0 = arith.constant 0 : i32
    %c0_i32_1 = arith.constant 0 : i32
    return %c0_i32, %c0_i32_0 : i32, i32
  }
  func.func @transform_4(%arg0: i32, %arg1: i32) -> (i32, i32) {
    %c0_i32 = arith.constant 0 : i32
    %c0_i32_0 = arith.constant 0 : i32
    %c0_i32_1 = arith.constant 0 : i32
    return %c0_i32, %c0_i32_0 : i32, i32
  }
  func.func @transform_5(%arg0: i32, %arg1: i32) -> (i32, i32) {
    %c0_i32 = arith.constant 0 : i32
    %c0_i32_0 = arith.constant 0 : i32
    %c0_i32_1 = arith.constant 0 : i32
    return %c0_i32, %c0_i32_0 : i32, i32
  }
  func.func @transform_6(%arg0: i32, %arg1: i32) -> (i32, i32) {
    %c0_i32 = arith.constant 0 : i32
    %c0_i32_0 = arith.constant 0 : i32
    %c0_i32_1 = arith.constant 0 : i32
    return %c0_i32, %c0_i32_0 : i32, i32
  }
  func.func @transform_7(%arg0: i32, %arg1: i32) -> (i32, i32) {
    %c0_i32 = arith.constant 0 : i32
    %c0_i32_0 = arith.constant 0 : i32
    %c0_i32_1 = arith.constant 0 : i32
    return %c0_i32, %c0_i32_0 : i32, i32
  }
  func.func @transform_8(%arg0: i32, %arg1: i32) -> (i32, i32) {
    %c0_i32 = arith.constant 0 : i32
    %c0_i32_0 = arith.constant 0 : i32
    %c0_i32_1 = arith.constant 0 : i32
    return %c0_i32, %c0_i32_0 : i32, i32
  }
  func.func @transform_9(%arg0: i32, %arg1: i32) -> (i32, i32, i32) {
    %c0_i32 = arith.constant 0 : i32
    %c0_i32_0 = arith.constant 0 : i32
    %c0_i32_1 = arith.constant 0 : i32
    return %arg1, %c0_i32, %c0_i32_0 : i32, i32, i32
  }
  func.func @transform_10(%arg0: i32, %arg1: i32) -> (i32, i32, i32) {
    %c0_i32 = arith.constant 0 : i32
    %c0_i32_0 = arith.constant 0 : i32
    %c0_i32_1 = arith.constant 0 : i32
    return %arg1, %c0_i32, %c0_i32_0 : i32, i32, i32
  }
  func.func @transform_11(%arg0: i32, %arg1: i32) -> (i32, i32, i32) {
    %c0_i32 = arith.constant 0 : i32
    %c0_i32_0 = arith.constant 0 : i32
    %c0_i32_1 = arith.constant 0 : i32
    return %arg1, %c0_i32, %c0_i32_0 : i32, i32, i32
  }
  func.func @transform_12(%arg0: i32, %arg1: i32) -> (i32, i32, i32) {
    %c0_i32 = arith.constant 0 : i32
    %c0_i32_0 = arith.constant 0 : i32
    %c0_i32_1 = arith.constant 0 : i32
    return %arg1, %c0_i32, %c0_i32_0 : i32, i32, i32
  }
  func.func @transform_13(%arg0: i32, %arg1: i32) -> (i32, i32, i32) {
    %c0_i32 = arith.constant 0 : i32
    %c0_i32_0 = arith.constant 0 : i32
    %c0_i32_1 = arith.constant 0 : i32
    return %arg0, %c0_i32, %c0_i32_0 : i32, i32, i32
  }
}

</mosaic_0001>

<bundles_post_ra>
// kernel: mul.24
= control target key start
LH: loop header
LB: loop body
LE: loop exit
PB: predicated region body
PF: predicated region fallthrough
CT: control target
= control target key end

     0   :  { %s219_s0 = inlined_call_operand.vmem [shape: f32[4], index: 0, kind: input, shape index: {}]   ;;  %s220_s1 = inlined_call_operand.vmem [shape: f32[4,64,1], index: 1, kind: output, shape index: {}]  }
   0x1   :  { %v13_v0 = vld [vmem:[%s219_s0] ss:$0 sm:$0xff] }
   0x2   :  { %14 = vbcast.lane.b32.xlu1 %v13_v0, 2  ;;  %5 = vbcast.lane.b32.xlu0 %v13_v0, 0 }
   0x6   :  { %19 = vbcast.lane.b32.xlu1 %v13_v0, 3  ;;  %9 = vbcast.lane.b32.xlu0 %v13_v0, 1 }
  0x74   :  { %v15_v1 = vpop.permute.xlu1 %14  ;;  %v6_v2 = vpop.permute.xlu0 %5 }
  0x75   :  { %80 = vst [vmem:[%s220_s1 + $0x80] sm:$0xff] %v15_v1  ;;  %84 = vst [vmem:[%s220_s1 + $0x88] sm:$0xff] %v15_v1 }
  0x76   :  { %88 = vst [vmem:[%s220_s1 + $0x90] sm:$0xff] %v15_v1  ;;  %92 = vst [vmem:[%s220_s1 + $0x98] sm:$0xff] %v15_v1 }
  0x77   :  { %96 = vst [vmem:[%s220_s1 + $0xa0] sm:$0xff] %v15_v1  ;;  %100 = vst [vmem:[%s220_s1 + $0xa8] sm:$0xff] %v15_v1 }
  0x78   :  { %104 = vst [vmem:[%s220_s1 + $0xb0] sm:$0xff] %v15_v1  ;;  %108 = vst [vmem:[%s220_s1 + $0xb8] sm:$0xff] %v15_v1  ;;  %v20_v3 = vpop.permute.xlu1 %19  ;;  %v10_v4 = vpop.permute.xlu0 %9 }
  0x79   :  { %7 = vst [vmem:[%s220_s1] sm:$0xff] %v6_v2  ;;  %82 = vst [vmem:[%s220_s1 + $0x8] sm:$0xff] %v6_v2 }
  0x7a   :  { %86 = vst [vmem:[%s220_s1 + $0x10] sm:$0xff] %v6_v2  ;;  %90 = vst [vmem:[%s220_s1 + $0x18] sm:$0xff] %v6_v2 }
  0x7b   :  { %94 = vst [vmem:[%s220_s1 + $0x20] sm:$0xff] %v6_v2  ;;  %98 = vst [vmem:[%s220_s1 + $0x28] sm:$0xff] %v6_v2 }
  0x7c   :  { %102 = vst [vmem:[%s220_s1 + $0x30] sm:$0xff] %v6_v2  ;;  %106 = vst [vmem:[%s220_s1 + $0x38] sm:$0xff] %v6_v2 }
  0x7d   :  { %81 = vst [vmem:[%s220_s1 + $0xc0] sm:$0xff] %v20_v3  ;;  %85 = vst [vmem:[%s220_s1 + $0xc8] sm:$0xff] %v20_v3 }
  0x7e   :  { %89 = vst [vmem:[%s220_s1 + $0xd0] sm:$0xff] %v20_v3  ;;  %93 = vst [vmem:[%s220_s1 + $0xd8] sm:$0xff] %v20_v3 }
  0x7f   :  { %97 = vst [vmem:[%s220_s1 + $0xe0] sm:$0xff] %v20_v3  ;;  %101 = vst [vmem:[%s220_s1 + $0xe8] sm:$0xff] %v20_v3 }
  0x80   :  { %105 = vst [vmem:[%s220_s1 + $0xf0] sm:$0xff] %v20_v3  ;;  %109 = vst [vmem:[%s220_s1 + $0xf8] sm:$0xff] %v20_v3 }
  0x81   :  { %79 = vst [vmem:[%s220_s1 + $0x40] sm:$0xff] %v10_v4  ;;  %83 = vst [vmem:[%s220_s1 + $0x48] sm:$0xff] %v10_v4 }
  0x82   :  { %87 = vst [vmem:[%s220_s1 + $0x50] sm:$0xff] %v10_v4  ;;  %91 = vst [vmem:[%s220_s1 + $0x58] sm:$0xff] %v10_v4 }
  0x83   :  { %95 = vst [vmem:[%s220_s1 + $0x60] sm:$0xff] %v10_v4  ;;  %99 = vst [vmem:[%s220_s1 + $0x68] sm:$0xff] %v10_v4 }
  0x84   :  { %103 = vst [vmem:[%s220_s1 + $0x70] sm:$0xff] %v10_v4  ;;  %107 = vst [vmem:[%s220_s1 + $0x78] sm:$0xff] %v10_v4 }

// kernel: _lambda_.2
= control target key start
LH: loop header
LB: loop body
LE: loop exit
PB: predicated region body
PF: predicated region fallthrough
CT: control target
= control target key end

     0   :  { %10 = vsyncpa [#allocation3], 0  ;;  %s891_s0 = inlined_call_operand.vmem [shape: bf16[2,16,256], index: 0, kind: input, shape index: {}]   ;;  %s892_s1 = inlined_call_operand.vmem [shape: bf16[32,16], index: 1, kind: input, shape index: {}]   ;;  %s893_s2 = inlined_call_operand.vmem [shape: f32[32,1], index: 2, kind: input, shape index: {}]   ;;  %s894_s3 = inlined_call_operand.vmem [shape: bf16[32,32], index: 3, kind: input, shape index: {}]   ;;  %s895_s4 = inlined_call_operand.vmem [shape: f32[32,1], index: 4, kind: input, shape index: {}]   ;;  %s896_s5 = inlined_call_operand.hbm [shape: f32[2,32,1], index: 5, kind: output, shape index: {}]  }
   0x1   :  { %12 = vsyncpa [#allocation3 + $0x1], 0  ;;  %s742_s18 = smov 0   ;;  %s744_s19 = smov 0  }
   0x2   :  { %s746_s20 = smov 0   ;;  %s748_s21 = smov 0  }
   0x3 LB: > { %s763_s22 = sadd.s32 4294967295, %s705_s21   ;;  %s566_s23 = sadd.s32 4294967294, %s705_s21   ;;  %s705_s21 = sphi %s748_s21, %s902_s21   ;;  %s701_s20 = sphi %s746_s20, %s901_s20   ;;  %s697_s19 = sphi %s744_s19, %s900_s19   ;;  %s693_s18 = sphi %s742_s18, %s899_s18  }
   0x4   : > { %s767_s24 = sadd.s32 1, %s705_s21   ;;  %s135_s25 = sadd.s32 1, %s701_s20 }
   0x5   : > { %s132_s26 = ssub.s32 %s705_s21, %s767_s24  ;;  %p145_p0 = scmp.ne.s32.totalorder %s701_s20, %s697_s19 }
   0x6   : > { %p133_p1 = scmp.eq.s32.totalorder %s132_s26, 0  ;;  %p146_p2 = scmp.eq.s32.totalorder %s763_s22, 1 }
   0x7   : > { %p151_p3 = scmp.ne.s32.totalorder %s697_s19, %s693_s18  ;;  %p152_p4 = scmp.eq.s32.totalorder %s566_s23, 1 }
   0x8   : > { %s778_s27 = scalar_select %p133_p1, %s701_s20, %s135_s25  }
   0x9   : > { %p780_p5 = por %p146_p2, %p145_p0  ;;  %p784_p6 = por %p152_p4, %p151_p3 }
   0xa   : > { %p569_p7 = scmp.ge.s32.totalorder %s705_s21, 1  ;;  %p190_p8 = scmp.lt.s32.totalorder %s705_s21, 3 }
   0xc   : > { %p191_p9 = pnand %p569_p7, %p190_p8 }
   0xd   : > { %p218_p10 = scmp.lt.s32.totalorder (!%p191_p9), %s763_s22, 1  ;;  %v707_v0 = vmov (!%p191_p9), 0   ;;  %v239_v1 = vld [vmem:[%s893_s2] sm:$0xff] (!%p191_p9)  ;;  %v241_v2 = vld [vmem:[%s893_s2 + $0x10] sm:$0xff] (!%p191_p9)  ;;  %v240_v3 = vld [vmem:[%s893_s2 + $0x8] sm:$0xff] (!%p191_p9)  ;;  %vm283_vm0 = vcmask (!%p191_p9), 130048   ;;  %v224_v47 = vlaneseq (!%p191_p9) }
   0xe   : > { %194 = sbr.rel (%p191_p9) target bundleno = 655 (0x28f), region = 40  ;;  %322 = vmatprep.mubr.bf16.mxu0 (!%p191_p9), %v707_v0  ;;  %634 = vset.pattern.permute.xlu0 (!%p191_p9), %v707_v0  ;;  %v242_v4 = vld [vmem:[%s893_s2 + $0x18] sm:$0xff] (!%p191_p9)  ;;  %v639_v7 = vld [vmem:[%s892_s1] sm:$0xff] (!%p191_p9)   ;;  %v360_v9 = vld [vmem:[%s895_s4 + $0x8] sm:$0xff] (!%p191_p9)  ;;  %vm393_vm1 = vcmask (!%p191_p9), 261120   ;;  %v708_v54 = vmov (!%p191_p9), 0.0  }
   0xf   : > { %635 = vset.pattern.permute.xlu1 (!%p191_p9), %v707_v0  ;;  %432 = vmatprep.mubr.bf16.mxu1 (!%p191_p9), %v707_v0  ;;  %v359_v8 = vld [vmem:[%s895_s4] sm:$0xff] (!%p191_p9)  ;;  %v361_v10 = vld [vmem:[%s895_s4 + $0x10] sm:$0xff] (!%p191_p9)  ;;  %v362_v11 = vld [vmem:[%s895_s4 + $0x18] sm:$0xff] (!%p191_p9)  ;;  %v225_v48 = vand.u32 (!%p191_p9), 127, %v224_v47  ;;  %s215_s23 = sand.u32 (!%p191_p9), 1, %s697_s19   ;;  %vm485_vm3 = vcmask (!%p191_p9), 7168  }
  0x10   : > { %245 = vperm.xlu0 (!%p191_p9), %634, %v239_v1   ;;  %255 = vperm.xlu1 (!%p191_p9), %635, %v241_v2   ;;  %v640_v12 = vld [vmem:[%s892_s1 + $0x8] sm:$0xff] (!%p191_p9)   ;;  %v641_v45 = vld [vmem:[%s894_s3] sm:$0xff] (!%p191_p9)   ;;  %s570_s25 = sshll.u32 (!%p191_p9), %s215_s23, 5  ;;  %s590_s6 = sshll.u32 (!%p191_p9), %s763_s22, 9 }
  0x11   : > { %v642_v46 = vld [vmem:[%s894_s3 + $0x8] sm:$0xff] (!%p191_p9)   ;;  %vm227_vm2 = vcmp.lt.s32.totalorder (!%p191_p9), %v225_v48, 17  ;;  %s217_s26 = scalar_lea.vmem (!%p191_p9), [#allocation2], %s570_s25  ;;  %s847_s9 = scalar_lea.hbm (!%p191_p9), %s896_s5, %s590_s6 }
  0x12   : > { %v573_v55 = vsel (!%p191_p9), %vm227_vm2, 1.0, %v708_v54 }
  0x14   : > { %250 = vperm.xlu0 (!%p191_p9), %634, %v240_v3   ;;  %260 = vperm.xlu1 (!%p191_p9), %635, %v242_v4  }
  0x15   : > { %s219_s30 = scalar_select %p218_p10, %s763_s22, 1 }
  0x16   : > { %s709_s22 = smov [#allocation2]  }
  0x17   : > { %s589_s10 = sshll.u32 %s219_s30, 4  ;;  %s504_s30 = sshll.u32 %s217_s26, 4  ;;  %s842_s30 = int_to_ptr.vmem [resolvable:$true] %s504_s30 }
  0x18   : > { %s222_s17 = scalar_lea.vmem %s891_s0, %s589_s10  ;;  %365 = vperm.xlu0 %634, %v359_v8   ;;  %370 = vperm.xlu1 %635, %v360_v9   ;;  %s850_s10 = scalar_lea.sflag [#allocation3], %s215_s23 }
  0x19   : > { %v636_v5 = vld [vmem:[%s222_s17 + $0x4] ss:$8 sps:$4 sm:$0xff]   ;;  %v638_v6 = vld [vmem:[%s222_s17] ss:$8 sps:$4 sm:$0xff]   ;;  %s643_s11 = scalar_lea.vmem %s842_s30, 512  ;;  %s647_s12 = sshll.u32 %s709_s22, 4  ;;  %s648_s12 = int_to_ptr.vmem [resolvable:$false] %s647_s12 }
  0x1a   : > { %290 = vmatprep.subr.bf16.mxu0 %v636_v5  ;;  %p644_p11 = scmp.ne.s32.totalorder %s842_s30, %s643_s11  ;;  %s649_s13 = scalar_lea.vmem %s648_s12, 1024 }
  0x1b   : > { %291 = vmatpush1.bf16.msra.mxu0 %v638_v6  ;;  %p650_p0 = scmp.lt.s32.totalorder %s842_s30, %s648_s12  ;;  %p651_p1 = scmp.lt.s32.totalorder %s649_s13, %s643_s11 }
  0x1c   : > { %375 = vperm.xlu0 %634, %v361_v10   ;;  %380 = vperm.xlu1 %635, %v362_v11   ;;  %p645_p12 = pnand %p644_p11, %p780_p5 }
  0x1d   : > { %p652_p2 = por %p651_p1, %p650_p0 }
  0x1e   : > { %578 = vmatmul.mubr.msk.bf16.vlgmr.msra.gmra.mrb[0].mxu0 %vm283_vm0, %v639_v7  ;;  %p646_p13 = pneg %p645_p12 }
  0x1f   : > { %332 = vmatprep.mubr.bf16.mxu0 %v707_v0 }
  0x20   : > { %p653_p3 = pnand %p652_p2, %p646_p13 }
  0x26   : > { %579 = vmatmul.mubr.msk.bf16.gmra.mrb[4].mxu0 %vm283_vm0, %v640_v12 }
  0x8f   : > { %v246_v13 = vpop.permute.xlu0 %245  ;;  %v256_v22 = vpop.permute.xlu1 %255 }
  0x93   : > { %v251_v17 = vpop.permute.xlu0 %250  ;;  %v261_v33 = vpop.permute.xlu1 %260 }
  0x97   : > { %v366_v49 = vpop.permute.xlu0 %365  ;;  %v371_v53 = vpop.permute.xlu1 %370 }
  0x9b   : > { %v376_v4 = vpop.permute.xlu0 %375  ;;  %v381_v10 = vpop.permute.xlu1 %380 }
  0xf1   : > { %v324_v14 = vpop.f32.mrb[0].mxu0 }
  0xf2   : > { %v325_v15 = vadd.f32 %v324_v14, %v246_v13  ;;  %v326_v16 = vpop.f32.mrb[1].mxu0 }
  0xf3   : > { %v327_v18 = vadd.f32 %v326_v16, %v246_v13  ;;  %v328_v19 = vpop.f32.mrb[2].mxu0 }
  0xf4   : > { %v329_v20 = vadd.f32 %v328_v19, %v251_v17  ;;  %v330_v21 = vpop.f32.mrb[3].mxu0  ;;  %v343_v24 = vmax.f32 %v325_v15, 0.0 }
  0xf5   : > { %v331_v23 = vadd.f32 %v330_v21, %v251_v17  ;;  %v344_v26 = vmax.f32 %v327_v18, 0.0 }
  0xf6   : > { %v345_v25 = vmax.f32 %v329_v20, 0.0 }
  0xf7   : > { %v346_v27 = vmax.f32 %v331_v23, 0.0 }
  0xf8   : > { %v355_v28 = vpack.c.bf16 %v345_v25, %v343_v24 }
  0xf9   : > { %v334_v29 = vpop.f32.mrb[4].mxu0  ;;  %v356_v30 = vpack.c.bf16 %v346_v27, %v344_v26 }
  0xfa   : > { %v335_v31 = vadd.f32 %v334_v29, %v256_v22  ;;  %v336_v32 = vpop.f32.mrb[5].mxu0 }
  0xfb   : > { %v337_v34 = vadd.f32 %v336_v32, %v256_v22  ;;  %v338_v35 = vpop.f32.mrb[6].mxu0  ;;  %400 = vmatprep.subr.bf16.mxu1 %v356_v30 }
  0xfc   : > { %v339_v36 = vadd.f32 %v338_v35, %v261_v33  ;;  %v340_v37 = vpop.f32.mrb[7].mxu0  ;;  %401 = vmatpush1.bf16.msra.mxu1 %v355_v28  ;;  %v347_v39 = vmax.f32 %v335_v31, 0.0 }
  0xfd   : > { %v341_v38 = vadd.f32 %v340_v37, %v261_v33  ;;  %v348_v41 = vmax.f32 %v337_v34, 0.0 }
  0xfe   : > { %v349_v40 = vmax.f32 %v339_v36, 0.0 }
  0xff   : > { %v350_v42 = vmax.f32 %v341_v38, 0.0 }
 0x100   : > { %v357_v43 = vpack.c.bf16 %v349_v40, %v347_v39 }
 0x101   : > { %v358_v44 = vpack.c.bf16 %v350_v42, %v348_v41 }
 0x103   : > { %402 = vmatprep.subr.bf16.mxu1 %v358_v44 }
 0x104   : > { %403 = vmatpush1.bf16.msra.mxu1 %v357_v43 }
 0x107   : > { %582 = vmatmul.mubr.msk.bf16.vlgmr.msra.gmra.mrb[0].mxu1 %vm393_vm1, %v641_v45 }
 0x108   : > { %442 = vmatprep.mubr.bf16.mxu1 %v707_v0 }
 0x10f   : > { %583 = vmatmul.mubr.msk.bf16.gmra.mrb[4].mxu1 %vm393_vm1, %v642_v46 }
 0x1da   : > { %v434_v50 = vpop.f32.mrb[0].mxu1 }
 0x1db   : > { %v435_v51 = vadd.f32 %v434_v50, %v366_v49  ;;  %v436_v52 = vpop.f32.mrb[1].mxu1 }
 0x1dc   : > { %v437_v56 = vadd.f32 %v436_v52, %v366_v49  ;;  %v438_v57 = vpop.f32.mrb[2].mxu1 }
 0x1dd   : > { %v453_v58 = vmax.f32 %v435_v51, 0.0  ;;  %v439_v59 = vadd.f32 %v438_v57, %v371_v53  ;;  %v440_v60 = vpop.f32.mrb[3].mxu1 }
 0x1de   : > { %v454_v61 = vmax.f32 %v437_v56, 0.0  ;;  %v441_v62 = vadd.f32 %v440_v60, %v371_v53 }
 0x1df   : > { %v461_v63 = vmul.f32 %v573_v55, %v453_v58  ;;  %v455_v0 = vmax.f32 %v439_v59, 0.0 }
 0x1e0   : > { %v462_v1 = vmul.f32 0.0, %v454_v61  ;;  %v456_v2 = vmax.f32 %v441_v62, 0.0 }
 0x1e1   : > { %v463_v3 = vmul.f32 %v573_v55, %v455_v0 }
 0x1e2   : > { %v464_v5 = vmul.f32 0.0, %v456_v2  ;;  %v444_v6 = vpop.f32.mrb[4].mxu1  ;;  %v469_v7 = vadd.f32 %v462_v1, %v461_v63 }
 0x1e3   : > { %v445_v8 = vadd.f32 %v444_v6, %v376_v4  ;;  %v446_v9 = vpop.f32.mrb[5].mxu1 }
 0x1e4   : > { %v447_v11 = vadd.f32 %v446_v9, %v376_v4  ;;  %v448_v12 = vpop.f32.mrb[6].mxu1  ;;  %470 = vadd.xlane.f32.xlu0 %v469_v7  ;;  %v472_v13 = vadd.f32 %v464_v5, %v463_v3 }
 0x1e5   : > { %v457_v14 = vmax.f32 %v445_v8, 0.0  ;;  %v449_v15 = vadd.f32 %v448_v12, %v381_v10  ;;  %v450_v16 = vpop.f32.mrb[7].mxu1 }
 0x1e6   : > { %v458_v17 = vmax.f32 %v447_v11, 0.0  ;;  %v451_v18 = vadd.f32 %v450_v16, %v381_v10  ;;  %473 = vadd.xlane.f32.xlu1 %v472_v13 }
 0x1e7   : > { %v465_v19 = vmul.f32 %v573_v55, %v457_v14  ;;  %v459_v20 = vmax.f32 %v449_v15, 0.0 }
 0x1e8   : > { %v466_v21 = vmul.f32 0.0, %v458_v17  ;;  %v460_v22 = vmax.f32 %v451_v18, 0.0 }
 0x1e9   : > { %v467_v23 = vmul.f32 %v573_v55, %v459_v20 }
 0x1ea   : > { %v468_v24 = vmul.f32 0.0, %v460_v22  ;;  %v475_v25 = vadd.f32 %v466_v21, %v465_v19 }
 0x1ec   : > { %476 = vadd.xlane.f32.xlu0 %v475_v25  ;;  %v478_v26 = vadd.f32 %v468_v24, %v467_v23 }
 0x1f0   : > { %479 = vadd.xlane.f32.xlu0 %v478_v26 }
 0x271   : > { %v471_v27 = vpop.xlane.xlu0 %470 }
 0x272   : > { %v481_v28 = vmul.f32 0.05882353, %v471_v27 }
 0x273   : > { %v474_v29 = vpop.xlane.xlu1 %473 }
 0x274   : > { %486 = vst.msk [vmem:[%s217_s26] sm:$0xff] %vm485_vm3, %v481_v28  ;;  %v482_v30 = vmul.f32 0.05882353, %v474_v29 }
 0x276   : > { %487 = vst.msk [vmem:[%s217_s26 + $0x8] sm:$0xff] %vm485_vm3, %v482_v30 }
 0x279   : > { %v477_v31 = vpop.xlane.xlu0 %476 }
 0x27a   : > { %v483_v32 = vmul.f32 0.05882353, %v477_v31 }
 0x27c   : > { %488 = vst.msk [vmem:[%s217_s26 + $0x10] sm:$0xff] %vm485_vm3, %v483_v32 }
 0x27d   : > { %v480_v33 = vpop.xlane.xlu0 %479 }
 0x27e   : > { %v484_v34 = vmul.f32 0.05882353, %v480_v33 }
 0x280   : > { %489 = vst.msk [vmem:[%s217_s26 + $0x18] sm:$0xff] %vm485_vm3, %v484_v34 }
 0x281   : > { %656 = shalt.err (!%p653_p3)
}
 0x282   : > { %s657_s14 = scalar_lea.hbm %s847_s9, 512  ;;  %s661_s17 = scalar_lea.hbm %s896_s5, 1024 }
 0x283   : > { %p658_p4 = scmp.ne.s32.totalorder %s847_s9, %s657_s14  ;;  %p662_p9 = scmp.lt.u32.totalorder %s847_s9, %s896_s5 }
 0x284   : > { %p663_p10 = scmp.lt.u32.totalorder %s661_s17, %s657_s14  ;;  %p665_p12 = scmp.lt.u32.totalorder %s657_s14, %s847_s9 }
 0x285   : > { %p659_p7 = pnand %p658_p4, %p780_p5 }
 0x286   : > { %p664_p11 = por %p663_p10, %p662_p9 }
 0x287   : > { %p660_p8 = pneg %p659_p7 }
 0x288   : > { %p666_p13 = por %p665_p12, %p664_p11 }
 0x28a   : > { %p667_p0 = pnand %p666_p13, %p660_p8 }
 0x28c   : > { %670 = shalt.err (!%p667_p0)
}
 0x28d   : > { %s710_s26 = smov 128   ;;  %s711_s6 = smov 8  }
 0x28e   : > { %591 = dma.vmem_to_hbm [thread:$0]  (%p780_p5), %s842_s30, 512, %s847_s9, %s850_s10, %s710_s26, %s710_s26, %s711_s6  }
 0x28f PF: > { %p597_p1 = scmp.ge.s32.totalorder %s705_s21, 2  ;;  %s519_s7 = sand.u32 1, %s693_s18  }
 0x290   : > { %s520_s8 = scalar_lea.sflag [#allocation3], %s519_s7 }
 0x291   : > { %p594_p2 = pnand %p597_p1, %p784_p6 }
 0x293   : > { %688 = dma.done.wait (!%p594_p2), %s520_s8, 512  }
 0x294   : > { %690 = vsyncadd (!%p594_p2), %s520_s8, 4294966784  ;;  %p15_p3 = scmp.ge.s32.totalorder %s767_s24, 4   ;;  %s899_s18 = smov %s697_s19 }
 0x295   : > { %s900_s19 = smov %s701_s20  ;;  %s901_s20 = smov %s778_s27 }
 0x296   : > { %s902_s21 = smov %s767_s24  ;;  %17 = sbr.rel (!%p15_p3) target bundleno = 3 (0x3), region = 75 }
 0x29d   :  { %525 = vsyncpa [#allocation3], 1 }
 0x29e   :  { %527 = vsyncpa [#allocation3 + $0x1], 1 }

// kernel: _lambda_.3
= control target key start
LH: loop header
LB: loop body
LE: loop exit
PB: predicated region body
PF: predicated region fallthrough
CT: control target
= control target key end

     0   :  { %s7456_s0 = inlined_call_operand.hbm [shape: bf16[2,16,256], index: 0, kind: input, shape index: {}]   ;;  %s7457_s1 = inlined_call_operand.hbm [shape: f32[2,32,1], index: 1, kind: input, shape index: {}]   ;;  %s7458_s2 = inlined_call_operand.hbm [shape: bf16[32,16], index: 2, kind: input, shape index: {}]   ;;  %s7459_s3 = inlined_call_operand.hbm [shape: f32[32,1], index: 3, kind: input, shape index: {}]   ;;  %s7460_s4 = inlined_call_operand.hbm [shape: bf16[32,32], index: 4, kind: input, shape index: {}]   ;;  %s7461_s5 = inlined_call_operand.hbm [shape: f32[32,1], index: 5, kind: input, shape index: {}]   ;;  %s7462_s6 = inlined_call_operand.hbm [shape: bf16[32,32], index: 6, kind: input, shape index: {}]   ;;  %s7463_s7 = inlined_call_operand.hbm [shape: f32[32,1], index: 7, kind: input, shape index: {}]   ;;  %s7464_s8 = inlined_call_operand.hbm [shape: bf16[16,32], index: 8, kind: input, shape index: {}]   ;;  %s7465_s9 = inlined_call_operand.hbm [shape: bf16[4,64,32], index: 9, kind: input, shape index: {}]   ;;  %s7466_s10 = inlined_call_operand.hbm [shape: f32[4,64,9], index: 10, kind: input, shape index: {}]   ;;  %s7467_s11 = inlined_call_operand.hbm [shape: bf16[4,32,64], index: 11, kind: input, shape index: {}]   ;;  %s7468_s12 = inlined_call_operand.hbm [shape: f32[4,32,1], index: 12, kind: input, shape index: {}]   ;;  %s7469_s13 = inlined_call_operand.hbm [shape: f32[2,16,256], index: 13, kind: output, shape index: {}]  }
   0x1   :  { %7575 = sst [smem:[#allocation71_spill]] %s7456_s0 }
   0x2   :  { %7576 = sst [smem:[#allocation72_spill]] %s7457_s1 }
   0x3   :  { %7577 = sst [smem:[#allocation73_spill]] %s7458_s2 }
   0x4   :  { %7578 = sst [smem:[#allocation74_spill]] %s7459_s3 }
   0x5   :  { %7579 = sst [smem:[#allocation75_spill]] %s7460_s4 }
   0x6   :  { %7580 = sst [smem:[#allocation76_spill]] %s7461_s5 }
   0x7   :  { %7581 = sst [smem:[#allocation77_spill]] %s7462_s6 }
   0x8   :  { %7582 = sst [smem:[#allocation78_spill]] %s7463_s7 }
   0x9   :  { %7583 = sst [smem:[#allocation79_spill]] %s7464_s8 }
   0xa   :  { %7584 = sst [smem:[#allocation80_spill]] %s7465_s9 }
   0xb   :  { %7585 = sst [smem:[#allocation81_spill]] %s7466_s10 }
   0xc   :  { %7586 = sst [smem:[#allocation82_spill]] %s7467_s11 }
   0xd   :  { %7587 = sst [smem:[#allocation83_spill]] %s7469_s13 }
   0xe   :  { %18 = vsyncpa [#allocation5], 0 }
   0xf   :  { %20 = vsyncpa [#allocation5 + $0x1], 0 }
  0x10   :  { %21 = vsyncpa [#allocation8], 0 }
  0x11   :  { %23 = vsyncpa [#allocation8 + $0x1], 0 }
  0x12   :  { %24 = vsyncpa [#allocation11], 0 }
  0x13   :  { %25 = vsyncpa [#allocation14], 0 }
  0x14   :  { %26 = vsyncpa [#allocation17], 0 }
  0x15   :  { %27 = vsyncpa [#allocation20], 0 }
  0x16   :  { %29 = vsyncpa [#allocation20 + $0x1], 0 }
  0x17   :  { %30 = vsyncpa [#allocation23], 0 }
  0x18   :  { %32 = vsyncpa [#allocation23 + $0x1], 0 }
  0x19   :  { %33 = vsyncpa [#allocation6], 0 }
  0x1a   :  { %35 = vsyncpa [#allocation6 + $0x1], 0  ;;  %s4956_s25 = smov 0   ;;  %s4958_s26 = smov 0  }
  0x1b   :  { %s4960_s27 = smov 0   ;;  %s4962_s28 = smov 0  }
  0x1c   :  { %s4964_s29 = smov 0   ;;  %s4966_s30 = smov 0  }
  0x1d   :  { %s4968_s14 = smov 0   ;;  %s4970_s15 = smov 0  }
  0x1e   :  { %s4972_s16 = smov 0   ;;  %s4974_s17 = smov 0  }
  0x1f   :  { %s4976_s18 = smov 0  }
  0x20 LB: > { %7588 = sst [smem:[#allocation35_spill]] %s4811_s26  ;;  %s5012_s19 = sadd.s32 4294967295, %s4847_s18   ;;  %s4847_s18 = sphi %s4976_s18, %s41_s18   ;;  %s4843_s17 = sphi %s4974_s17, %s7776_s17   ;;  %s4839_s16 = sphi %s4972_s16, %s7778_s16   ;;  %s4835_s15 = sphi %s4970_s15, %s7774_s15   ;;  %s4831_s14 = sphi %s4968_s14, %s7777_s14   ;;  %s4827_s30 = sphi %s4966_s30, %s7773_s30   ;;  %s4823_s29 = sphi %s4964_s29, %s7772_s29   ;;  %s4819_s28 = sphi %s4962_s28, %s7771_s28   ;;  %s4815_s27 = sphi %s4960_s27, %s7770_s27   ;;  %s4811_s26 = sphi %s4958_s26, %s7769_s26   ;;  %s4807_s25 = sphi %s4956_s25, %s7768_s25  }
  0x21   : > { %7589 = sst [smem:[#allocation36_spill]] %s4815_s27  ;;  %p3832_p0 = scmp.ge.s32.totalorder %s4847_s18, 1 }
  0x22   : > { %7590 = sst [smem:[#allocation37_spill]] %s4819_s28  ;;  %p7476_p1 = scmp.eq.s32.totalorder %s5012_s19, 0 }
  0x23   : > { %7591 = sst [smem:[#allocation38_spill]] %s4823_s29  ;;  %p387_p2 = scmp.lt.s32.totalorder %s4847_s18, 5 }
  0x24   : > { %7592 = sst [smem:[#allocation39_spill]] %s4827_s30  ;;  %s4849_s21 = smov [#allocation9]  }
  0x25   : > { %7593 = sst [smem:[#allocation40_spill]] %s4831_s14  ;;  %p5017_p3 = pnand %p3832_p0, %p387_p2 }
  0x26   : > { %7594 = sst [smem:[#allocation41_spill]] %s4835_s15  ;;  %s399_s22 = sshll.u32 %s4849_s21, 4  ;;  %s400_s22 = int_to_ptr.vmem [resolvable:$true] %s399_s22 }
  0x27   : > { %7595 = sst [smem:[#allocation42_spill]] %s4843_s17  ;;  %p4004_p4 = pneg %p5017_p3 }
  0x28   : > { %s7596_s20 = scalar_select %p5017_p3, 1, 0 }
  0x29   : > { %p5025_p5 = pnand %p4004_p4, %p7476_p1  ;;  %s4850_s24 = smov [#allocation10]  }
  0x2a   : > { %7597 = sst [smem:[#allocation43_spill]] %s7596_s20  ;;  %s412_s13 = sshll.u32 %s4850_s24, 4  ;;  %s5029_s13 = int_to_ptr.vmem [resolvable:$true] %s412_s13 }
  0x2b   : > { %s7598_s23 = scalar_select %p5025_p5, 1, 0 }
  0x2c   : > { %s7599_s2 = sld [smem:[#allocation73_spill]]  ;;  %p5039_p7 = pneg %p5025_p5 }
  0x2e   : > { %s7600_s21 = scalar_select %p5039_p7, 1, 0 }
  0x32   : > { %s4321_s10 = scalar_lea.hbm %s7599_s2, 256 }
  0x33   : > { %p4322_p6 = scmp.ne.s32.totalorder %s7599_s2, %s4321_s10  ;;  %p4328_p10 = scmp.lt.u32.totalorder %s4321_s10, %s7599_s2 }
  0x35   : > { %p4324_p8 = pnand %p5039_p7, %p4322_p6 }
  0x37   : > { %p4325_p9 = pneg %p4324_p8 }
  0x39   : > { %p4330_p11 = pnand %p4328_p10, %p4325_p9 }
  0x3b   : > { %4333 = shalt.err (!%p4330_p11)
}
  0x3c   : > { %s4334_s14 = scalar_lea.vmem %s400_s22, 256  ;;  %p4342_p2 = scmp.lt.s32.totalorder %s400_s22, %s400_s22 }
  0x3d   : > { %p4335_p12 = scmp.ne.s32.totalorder %s400_s22, %s4334_s14  ;;  %p4343_p4 = scmp.lt.s32.totalorder %s4334_s14, %s4334_s14 }
  0x3f   : > { %p4337_p13 = pnand %p4335_p12, %p5039_p7  ;;  %p4344_p1 = por %p4343_p4, %p4342_p2 }
  0x41   : > { %p4338_p0 = pneg %p4337_p13 }
  0x43   : > { %p4345_p3 = pnand %p4344_p1, %p4338_p0 }
  0x45   : > { %4348 = shalt.err (!%p4345_p3)
}
  0x46   : > { %s7481_s0 = smov 64   ;;  %s7483_s1 = smov 4  }
  0x47   : > { %4007 = dma.hbm_to_vmem [thread:$0]  (!%p5025_p5), %s7599_s2, 256, %s400_s22, [#allocation8], %s7481_s0, %s7481_s0, %s7483_s1  }
  0x48   : > { %s7601_s3 = sld [smem:[#allocation74_spill]] }
  0x4e   : > { %s4349_s28 = scalar_lea.hbm %s7601_s3, 512 }
  0x4f   : > { %p4350_p1 = scmp.ne.s32.totalorder %s7601_s3, %s4349_s28  ;;  %p4356_p8 = scmp.lt.u32.totalorder %s4349_s28, %s7601_s3 }
  0x51   : > { %p4352_p3 = pnand %p4350_p1, %p5039_p7 }
  0x53   : > { %p4353_p6 = pneg %p4352_p3 }
  0x55   : > { %p4358_p9 = pnand %p4356_p8, %p4353_p6 }
  0x57   : > { %4361 = shalt.err (!%p4358_p9)
}
  0x58   : > { %s4362_s22 = scalar_lea.vmem %s5029_s13, 512  ;;  %p4370_p13 = scmp.lt.s32.totalorder %s5029_s13, %s5029_s13 }
  0x59   : > { %p4363_p10 = scmp.ne.s32.totalorder %s5029_s13, %s4362_s22  ;;  %p4371_p0 = scmp.lt.s32.totalorder %s4362_s22, %s4362_s22 }
  0x5b   : > { %p4365_p11 = pnand %p4363_p10, %p5039_p7  ;;  %p4372_p2 = por %p4371_p0, %p4370_p13 }
  0x5d   : > { %p4366_p12 = pneg %p4365_p11 }
  0x5f   : > { %p4373_p4 = pnand %p4372_p2, %p4366_p12 }
  0x61   : > { %4376 = shalt.err (!%p4373_p4)
}
  0x62   : > { %s7485_s29 = smov 128   ;;  %s7487_s28 = smov 8  }
  0x63   : > { %4010 = dma.hbm_to_vmem [thread:$0]  (!%p5025_p5), %s7601_s3, 512, %s5029_s13, [#allocation11], %s7485_s29, %s7485_s29, %s7487_s28  }
  0x64   : > { %s4855_s10 = smov [#allocation13]   ;;  %s4856_s20 = smov [#allocation16]  }
  0x65   : > { %s438_s15 = sshll.u32 %s4855_s10, 4  ;;  %s464_s24 = sshll.u32 %s4856_s20, 4  ;;  %s439_s15 = int_to_ptr.vmem [resolvable:$true] %s438_s15  ;;  %s5084_s24 = int_to_ptr.vmem [resolvable:$true] %s464_s24 }
  0x66   : > { %s7602_s5 = sld [smem:[#allocation76_spill]] }
  0x6c   : > { %s4377_s0 = scalar_lea.hbm %s7602_s5, 512 }
  0x6d   : > { %p4378_p1 = scmp.ne.s32.totalorder %s7602_s5, %s4377_s0  ;;  %p4384_p8 = scmp.lt.u32.totalorder %s4377_s0, %s7602_s5 }
  0x6f   : > { %p4380_p3 = pnand %p4378_p1, %p5039_p7 }
  0x71   : > { %p4381_p6 = pneg %p4380_p3 }
  0x73   : > { %p4386_p9 = pnand %p4384_p8, %p4381_p6 }
  0x75   : > { %4389 = shalt.err (!%p4386_p9)
}
  0x76   : > { %s4390_s17 = scalar_lea.vmem %s439_s15, 512  ;;  %p4398_p13 = scmp.lt.s32.totalorder %s439_s15, %s439_s15 }
  0x77   : > { %p4391_p10 = scmp.ne.s32.totalorder %s439_s15, %s4390_s17  ;;  %p4399_p0 = scmp.lt.s32.totalorder %s4390_s17, %s4390_s17 }
  0x79   : > { %p4393_p11 = pnand %p4391_p10, %p5039_p7  ;;  %p4400_p2 = por %p4399_p0, %p4398_p13 }
  0x7b   : > { %p4394_p12 = pneg %p4393_p11 }
  0x7d   : > { %p4401_p4 = pnand %p4400_p2, %p4394_p12 }
  0x7f   : > { %4404 = shalt.err (!%p4401_p4)
}
  0x80   : > { %4016 = dma.hbm_to_vmem [thread:$0]  (!%p5025_p5), %s7602_s5, 512, %s439_s15, [#allocation14], %s7485_s29, %s7485_s29, %s7487_s28  }
  0x81   : > { %s7603_s7 = sld [smem:[#allocation78_spill]] }
  0x87   : > { %s4405_s20 = scalar_lea.hbm %s7603_s7, 512 }
  0x88   : > { %p4406_p1 = scmp.ne.s32.totalorder %s7603_s7, %s4405_s20  ;;  %p4412_p8 = scmp.lt.u32.totalorder %s4405_s20, %s7603_s7 }
  0x8a   : > { %p4408_p3 = pnand %p4406_p1, %p5039_p7 }
  0x8c   : > { %p4409_p6 = pneg %p4408_p3 }
  0x8e   : > { %p4414_p9 = pnand %p4412_p8, %p4409_p6 }
  0x90   : > { %4417 = shalt.err (!%p4414_p9)
}
  0x91   : > { %s4418_s15 = scalar_lea.vmem %s5084_s24, 512  ;;  %p4426_p13 = scmp.lt.s32.totalorder %s5084_s24, %s5084_s24 }
  0x92   : > { %p4419_p10 = scmp.ne.s32.totalorder %s5084_s24, %s4418_s15  ;;  %p4427_p0 = scmp.lt.s32.totalorder %s4418_s15, %s4418_s15 }
  0x94   : > { %p4421_p11 = pnand %p4419_p10, %p5039_p7  ;;  %p4428_p2 = por %p4427_p0, %p4426_p13 }
  0x96   : > { %p4422_p12 = pneg %p4421_p11 }
  0x98   : > { %p4429_p4 = pnand %p4428_p2, %p4422_p12 }
  0x9a   : > { %4432 = shalt.err (!%p4429_p4)
}
  0x9b   : > { %4022 = dma.hbm_to_vmem [thread:$0]  (!%p5025_p5), %s7603_s7, 512, %s5084_s24, [#allocation17], %s7485_s29, %s7485_s29, %s7487_s28  }
  0x9c   : > { %s50_s0 = sadd.s32 1, %s4839_s16  ;;  %p7492_p1 = scmp.eq.s32.totalorder %s4847_s18, 0 }
  0x9d   : > { %p5135_p3 = scmp.ge.s32.totalorder %s50_s0, 2  ;;  %s259_s10 = sadd.s32 1, %s4815_s27 }
  0x9e   : > { %p266_p6 = scmp.ne.s32.totalorder %s4815_s27, %s4811_s26  ;;  %p272_p8 = scmp.ne.s32.totalorder %s4811_s26, %s4807_s25 }
  0x9f   : > { %s7604_s1 = scalar_select %p5135_p3, 1, 0 }
  0xa0   : > { %s7780_s0 = smov (%p5135_p3, %s50_s0), 0  ;;  %p5150_p9 = por %p266_p6, %p7492_p1 }
  0xa1   : > { %7605 = sst [smem:[#allocation44_spill]] %s7780_s0  ;;  %p7607_p10 = scmp.eq.s32.totalorder %s5012_s19, 0 }
  0xa2   : > { %s256_s14 = ssub.s32 %s4839_s16, %s7780_s0  ;;  %p7491_p12 = scmp.lt.s32.totalorder %s4847_s18, 4 }
  0xa3   : > { %p5156_p11 = por %p272_p8, %p7607_p10  ;;  %p257_p13 = scmp.eq.s32.totalorder %s256_s14, 0 }
  0xa4   : > { %s5164_s22 = sand.u32 1, %s4847_s18   ;;  %s5167_s25 = sand.u32 1, %s4815_s27  }
  0xa5   : > { %s7608_s24 = scalar_select %p5156_p11, 1, 0 }
  0xa6   : > { %s5170_s30 = scalar_select %p257_p13, %s4815_s27, %s259_s10  }
  0xa7   : > { %7609 = sst [smem:[#allocation45_spill]] %s7608_s24  ;;  %s7489_s13 = sshll.u32 %s5167_s25, 6 }
  0xa8   : > { %7610 = sst [smem:[#allocation46_spill]] %s5170_s30  ;;  %s3954_s15 = sshll.u32 %s4839_s16, 10 }
  0xa9   : > { %s7611_s9 = sld [smem:[#allocation80_spill]]  ;;  %s537_s14 = scalar_lea.vmem [#allocation19], %s7489_s13 }
  0xaa   : > { %s545_s28 = sshll.u32 %s537_s14, 4  ;;  %p5185_p0 = pnand %p7491_p12, %p5150_p9  ;;  %s5189_s28 = int_to_ptr.vmem [resolvable:$true] %s545_s28 }
  0xab   : > { %s5194_s2 = scalar_lea.hbm %s7468_s12, %s3954_s15  ;;  %s7503_s5 = scalar_lea.sflag [#allocation20], %s5164_s22 }
  0xac   : > { %s7612_s3 = scalar_select %p5185_p0, 1, 0 }
  0xad   : > { %p5201_p4 = pneg %p5185_p0 }
  0xaf   : > { %s5177_s29 = scalar_lea.hbm %s7611_s9, %s3954_s15  ;;  %s4438_s0 = scalar_lea.hbm %s7611_s9, 2048 }
  0xb0   : > { %s4433_s7 = scalar_lea.hbm %s5177_s29, 1024  ;;  %p4439_p9 = scmp.lt.u32.totalorder %s5177_s29, %s7611_s9 }
  0xb1   : > { %p4434_p2 = scmp.ne.s32.totalorder %s5177_s29, %s4433_s7  ;;  %p4440_p10 = scmp.lt.u32.totalorder %s4438_s0, %s4433_s7 }
  0xb2   : > { %s7613_s14 = scalar_select %p5201_p4, 1, 0 }
  0xb3   : > { %p4436_p6 = pnand %p5201_p4, %p4434_p2  ;;  %p4441_p13 = por %p4440_p10, %p4439_p9 }
  0xb4   : > { %p4442_p12 = scmp.lt.u32.totalorder %s4433_s7, %s5177_s29 }
  0xb5   : > { %p4437_p8 = pneg %p4436_p6 }
  0xb6   : > { %p4443_p1 = por %p4442_p12, %p4441_p13 }
  0xb8   : > { %p4444_p11 = pnand %p4443_p1, %p4437_p8 }
  0xba   : > { %4447 = shalt.err (!%p4444_p11)
}
  0xbb   : > { %s4448_s15 = scalar_lea.vmem %s5189_s28, 1024  ;;  %s4857_s13 = smov [#allocation19]  }
  0xbc   : > { %p4449_p2 = scmp.ne.s32.totalorder %s5189_s28, %s4448_s15  ;;  %s4453_s17 = sshll.u32 %s4857_s13, 4  ;;  %s4454_s17 = int_to_ptr.vmem [resolvable:$false] %s4453_s17 }
  0xbd   : > { %s4455_s30 = scalar_lea.vmem %s4454_s17, 2048  ;;  %p4456_p5 = scmp.lt.s32.totalorder %s5189_s28, %s4454_s17 }
  0xbe   : > { %p4451_p6 = pnand %p4449_p2, %p5201_p4  ;;  %p4457_p7 = scmp.lt.s32.totalorder %s4455_s30, %s4448_s15 }
  0xc0   : > { %p4452_p3 = pneg %p4451_p6  ;;  %p4458_p9 = por %p4457_p7, %p4456_p5 }
  0xc2   : > { %p4459_p10 = pnand %p4458_p9, %p4452_p3 }
  0xc4   : > { %4462 = shalt.err (!%p4459_p10)
}
  0xc5   : > { %s7614_s7 = smov 4   ;;  %s7615_s0 = smov 64  }
  0xc6   : > { %4035 = dma.hbm_to_vmem [thread:$0]  (!%p5185_p0), %s5177_s29, 1024, %s5189_s28, %s7503_s5, %s7615_s0, %s7615_s0, %s7614_s7  }
  0xc7   : > { %s7616_s20 = sshll.u32 %s5167_s25, 6  ;;  %s3855_s13 = sshll.u32 %s5167_s25, 5 }
  0xc8   : > { %s603_s10 = scalar_lea.vmem [#allocation24], %s7616_s20  ;;  %s3958_s17 = sshll.u32 %s4839_s16, 9 }
  0xc9   : > { %s611_s15 = sshll.u32 %s603_s10, 4  ;;  %s7618_s11 = sld [smem:[#allocation82_spill]]  ;;  %s5231_s15 = int_to_ptr.vmem [resolvable:$true] %s611_s15 }
  0xca   : > { %7617 = sst [smem:[#allocation47_spill]] %s5231_s15  ;;  %s581_s24 = scalar_lea.vmem [#allocation22], %s3855_s13 }
  0xcb   : > { %s589_s26 = sshll.u32 %s581_s24, 4  ;;  %s7509_s29 = scalar_lea.sflag [#allocation23], %s5164_s22  ;;  %s5240_s26 = int_to_ptr.vmem [resolvable:$true] %s589_s26 }
  0xcf   : > { %s5238_s27 = scalar_lea.hbm %s7618_s11, %s3958_s17  ;;  %s4468_s9 = scalar_lea.hbm %s7618_s11, 1024 }
  0xd0   : > { %s4463_s28 = scalar_lea.hbm %s5238_s27, 512  ;;  %p4469_p3 = scmp.lt.u32.totalorder %s5238_s27, %s7618_s11 }
  0xd1   : > { %p4464_p5 = scmp.ne.s32.totalorder %s5238_s27, %s4463_s28  ;;  %p4470_p11 = scmp.lt.u32.totalorder %s4468_s9, %s4463_s28 }
  0xd2   : > { %p4472_p8 = scmp.lt.u32.totalorder %s4463_s28, %s5238_s27 }
  0xd3   : > { %p4466_p7 = pnand %p4464_p5, %p5201_p4  ;;  %p4471_p12 = por %p4470_p11, %p4469_p3 }
  0xd5   : > { %p4467_p1 = pneg %p4466_p7  ;;  %p4473_p13 = por %p4472_p8, %p4471_p12 }
  0xd7   : > { %p4474_p2 = pnand %p4473_p13, %p4467_p1 }
  0xd9   : > { %4477 = shalt.err (!%p4474_p2)
}
  0xda   : > { %s4478_s24 = scalar_lea.vmem %s5240_s26, 512  ;;  %s4858_s13 = smov [#allocation22]  }
  0xdb   : > { %p4479_p6 = scmp.ne.s32.totalorder %s5240_s26, %s4478_s24  ;;  %s4483_s20 = sshll.u32 %s4858_s13, 4  ;;  %s4484_s20 = int_to_ptr.vmem [resolvable:$false] %s4483_s20 }
  0xdc   : > { %s4485_s10 = scalar_lea.vmem %s4484_s20, 1024  ;;  %p4486_p5 = scmp.lt.s32.totalorder %s5240_s26, %s4484_s20 }
  0xdd   : > { %p4481_p9 = pnand %p4479_p6, %p5201_p4  ;;  %p4487_p7 = scmp.lt.s32.totalorder %s4485_s10, %s4478_s24 }
  0xdf   : > { %p4482_p10 = pneg %p4481_p9  ;;  %p4488_p3 = por %p4487_p7, %p4486_p5 }
  0xe1   : > { %p4489_p11 = pnand %p4488_p3, %p4482_p10 }
  0xe3   : > { %4492 = shalt.err (!%p4489_p11)
}
  0xe4   : > { %4041 = dma.hbm_to_vmem [thread:$0]  (!%p5185_p0), %s5238_s27, 512, %s5240_s26, %s7509_s29, %s7615_s0, %s7615_s0, %s7614_s7  }
  0xe5   : > { %s4859_s28 = smov [#allocation12]   ;;  %s4860_s17 = smov [#allocation15]  }
  0xe6   : > { %s425_s9 = sshll.u32 %s4859_s28, 4  ;;  %s451_s30 = sshll.u32 %s4860_s17, 4  ;;  %s426_s9 = int_to_ptr.vmem [resolvable:$true] %s425_s9  ;;  %s452_s30 = int_to_ptr.vmem [resolvable:$true] %s451_s30 }
  0xe7   : > { %s7619_s4 = sld [smem:[#allocation75_spill]]  ;;  %p7620_p12 = scmp.ne.s32.totalorder %s7600_s21, 0 }
  0xed   : > { %s4493_s20 = scalar_lea.hbm %s7619_s4, 256 }
  0xee   : > { %p4494_p1 = scmp.ne.s32.totalorder %s7619_s4, %s4493_s20  ;;  %p4500_p2 = scmp.lt.u32.totalorder %s4493_s20, %s7619_s4 }
  0xf0   : > { %p4496_p8 = pnand %p4494_p1, %p7620_p12 }
  0xf2   : > { %p4497_p13 = pneg %p4496_p8 }
  0xf4   : > { %p4502_p6 = pnand %p4500_p2, %p4497_p13 }
  0xf6   : > { %4505 = shalt.err (!%p4502_p6)
}
  0xf7   : > { %s4506_s26 = scalar_lea.vmem %s426_s9, 256  ;;  %p4514_p7 = scmp.lt.s32.totalorder %s426_s9, %s426_s9 }
  0xf8   : > { %p4507_p9 = scmp.ne.s32.totalorder %s426_s9, %s4506_s26  ;;  %p4515_p3 = scmp.lt.s32.totalorder %s4506_s26, %s4506_s26 }
  0xfa   : > { %p4509_p10 = pnand %p4507_p9, %p7620_p12  ;;  %p4516_p11 = por %p4515_p3, %p4514_p7 }
  0xfc   : > { %p4510_p5 = pneg %p4509_p10 }
  0xfe   : > { %p4517_p0 = pnand %p4516_p11, %p4510_p5 }
 0x100   : > { %4520 = shalt.err (!%p4517_p0)
}
 0x101   : > { %p7621_p1 = scmp.ne.s32.totalorder %s7598_s23, 0  ;;  %s7622_s6 = sld [smem:[#allocation77_spill]] }
 0x103   : > { %4013 = dma.hbm_to_vmem [thread:$0]  (!%p7621_p1), %s7619_s4, 256, %s426_s9, [#allocation11], %s7615_s0, %s7615_s0, %s7614_s7  }
 0x107   : > { %s4521_s28 = scalar_lea.hbm %s7622_s6, 256 }
 0x108   : > { %p4522_p8 = scmp.ne.s32.totalorder %s7622_s6, %s4521_s28  ;;  %p4528_p2 = scmp.lt.u32.totalorder %s4521_s28, %s7622_s6 }
 0x10a   : > { %p4524_p0 = pnand %p4522_p8, %p7620_p12 }
 0x10c   : > { %p4525_p13 = pneg %p4524_p0 }
 0x10e   : > { %p4530_p6 = pnand %p4528_p2, %p4525_p13 }
 0x110   : > { %4533 = shalt.err (!%p4530_p6)
}
 0x111   : > { %s4534_s10 = scalar_lea.vmem %s452_s30, 256  ;;  %p4542_p7 = scmp.lt.s32.totalorder %s452_s30, %s452_s30 }
 0x112   : > { %p4535_p9 = scmp.ne.s32.totalorder %s452_s30, %s4534_s10  ;;  %p4543_p3 = scmp.lt.s32.totalorder %s4534_s10, %s4534_s10 }
 0x114   : > { %p4537_p10 = pnand %p4535_p9, %p7620_p12  ;;  %p4544_p11 = por %p4543_p3, %p4542_p7 }
 0x116   : > { %p4538_p5 = pneg %p4537_p10 }
 0x118   : > { %p4545_p4 = pnand %p4544_p11, %p4538_p5 }
 0x11a   : > { %4548 = shalt.err (!%p4545_p4)
}
 0x11b   : > { %4019 = dma.hbm_to_vmem [thread:$0]  (!%p7621_p1), %s7622_s6, 256, %s452_s30, [#allocation14], %s7615_s0, %s7615_s0, %s7614_s7  }
 0x11c   : > { %s4861_s5 = smov [#allocation18]   ;;  %s7623_s8 = sld [smem:[#allocation79_spill]] }
 0x11d   : > { %s477_s11 = sshll.u32 %s4861_s5, 4  ;;  %s478_s11 = int_to_ptr.vmem [resolvable:$true] %s477_s11 }
 0x122   : > { %s4549_s28 = scalar_lea.hbm %s7623_s8, 128 }
 0x123   : > { %p4550_p4 = scmp.ne.s32.totalorder %s7623_s8, %s4549_s28  ;;  %p4556_p13 = scmp.lt.u32.totalorder %s4549_s28, %s7623_s8 }
 0x125   : > { %p4552_p8 = pnand %p4550_p4, %p7620_p12 }
 0x127   : > { %p4553_p0 = pneg %p4552_p8 }
 0x129   : > { %p4558_p2 = pnand %p4556_p13, %p4553_p0 }
 0x12b   : > { %4561 = shalt.err (!%p4558_p2)
}
 0x12c   : > { %s4562_s30 = scalar_lea.vmem %s478_s11, 128  ;;  %p4570_p5 = scmp.lt.s32.totalorder %s478_s11, %s478_s11 }
 0x12d   : > { %p4563_p6 = scmp.ne.s32.totalorder %s478_s11, %s4562_s30  ;;  %p4571_p7 = scmp.lt.s32.totalorder %s4562_s30, %s4562_s30 }
 0x12f   : > { %p4565_p9 = pnand %p4563_p6, %p7620_p12  ;;  %p4572_p3 = por %p4571_p7, %p4570_p5 }
 0x131   : > { %p4566_p10 = pneg %p4565_p9 }
 0x133   : > { %p4573_p11 = pnand %p4572_p3, %p4566_p10 }
 0x135   : > { %4576 = shalt.err (!%p4573_p11)
}
 0x136   : > { %s7624_s26 = sld [smem:[#allocation42_spill]]  ;;  %s7625_s21 = sld [smem:[#allocation39_spill]] }
 0x137   : > { %s7626_s5 = sld [smem:[#allocation38_spill]]  ;;  %s7627_s27 = sld [smem:[#allocation37_spill]] }
 0x138   : > { %4025 = dma.hbm_to_vmem [thread:$0]  (!%p7621_p1), %s7623_s8, 128, %s478_s11, [#allocation17], %s7615_s0, %s7615_s0, %s7614_s7  }
 0x139   : > { %s3831_s23 = sadd.s32 4294967294, %s4847_s18   ;;  %p7628_p12 = scmp.ne.s32.totalorder %s7604_s1, 0 }
 0x13a   : > { %p7629_p13 = scmp.eq.s32.totalorder %s4847_s18, 0  ;;  %p374_p6 = scmp.eq.s32.totalorder %s5012_s19, 3 }
 0x13b   : > { %p7632_p1 = scmp.eq.s32.totalorder %s5012_s19, 0  ;;  %p380_p5 = scmp.eq.s32.totalorder %s3831_s23, 3 }
 0x13c   : > { %s53_s15 = sadd.s32 1, %s7624_s26  ;;  %s60_s28 = sadd.s32 1, %s7625_s21 }
 0x13d   : > { %s7782_s15 = smov (!%p7628_p12, %s53_s15), %s7624_s26  ;;  %p67_p4 = scmp.ne.s32.totalorder %s7625_s21, %s7626_s5 }
 0x13e   : > { %p55_p8 = scmp.ge.s32.totalorder %s7782_s15, 2  ;;  %p73_p0 = scmp.ne.s32.totalorder %s7626_s5, %s7627_s27 }
 0x13f   : > { %p5344_p2 = por %p7629_p13, %p67_p4  ;;  %p5357_p10 = por %p374_p6, %p67_p4 }
 0x140   : > { %s7784_s15 = smov (%p55_p8, %s7782_s15), 0  ;;  %p5353_p9 = por %p7632_p1, %p73_p0 }
 0x141   : > { %7631 = sst [smem:[#allocation48_spill]] %s7784_s15  ;;  %s57_s0 = ssub.s32 %s7624_s26, %s7784_s15 }
 0x142   : > { %s7633_s1 = scalar_select %p5353_p9, 1, 0 }
 0x143   : > { %s7634_s7 = scalar_select %p5357_p10, 1, 0 }
 0x144   : > { %p58_p7 = scmp.eq.s32.totalorder %s57_s0, 0  ;;  %s5364_s11 = sand.u32 1, %s7625_s21  }
 0x145   : > { %p5366_p3 = por %p380_p5, %p73_p0  ;;  %s3841_s13 = sshll.u32 %s5364_s11, 4 }
 0x146   : > { %s7786_s21 = smov (!%p58_p7, %s7625_s21), %s60_s28  ;;  %s3951_s20 = sshll.u32 %s7624_s26, 8 }
 0x147   : > { %s7635_s24 = scalar_select %p5366_p3, 1, 0 }
 0x148   : > { %7636 = sst [smem:[#allocation49_spill]] %s7786_s21  ;;  %s7637_s9 = sld [smem:[#allocation71_spill]] }
 0x149   : > { %s495_s27 = scalar_lea.vmem [#allocation4], %s3841_s13  ;;  %p7638_p11 = scmp.lt.s32.totalorder %s4847_s18, 4 }
 0x14a   : > { %s502_s23 = sshll.u32 %s495_s27, 4  ;;  %s492_s30 = scalar_lea.sflag [#allocation5], %s5364_s11  ;;  %s5388_s23 = int_to_ptr.vmem [resolvable:$true] %s502_s23 }
 0x14b   : > { %p5384_p12 = pnand %p7638_p11, %p5344_p2 }
 0x14d   : > { %p4579_p8 = pneg %p5384_p12 }
 0x14e   : > { %s5378_s5 = scalar_lea.hbm %s7637_s9, %s3951_s20  ;;  %s4582_s10 = scalar_lea.hbm %s7637_s9, 512 }
 0x14f   : > { %s4577_s20 = scalar_lea.hbm %s5378_s5, 256  ;;  %p4583_p2 = scmp.lt.u32.totalorder %s5378_s5, %s7637_s9 }
 0x150   : > { %p4578_p4 = scmp.ne.s32.totalorder %s5378_s5, %s4577_s20  ;;  %p4584_p6 = scmp.lt.u32.totalorder %s4582_s10, %s4577_s20 }
 0x151   : > { %p4586_p5 = scmp.lt.u32.totalorder %s4577_s20, %s5378_s5 }
 0x152   : > { %p4580_p0 = pnand %p4579_p8, %p4578_p4  ;;  %p4585_p1 = por %p4584_p6, %p4583_p2 }
 0x154   : > { %p4581_p13 = pneg %p4580_p0  ;;  %p4587_p7 = por %p4586_p5, %p4585_p1 }
 0x156   : > { %p4588_p11 = pnand %p4587_p7, %p4581_p13 }
 0x158   : > { %4591 = shalt.err (!%p4588_p11)
}
 0x159   : > { %s4592_s28 = scalar_lea.vmem %s5388_s23, 256  ;;  %s4862_s17 = smov [#allocation4]  }
 0x15a   : > { %p4593_p4 = scmp.ne.s32.totalorder %s5388_s23, %s4592_s28  ;;  %s4597_s13 = sshll.u32 %s4862_s17, 4  ;;  %s4598_s13 = int_to_ptr.vmem [resolvable:$false] %s4597_s13 }
 0x15b   : > { %s4599_s29 = scalar_lea.vmem %s4598_s13, 512  ;;  %p4600_p10 = scmp.lt.s32.totalorder %s5388_s23, %s4598_s13 }
 0x15c   : > { %p4595_p0 = pnand %p4593_p4, %p4579_p8  ;;  %p4601_p2 = scmp.lt.s32.totalorder %s4599_s29, %s4592_s28 }
 0x15e   : > { %p4596_p3 = pneg %p4595_p0  ;;  %p4602_p6 = por %p4601_p2, %p4600_p10 }
 0x160   : > { %p4603_p1 = pnand %p4602_p6, %p4596_p3 }
 0x162   : > { %4606 = shalt.err (!%p4603_p1)
}
 0x163   : > { %s7640_s20 = smov 8   ;;  %s7641_s10 = smov 128  }
 0x164   : > { %4029 = dma.hbm_to_vmem [thread:$0]  (!%p5384_p12), %s5378_s5, 256, %s5388_s23, %s492_s30, %s7641_s10, %s7641_s10, %s7640_s20  }
 0x165   : > { %s3952_s27 = sshll.u32 %s7624_s26, 9  ;;  %s7642_s13 = sld [smem:[#allocation72_spill]] }
 0x166   : > { %s7643_s4 = sshll.u32 %s5364_s11, 5  ;;  %s3851_s9 = sshll.u32 %s5167_s25, 7 }
 0x167   : > { %s516_s6 = scalar_lea.vmem [#allocation7], %s7643_s4  ;;  %s513_s15 = scalar_lea.sflag [#allocation8], %s5164_s22 }
 0x168   : > { %s523_s8 = sshll.u32 %s516_s6, 4  ;;  %s5430_s8 = int_to_ptr.vmem [resolvable:$true] %s523_s8 }
 0x16b   : > { %s5426_s29 = scalar_lea.hbm %s7642_s13, %s3952_s27  ;;  %s4612_s11 = scalar_lea.hbm %s7642_s13, 1024 }
 0x16c   : > { %s4607_s21 = scalar_lea.hbm %s5426_s29, 512  ;;  %p4613_p5 = scmp.lt.u32.totalorder %s5426_s29, %s7642_s13 }
 0x16d   : > { %p4608_p10 = scmp.ne.s32.totalorder %s5426_s29, %s4607_s21  ;;  %p4614_p7 = scmp.lt.u32.totalorder %s4612_s11, %s4607_s21 }
 0x16e   : > { %p4616_p4 = scmp.lt.u32.totalorder %s4607_s21, %s5426_s29 }
 0x16f   : > { %p4610_p3 = pnand %p4608_p10, %p4579_p8  ;;  %p4615_p11 = por %p4614_p7, %p4613_p5 }
 0x171   : > { %p4611_p13 = pneg %p4610_p3  ;;  %p4617_p0 = por %p4616_p4, %p4615_p11 }
 0x173   : > { %p4618_p2 = pnand %p4617_p0, %p4611_p13 }
 0x175   : > { %4621 = shalt.err (!%p4618_p2)
}
 0x176   : > { %s4622_s4 = scalar_lea.vmem %s5430_s8, 512  ;;  %s4863_s6 = smov [#allocation7]  }
 0x177   : > { %p4623_p6 = scmp.ne.s32.totalorder %s5430_s8, %s4622_s4  ;;  %s4627_s27 = sshll.u32 %s4863_s6, 4  ;;  %s4628_s27 = int_to_ptr.vmem [resolvable:$false] %s4627_s27 }
 0x178   : > { %s4629_s28 = scalar_lea.vmem %s4628_s27, 1024  ;;  %p4630_p3 = scmp.lt.s32.totalorder %s5430_s8, %s4628_s27 }
 0x179   : > { %p4625_p1 = pnand %p4623_p6, %p4579_p8  ;;  %p4631_p5 = scmp.lt.s32.totalorder %s4629_s28, %s4622_s4 }
 0x17b   : > { %p4626_p10 = pneg %p4625_p1  ;;  %p4632_p7 = por %p4631_p5, %p4630_p3 }
 0x17d   : > { %p4633_p11 = pnand %p4632_p7, %p4626_p10 }
 0x17f   : > { %4636 = shalt.err (!%p4633_p11)
}
 0x180   : > { %4032 = dma.hbm_to_vmem [thread:$0]  (!%p5384_p12), %s5426_s29, 512, %s5430_s8, %s513_s15, %s7641_s10, %s7641_s10, %s7640_s20  }
 0x181   : > { %s3956_s21 = sshll.u32 %s4839_s16, 11  ;;  %s7644_s5 = sld [smem:[#allocation81_spill]] }
 0x182   : > { %s559_s0 = scalar_lea.vmem [#allocation21], %s3851_s9  ;;  %p7645_p13 = scmp.ne.s32.totalorder %s7613_s14, 0 }
 0x183   : > { %s567_s23 = sshll.u32 %s559_s0, 4  ;;  %s5470_s23 = int_to_ptr.vmem [resolvable:$true] %s567_s23 }
 0x187   : > { %s5466_s11 = scalar_lea.hbm %s7644_s5, %s3956_s21  ;;  %s4642_s29 = scalar_lea.hbm %s7644_s5, 4096 }
 0x188   : > { %s4637_s30 = scalar_lea.hbm %s5466_s11, 2048  ;;  %p4643_p0 = scmp.lt.u32.totalorder %s5466_s11, %s7644_s5 }
 0x189   : > { %p4638_p8 = scmp.ne.s32.totalorder %s5466_s11, %s4637_s30  ;;  %p4644_p2 = scmp.lt.u32.totalorder %s4642_s29, %s4637_s30 }
 0x18a   : > { %p4646_p1 = scmp.lt.u32.totalorder %s4637_s30, %s5466_s11 }
 0x18b   : > { %p4640_p4 = pnand %p4638_p8, %p7645_p13  ;;  %p4645_p6 = por %p4644_p2, %p4643_p0 }
 0x18d   : > { %p4641_p12 = pneg %p4640_p4  ;;  %p4647_p10 = por %p4646_p1, %p4645_p6 }
 0x18f   : > { %p4648_p3 = pnand %p4647_p10, %p4641_p12 }
 0x191   : > { %4651 = shalt.err (!%p4648_p3)
}
 0x192   : > { %s4652_s25 = scalar_lea.vmem %s5470_s23, 2048  ;;  %s4864_s9 = smov [#allocation21]  }
 0x193   : > { %p4653_p5 = scmp.ne.s32.totalorder %s5470_s23, %s4652_s25  ;;  %s4657_s27 = sshll.u32 %s4864_s9, 4  ;;  %s4658_s27 = int_to_ptr.vmem [resolvable:$false] %s4657_s27 }
 0x194   : > { %s4659_s28 = scalar_lea.vmem %s4658_s27, 4096  ;;  %p4660_p8 = scmp.lt.s32.totalorder %s5470_s23, %s4658_s27 }
 0x195   : > { %p4655_p7 = pnand %p4653_p5, %p7645_p13  ;;  %p4661_p4 = scmp.lt.s32.totalorder %s4659_s28, %s4652_s25 }
 0x197   : > { %p4656_p11 = pneg %p4655_p7  ;;  %p4662_p0 = por %p4661_p4, %p4660_p8 }
 0x199   : > { %p4663_p2 = pnand %p4662_p0, %p4656_p11 }
 0x19b   : > { %4666 = shalt.err (!%p4663_p2)
}
 0x19c   : > { %p7646_p12 = scmp.ne.s32.totalorder %s7612_s3, 0  ;;  %s7647_s21 = scalar_lea.sflag [#allocation20], %s5164_s22 }
 0x19d   : > { %s4667_s17 = scalar_lea.hbm %s5194_s2, 1024  ;;  %s4672_s30 = scalar_lea.hbm %s7468_s12, 2048 }
 0x19e   : > { %4038 = dma.hbm_to_vmem [thread:$0]  (!%p7646_p12), %s5466_s11, 2048, %s5470_s23, %s7647_s21, %s7641_s10, %s7641_s10, %s7640_s20  }
 0x19f   : > { %p4668_p6 = scmp.ne.s32.totalorder %s5194_s2, %s4667_s17  ;;  %p4673_p3 = scmp.lt.u32.totalorder %s5194_s2, %s7468_s12 }
 0x1a0   : > { %p4674_p5 = scmp.lt.u32.totalorder %s4672_s30, %s4667_s17  ;;  %p4676_p11 = scmp.lt.u32.totalorder %s4667_s17, %s5194_s2 }
 0x1a1   : > { %p4670_p1 = pnand %p4668_p6, %p7645_p13 }
 0x1a2   : > { %p4675_p7 = por %p4674_p5, %p4673_p3 }
 0x1a3   : > { %p4671_p10 = pneg %p4670_p1 }
 0x1a4   : > { %p4677_p8 = por %p4676_p11, %p4675_p7 }
 0x1a6   : > { %p4678_p4 = pnand %p4677_p8, %p4671_p10 }
 0x1a8   : > { %4681 = shalt.err (!%p4678_p4)
}
 0x1a9   : > { %s7648_s11 = sld [smem:[#allocation47_spill]]  ;;  %s4865_s29 = smov [#allocation24]  }
 0x1aa   : > { %s4687_s4 = sshll.u32 %s4865_s29, 4  ;;  %s4688_s4 = int_to_ptr.vmem [resolvable:$false] %s4687_s4 }
 0x1ab   : > { %s4689_s6 = scalar_lea.vmem %s4688_s4, 2048 }
 0x1af   : > { %s4682_s23 = scalar_lea.vmem %s7648_s11, 1024  ;;  %p4690_p1 = scmp.lt.s32.totalorder %s7648_s11, %s4688_s4 }
 0x1b0   : > { %p4683_p0 = scmp.ne.s32.totalorder %s7648_s11, %s4682_s23  ;;  %p4691_p9 = scmp.lt.s32.totalorder %s4689_s6, %s4682_s23 }
 0x1b2   : > { %p4685_p2 = pnand %p4683_p0, %p7645_p13  ;;  %p4692_p3 = por %p4691_p9, %p4690_p1 }
 0x1b4   : > { %p4686_p6 = pneg %p4685_p2 }
 0x1b6   : > { %p4693_p5 = pnand %p4692_p3, %p4686_p6 }
 0x1b8   : > { %4696 = shalt.err (!%p4693_p5)
}
 0x1b9   : > { %s7649_s25 = scalar_lea.sflag [#allocation23], %s5164_s22  ;;  %s7650_s14 = sld [smem:[#allocation43_spill]] }
 0x1ba   : > { %4044 = dma.hbm_to_vmem [thread:$0]  (!%p7646_p12), %s5194_s2, 1024, %s7648_s11, %s7649_s25, %s7641_s10, %s7641_s10, %s7640_s20  }
 0x1bf   : > { %p7651_p13 = scmp.ne.s32.totalorder %s7650_s14, 0 }
 0x1c1   : > { %623 = sbr.rel (%p7651_p13) target bundleno = 3216 (0xc90), region = 72 }
 0x1c8   : > { %s7652_s9 = sld [smem:[#allocation38_spill]]  ;;  %p7653_p9 = scmp.ne.s32.totalorder %s7633_s1, 0 }
 0x1ce   : > { %s5527_s27 = sand.u32 1, %s7652_s9  }
 0x1cf   : > { %s3864_s28 = sshll.u32 %s5527_s27, 4  ;;  %s626_s21 = scalar_lea.sflag [#allocation5], %s5527_s27 }
 0x1d0   : > { %s5531_s3 = scalar_lea.vmem [#allocation4], %s3864_s28 }
 0x1d1   : > { %4770 = dma.done.wait (%p7653_p9), %s626_s21, 256  }
 0x1d2   : > { %4772 = vsyncadd (%p7653_p9), %s626_s21, 4294967040  ;;  %s634_s22 = sand.u32 1, %s5012_s19   ;;  %s3865_s2 = sshll.u32 %s5527_s27, 5 }
 0x1d3   : > { %s635_s20 = scalar_lea.sflag [#allocation8], %s634_s22  ;;  %s5541_s10 = scalar_lea.vmem [#allocation7], %s3865_s2 }
 0x1d4   : > { %4774 = dma.done.wait (%p7653_p9), %s635_s20, 512  }
 0x1d5   : > { %4776 = vsyncadd (%p7653_p9), %s635_s20, 4294966784  ;;  %p7654_p12 = scmp.eq.s32.totalorder %s5012_s19, 0 }
 0x1d7   : > { %4778 = dma.done.wait (%p7654_p12), [#allocation8], 256   ;;  %p7655_p10 = pmov %p7654_p12 }
 0x1d9   : > { %4780 = vsyncadd (%p7655_p10), [#allocation8], 4294967040  ;;  %p7656_p7 = pmov %p7655_p10 }
 0x1db   : > { %4782 = dma.done.wait (%p7656_p7), [#allocation11], 768   ;;  %p7657_p11 = pmov %p7656_p7 }
 0x1dc   : > { %p7658_p8 = pmov %p7656_p7 }
 0x1dd   : > { %4784 = vsyncadd (%p7657_p11), [#allocation11], 4294966528 }
 0x1de   : > { %4786 = dma.done.wait (%p7658_p8), [#allocation14], 768   ;;  %p7659_p4 = pmov %p7656_p7 }
 0x1e0   : > { %4788 = vsyncadd (%p7659_p4), [#allocation14], 4294966528  ;;  %p7660_p0 = pmov %p7659_p4 }
 0x1e2   : > { %4790 = dma.done.wait (%p7660_p0), [#allocation17], 640   ;;  %p7661_p2 = pmov %p7660_p0 }
 0x1e3   : > { %s7662_s1 = sld [smem:[#allocation35_spill]]  ;;  %s7663_s17 = sld [smem:[#allocation45_spill]] }
 0x1e4   : > { %4792 = vsyncadd (%p7661_p2), [#allocation17], 4294966656  ;;  %s672_s30 = scalar_lea.sflag [#allocation20], %s634_s22 }
 0x1e9   : > { %s673_s26 = sand.u32 1, %s7662_s1   ;;  %p7664_p6 = scmp.ne.s32.totalorder %s7663_s17, 0 }
 0x1ea   : > { %s3873_s0 = sshll.u32 %s673_s26, 6 }
 0x1eb   : > { %s5564_s8 = scalar_lea.vmem [#allocation19], %s3873_s0 }
 0x1ec   : > { %4794 = dma.done.wait (%p7664_p6), %s672_s30, 3072  }
 0x1ed   : > { %4796 = vsyncadd (%p7664_p6), %s672_s30, 4294964224  ;;  %s3874_s15 = sshll.u32 %s673_s26, 7  ;;  %s3875_s11 = sshll.u32 %s673_s26, 5 }
 0x1ee   : > { %s5570_s23 = scalar_lea.vmem [#allocation21], %s3874_s15  ;;  %s690_s29 = scalar_lea.sflag [#allocation23], %s634_s22 }
 0x1ef   : > { %s5572_s19 = scalar_lea.vmem [#allocation22], %s3875_s11 }
 0x1f0   : > { %4798 = dma.done.wait (%p7664_p6), %s690_s29, 1536  }
 0x1f1   : > { %4800 = vsyncadd (%p7664_p6), %s690_s29, 4294965760  ;;  %v775_v0 = vlaneseq  ;;  %v4866_v2 = vmov 0.0   ;;  %s5583_s4 = scalar_lea.vmem [#allocation24], %s3873_s0  ;;  %s5587_s6 = scalar_lea.vmem [#allocation25], %s3865_s2 }
 0x1f2   : > { %s7666_s25 = sld [smem:[#allocation40_spill]] }
 0x1f3   : > { %v5578_v1 = vand.u32 127, %v775_v0 }
 0x1f5   : > { %vm778_vm0 = vcmp.lt.s32.totalorder %v5578_v1, 15 }
 0x1f6   : > { %v5581_v3 = vsel %vm778_vm0, 1.0, %v4866_v2 }
 0x1f7   : > { %7665 = vst [vmem:[#allocation50_spill] sm:$0xff] %v5581_v3 }
 0x1f8   : > { %p3879_p1 = scmp.ne.s32.totalorder %s7666_s25, 0 }
 0x1f9   : > { %v4185_v4 = vld [vmem:[%s5531_s3 + $0x4] ss:$8 sps:$4 sm:$0xff] (!%p3879_p1)   ;;  %v4187_v5 = vld [vmem:[%s5531_s3] ss:$8 sps:$4 sm:$0xff] (!%p3879_p1)   ;;  %v4867_v6 = vmov (!%p3879_p1), 0   ;;  %vm838_vm1 = vcmask (!%p3879_p1), 130048  }
 0x1fa   : > { %787 = sbr.rel (%p3879_p1) target bundleno = 1029 (0x405), region = 128  ;;  %877 = vmatprep.mubr.bf16.mxu0 (!%p3879_p1), %v4867_v6  ;;  %4183 = vset.pattern.permute.xlu0 (!%p3879_p1), %v4867_v6  ;;  %v4188_v7 = vld [vmem:[#allocation9] sm:$0xff] (!%p3879_p1)   ;;  %v794_v8 = vld [vmem:[#allocation10] sm:$0xff] (!%p3879_p1)  ;;  %v795_v10 = vld [vmem:[#allocation10 + $0x8] sm:$0xff] (!%p3879_p1)  ;;  %vm1025_vm2 = vcmask (!%p3879_p1), 261120  }
 0x1fb   : > { %845 = vmatprep.subr.bf16.mxu0 (!%p3879_p1), %v4185_v4  ;;  %4184 = vset.pattern.permute.xlu1 (!%p3879_p1), %v4867_v6  ;;  %v796_v9 = vld [vmem:[#allocation10 + $0x10] sm:$0xff] (!%p3879_p1)  ;;  %v797_v11 = vld [vmem:[#allocation10 + $0x18] sm:$0xff] (!%p3879_p1)  ;;  %v993_v15 = vld [vmem:[#allocation13 + $0x10] sm:$0xff] (!%p3879_p1) }
 0x1fc   : > { %846 = vmatpush1.bf16.msra.mxu0 (!%p3879_p1), %v4187_v5  ;;  %1064 = vmatprep.mubr.bf16.mxu1 (!%p3879_p1), %v4867_v6  ;;  %v991_v12 = vld [vmem:[#allocation13] sm:$0xff] (!%p3879_p1)  ;;  %v992_v13 = vld [vmem:[#allocation13 + $0x8] sm:$0xff] (!%p3879_p1)  ;;  %v994_v16 = vld [vmem:[#allocation13 + $0x18] sm:$0xff] (!%p3879_p1) }
 0x1fd   : > { %800 = vperm.xlu0 (!%p3879_p1), %4183, %v794_v8   ;;  %810 = vperm.xlu1 (!%p3879_p1), %4184, %v796_v9   ;;  %v4189_v14 = vld [vmem:[#allocation9 + $0x8] sm:$0xff] (!%p3879_p1)  }
 0x1ff   : > { %3884 = vmatmul.mubr.msk.bf16.vlgmr.msra.gmra.mrb[0].mxu0 (!%p3879_p1), %vm838_vm1, %v4188_v7 }
 0x200   : > { %887 = vmatprep.mubr.bf16.mxu0 (!%p3879_p1), %v4867_v6 }
 0x201   : > { %805 = vperm.xlu0 %4183, %v795_v10   ;;  %815 = vperm.xlu1 %4184, %v797_v11  }
 0x205   : > { %997 = vperm.xlu0 %4183, %v991_v12   ;;  %1002 = vperm.xlu1 %4184, %v992_v13  }
 0x207   : > { %3885 = vmatmul.mubr.msk.bf16.gmra.mrb[4].mxu0 %vm838_vm1, %v4189_v14 }
 0x209   : > { %1007 = vperm.xlu0 %4183, %v993_v15   ;;  %1012 = vperm.xlu1 %4184, %v994_v16  }
 0x27c   : > { %v801_v17 = vpop.permute.xlu0 %800  ;;  %v811_v27 = vpop.permute.xlu1 %810 }
 0x280   : > { %v806_v21 = vpop.permute.xlu0 %805  ;;  %v816_v37 = vpop.permute.xlu1 %815 }
 0x2d2   : > { %v879_v18 = vpop.f32.mrb[0].mxu0 }
 0x2d3   : > { %v880_v19 = vadd.f32 %v879_v18, %v801_v17  ;;  %v881_v20 = vpop.f32.mrb[1].mxu0 }
 0x2d4   : > { %v882_v22 = vadd.f32 %v881_v20, %v801_v17  ;;  %v883_v23 = vpop.f32.mrb[2].mxu0 }
 0x2d5   : > { %v898_v24 = vmax.f32 %v880_v19, 0.0  ;;  %v884_v25 = vadd.f32 %v883_v23, %v806_v21  ;;  %v885_v26 = vpop.f32.mrb[3].mxu0 }
 0x2d6   : > { %v899_v28 = vmax.f32 %v882_v22, 0.0  ;;  %v886_v29 = vadd.f32 %v885_v26, %v806_v21 }
 0x2d7   : > { %906 = vst [vmem:[#allocation3] sm:$0xff] %v898_v24  ;;  %v900_v30 = vmax.f32 %v884_v25, 0.0 }
 0x2d8   : > { %907 = vst [vmem:[#allocation3 + $0x8] sm:$0xff] %v899_v28  ;;  %v901_v31 = vmax.f32 %v886_v29, 0.0 }
 0x2d9   : > { %908 = vst [vmem:[#allocation3 + $0x10] sm:$0xff] %v900_v30  ;;  %v918_v32 = vadd.f32 %v900_v30, %v898_v24 }
 0x2da   : > { %909 = vst [vmem:[#allocation3 + $0x18] sm:$0xff] %v901_v31  ;;  %v927_v33 = vadd.f32 %v901_v31, %v899_v28  ;;  %v889_v34 = vpop.f32.mrb[4].mxu0 }
 0x2db   : > { %v890_v35 = vadd.f32 %v889_v34, %v811_v27  ;;  %v891_v36 = vpop.f32.mrb[5].mxu0 }
 0x2dc   : > { %v892_v38 = vadd.f32 %v891_v36, %v811_v27  ;;  %v893_v39 = vpop.f32.mrb[6].mxu0 }
 0x2dd   : > { %v902_v40 = vmax.f32 %v890_v35, 0.0  ;;  %v894_v41 = vadd.f32 %v893_v39, %v816_v37  ;;  %v895_v42 = vpop.f32.mrb[7].mxu0 }
 0x2de   : > { %v903_v43 = vmax.f32 %v892_v38, 0.0  ;;  %v896_v44 = vadd.f32 %v895_v42, %v816_v37 }
 0x2df   : > { %910 = vst [vmem:[#allocation3 + $0x20] sm:$0xff] %v902_v40  ;;  %v919_v45 = vadd.f32 %v918_v32, %v902_v40  ;;  %v904_v46 = vmax.f32 %v894_v41, 0.0 }
 0x2e0   : > { %911 = vst [vmem:[#allocation3 + $0x28] sm:$0xff] %v903_v43  ;;  %v928_v47 = vadd.f32 %v927_v33, %v903_v43  ;;  %v905_v48 = vmax.f32 %v896_v44, 0.0 }
 0x2e1   : > { %912 = vst [vmem:[#allocation3 + $0x30] sm:$0xff] %v904_v46  ;;  %v920_v49 = vadd.f32 %v919_v45, %v904_v46 }
 0x2e2   : > { %913 = vst [vmem:[#allocation3 + $0x38] sm:$0xff] %v905_v48  ;;  %v929_v50 = vadd.f32 %v928_v47, %v905_v48 }
 0x2e3   : > { %v921_v51 = vrot.slane %v920_v49, 4 }
 0x2e4   : > { %v930_v52 = vrot.slane %v929_v50, 4 }
 0x2e5   : > { %v922_v53 = vadd.f32 %v921_v51, %v920_v49 }
 0x2e6   : > { %v931_v54 = vadd.f32 %v930_v52, %v929_v50 }
 0x2e7   : > { %v923_v55 = vrot.slane %v922_v53, 2 }
 0x2e8   : > { %v932_v56 = vrot.slane %v931_v54, 2 }
 0x2e9   : > { %v924_v57 = vadd.f32 %v923_v55, %v922_v53 }
 0x2ea   : > { %v933_v58 = vadd.f32 %v932_v56, %v931_v54  ;;  %v4190_v56 = vld [vmem:[#allocation12] sm:$0xff]  }
 0x2eb   : > { %v925_v59 = vrot.slane %v924_v57, 1 }
 0x2ec   : > { %v934_v60 = vrot.slane %v933_v58, 1 }
 0x2ed   : > { %v926_v61 = vadd.f32 %v925_v59, %v924_v57  ;;  %v4191_v57 = vld [vmem:[#allocation12 + $0x8] sm:$0xff]  }
 0x2ee   : > { %v935_v62 = vadd.f32 %v934_v60, %v933_v58  ;;  %v998_v58 = vpop.permute.xlu0 %997 }
 0x2ef   : > { %v937_v63 = vmul.f32 0.03125, %v926_v61 }
 0x2f0   : > { %v938_v0 = vmul.f32 0.03125, %v935_v62  ;;  %v1003_v62 = vpop.permute.xlu1 %1002 }
 0x2f1   : > { %v945_v2 = vsub.f32 %v904_v46, %v937_v63  ;;  %v939_v4 = vsub.f32 %v898_v24, %v937_v63  ;;  %v941_v5 = vsub.f32 %v900_v30, %v937_v63  ;;  %v943_v7 = vsub.f32 %v902_v40, %v937_v63 }
 0x2f2   : > { %v946_v8 = vsub.f32 %v905_v48, %v938_v0  ;;  %v940_v9 = vsub.f32 %v899_v28, %v938_v0  ;;  %v942_v10 = vsub.f32 %v901_v31, %v938_v0  ;;  %v944_v11 = vsub.f32 %v903_v43, %v938_v0 }
 0x2f3   : > { %v947_v12 = vmul.f32 %v939_v4, %v939_v4  ;;  %v949_v13 = vmul.f32 %v941_v5, %v941_v5  ;;  %v951_v16 = vmul.f32 %v943_v7, %v943_v7  ;;  %v953_v20 = vmul.f32 %v945_v2, %v945_v2 }
 0x2f4   : > { %v948_v14 = vmul.f32 %v940_v9, %v940_v9  ;;  %v950_v15 = vmul.f32 %v942_v10, %v942_v10  ;;  %v952_v18 = vmul.f32 %v944_v11, %v944_v11  ;;  %v954_v22 = vmul.f32 %v946_v8, %v946_v8 }
 0x2f5   : > { %v955_v17 = vadd.f32 %v949_v13, %v947_v12 }
 0x2f6   : > { %v964_v19 = vadd.f32 %v950_v15, %v948_v14 }
 0x2f7   : > { %v956_v21 = vadd.f32 %v955_v17, %v951_v16 }
 0x2f8   : > { %v965_v23 = vadd.f32 %v964_v19, %v952_v18 }
 0x2f9   : > { %v957_v25 = vadd.f32 %v956_v21, %v953_v20 }
 0x2fa   : > { %v966_v24 = vadd.f32 %v965_v23, %v954_v22 }
 0x2fb   : > { %v958_v26 = vrot.slane %v957_v25, 4 }
 0x2fc   : > { %v967_v27 = vrot.slane %v966_v24, 4 }
 0x2fd   : > { %v959_v29 = vadd.f32 %v958_v26, %v957_v25 }
 0x2fe   : > { %v968_v28 = vadd.f32 %v967_v27, %v966_v24 }
 0x2ff   : > { %v960_v30 = vrot.slane %v959_v29, 2 }
 0x300   : > { %v969_v31 = vrot.slane %v968_v28, 2 }
 0x301   : > { %v961_v32 = vadd.f32 %v960_v30, %v959_v29 }
 0x302   : > { %v970_v33 = vadd.f32 %v969_v31, %v968_v28 }
 0x303   : > { %v962_v34 = vrot.slane %v961_v32, 1 }
 0x304   : > { %v971_v35 = vrot.slane %v970_v33, 1 }
 0x305   : > { %v963_v36 = vadd.f32 %v962_v34, %v961_v32 }
 0x306   : > { %v972_v37 = vadd.f32 %v971_v35, %v970_v33 }
 0x307   : > { %v973_v38 = vmul.f32 0.03125, %v963_v36 }
 0x308   : > { %v974_v39 = vmul.f32 0.03125, %v972_v37 }
 0x309   : > { %v975_v40 = vadd.f32 1e-05, %v973_v38 }
 0x30a   : > { %v976_v41 = vadd.f32 1e-05, %v974_v39 }
 0x30b   : > { %4192 = vrsqrt.f32 %v975_v40 }
 0x30c   : > { %4194 = vrsqrt.f32 %v976_v41 }
 0x315   : > { %v4193_v42 = vpop.eup %4192 }
 0x316   : > { %v4195_v43 = vpop.eup %4194  ;;  %v979_v44 = vmul.f32 %v4193_v42, %v939_v4  ;;  %v981_v45 = vmul.f32 %v4193_v42, %v941_v5  ;;  %v983_v46 = vmul.f32 %v4193_v42, %v943_v7  ;;  %v985_v47 = vmul.f32 %v4193_v42, %v945_v2  ;;  %v1008_v7 = vpop.permute.xlu0 %1007 }
 0x317   : > { %v980_v48 = vmul.f32 %v4195_v43, %v940_v9  ;;  %v982_v49 = vmul.f32 %v4195_v43, %v942_v10  ;;  %v984_v50 = vmul.f32 %v4195_v43, %v944_v11  ;;  %v986_v51 = vmul.f32 %v4195_v43, %v946_v8  ;;  %v1013_v10 = vpop.permute.xlu1 %1012 }
 0x318   : > { %v987_v52 = vpack.c.bf16 %v981_v45, %v979_v44  ;;  %v989_v53 = vpack.c.bf16 %v985_v47, %v983_v46 }
 0x319   : > { %v988_v54 = vpack.c.bf16 %v982_v49, %v980_v48  ;;  %v990_v55 = vpack.c.bf16 %v986_v51, %v984_v50 }
 0x31b   : > { %1032 = vmatprep.subr.bf16.mxu1 %v988_v54 }
 0x31c   : > { %1033 = vmatpush1.bf16.msra.mxu1 %v987_v52 }
 0x31d   : > { %1034 = vmatprep.subr.bf16.mxu1 %v990_v55 }
 0x320   : > { %1035 = vmatpush1.bf16.msra.mxu1 %v989_v53 }
 0x323   : > { %3888 = vmatmul.mubr.msk.bf16.vlgmr.msra.gmra.mrb[0].mxu1 %vm1025_vm2, %v4190_v56 }
 0x324   : > { %1074 = vmatprep.mubr.bf16.mxu1 %v4867_v6 }
 0x32b   : > { %3889 = vmatmul.mubr.msk.bf16.gmra.mrb[4].mxu1 %vm1025_vm2, %v4191_v57 }
 0x3f6   : > { %v1066_v59 = vpop.f32.mrb[0].mxu1 }
 0x3f7   : > { %v1067_v60 = vadd.f32 %v1066_v59, %v998_v58  ;;  %v1068_v61 = vpop.f32.mrb[1].mxu1 }
 0x3f8   : > { %v1069_v63 = vadd.f32 %v1068_v61, %v998_v58  ;;  %v1070_v0 = vpop.f32.mrb[2].mxu1 }
 0x3f9   : > { %1085 = vst [vmem:[#allocation2] sm:$0xff] %v1067_v60  ;;  %v1071_v2 = vadd.f32 %v1070_v0, %v1003_v62  ;;  %v1072_v4 = vpop.f32.mrb[3].mxu1 }
 0x3fa   : > { %1086 = vst [vmem:[#allocation2 + $0x8] sm:$0xff] %v1069_v63  ;;  %v1073_v5 = vadd.f32 %v1072_v4, %v1003_v62 }
 0x3fb   : > { %1087 = vst [vmem:[#allocation2 + $0x10] sm:$0xff] %v1071_v2 }
 0x3fc   : > { %1088 = vst [vmem:[#allocation2 + $0x18] sm:$0xff] %v1073_v5 }
 0x3fe   : > { %v1076_v8 = vpop.f32.mrb[4].mxu1 }
 0x3ff   : > { %v1077_v9 = vadd.f32 %v1076_v8, %v1008_v7  ;;  %v1078_v6 = vpop.f32.mrb[5].mxu1 }
 0x400   : > { %v1079_v11 = vadd.f32 %v1078_v6, %v1008_v7  ;;  %v1080_v12 = vpop.f32.mrb[6].mxu1 }
 0x401   : > { %1089 = vst [vmem:[#allocation2 + $0x20] sm:$0xff] %v1077_v9  ;;  %v1081_v13 = vadd.f32 %v1080_v12, %v1013_v10  ;;  %v1082_v14 = vpop.f32.mrb[7].mxu1 }
 0x402   : > { %1090 = vst [vmem:[#allocation2 + $0x28] sm:$0xff] %v1079_v11  ;;  %v1083_v15 = vadd.f32 %v1082_v14, %v1013_v10 }
 0x403   : > { %1091 = vst [vmem:[#allocation2 + $0x30] sm:$0xff] %v1081_v13 }
 0x404   : > { %1092 = vst [vmem:[#allocation2 + $0x38] sm:$0xff] %v1083_v15 }
 0x405 PF: > { %v1094_v16 = vld [vmem:[#allocation2 + $0x8] sm:$0xff]  ;;  %v1096_v17 = vld [vmem:[#allocation2 + $0x18] sm:$0xff]  ;;  %v1093_v18 = vld [vmem:[#allocation2] sm:$0xff]  ;;  %v7528_v23 = vmov 0   ;;  %v7530_v25 = vmov 4   ;;  %v7526_v28 = vmov 7  }
 0x406   : > { %v1118_v19 = vpack.c.bf16 %v1096_v17, %v1094_v16  ;;  %v1095_v20 = vld [vmem:[#allocation2 + $0x10] sm:$0xff]  ;;  %1226 = vmatprep.mubr.bf16.mxu0 %v7528_v23  ;;  %4196 = vset.pattern.permute.xlu1 %v7530_v25  ;;  %v5607_v31 = vld [vmem:[%s5570_s23 + $0x10] sm:$0xff]  ;;  %v4278_v32 = vld [vmem:[%s5564_s8] sm:$0xff]   ;;  %vm1181_vm3 = vcmask 261120   ;;  %v7524_v43 = vmov 5   ;;  %v7522_v44 = vmov 6  }
 0x407   : > { %v1117_v24 = vpack.c.bf16 %v1095_v20, %v1093_v18  ;;  %4198 = vset.pattern.permute.xlu0 %v7526_v28  ;;  %2139 = vmatprep.mubr.bf16.mxu1 %v7528_v23  ;;  %v5612_v33 = vld [vmem:[%s5570_s23] sm:$0xff]  ;;  %v5615_v34 = vld [vmem:[%s5570_s23 + $0x8] sm:$0xff]  ;;  %v5621_v35 = vld [vmem:[%s5570_s23 + $0x18] sm:$0xff]  ;;  %v7520_v45 = vmov 1   ;;  %v7518_v46 = vmov 3   ;;  %v7516_v47 = vmov 2  }
 0x408   : > { %v1097_v27 = vld [vmem:[#allocation2 + $0x20] sm:$0xff]  ;;  %1194 = vmatprep.subr.bf16.mxu0 %v1118_v19  ;;  %1133 = vperm.xlu1 %4196, %v5607_v31   ;;  %v5624_v36 = vld [vmem:[%s5570_s23 + $0x20] sm:$0xff]  ;;  %v4280_v38 = vld [vmem:[%s5564_s8 + $0x10] sm:$0xff]   ;;  %v7514_v48 = vmov 8   ;;  %s4877_s14 = smov 1   ;;  %s4878_s9 = smov 127  }
 0x409   : > { %v1098_v21 = vld [vmem:[#allocation2 + $0x28] sm:$0xff]  ;;  %1195 = vmatpush1.bf16.msra.mxu0 %v1117_v24  ;;  %1288 = vperm.xlu0 %4198, %v5615_v34   ;;  %v4279_v37 = vld [vmem:[%s5564_s8 + $0x8] sm:$0xff]   ;;  %v5650_v40 = vld [vmem:[%s5570_s23 + $0x38] sm:$0xff]  ;;  %s4879_s28 = smov 2   ;;  %s4880_s21 = smov 126  }
 0x40a   : > { %v1099_v29 = vld [vmem:[#allocation2 + $0x30] sm:$0xff]  ;;  %v5642_v39 = vld [vmem:[%s5570_s23 + $0x28] sm:$0xff]  ;;  %v5653_v41 = vld [vmem:[%s5570_s23 + $0x30] sm:$0xff] }
 0x40b   : > { %v1100_v22 = vld [vmem:[#allocation2 + $0x38] sm:$0xff]  ;;  %v1119_v30 = vpack.c.bf16 %v1099_v29, %v1097_v27  ;;  %v4281_v42 = vld [vmem:[%s5564_s8 + $0x18] sm:$0xff]  }
 0x40c   : > { %v1120_v26 = vpack.c.bf16 %v1100_v22, %v1098_v21  ;;  %4197 = vset.pattern.permute.xlu1 %v7526_v28 }
 0x40d   : > { %1284 = vperm.xlu1 %4197, %v5612_v33   ;;  %1300 = vperm.xlu0 %4198, %v5624_v36  }
 0x40e   : > { %1196 = vmatprep.subr.bf16.mxu0 %v1120_v26 }
 0x40f   : > { %1197 = vmatpush1.bf16.msra.mxu0 %v1119_v30 }
 0x411   : > { %4199 = vset.pattern.permute.xlu1 %v7530_v25  ;;  %4202 = vset.pattern.permute.xlu0 %v7530_v25 }
 0x412   : > { %3894 = vmatmul.mubr.msk.bf16.vlgmr.msra.gmra.mrb[0].mxu0 %vm1181_vm3, %v4278_v32  ;;  %1138 = vperm.xlu1 %4199, %v5621_v35  }
 0x413   : > { %1236 = vmatprep.mubr.bf16.mxu0 %v7528_v23  ;;  %1123 = vperm.xlu0 %4202, %v5612_v33  }
 0x416   : > { %4200 = vset.pattern.permute.xlu1 %v7526_v28 }
 0x417   : > { %1292 = vperm.xlu1 %4200, %v5607_v31   ;;  %1128 = vperm.xlu0 %4202, %v5615_v34  }
 0x41a   : > { %3895 = vmatmul.mubr.msk.bf16.gmra.mrb[4].mxu0 %vm1181_vm3, %v4279_v37 }
 0x41b   : > { %1246 = vmatprep.mubr.bf16.mxu0 %v7528_v23  ;;  %1296 = vperm.xlu1 %4200, %v5621_v35  }
 0x41c   : > { %1143 = vperm.xlu0 %4202, %v5624_v36  }
 0x41f   : > { %4201 = vset.pattern.permute.xlu1 %v7530_v25 }
 0x420   : > { %1148 = vperm.xlu1 %4201, %v5642_v39   ;;  %1158 = vperm.xlu0 %4202, %v5650_v40  }
 0x422   : > { %3896 = vmatmul.mubr.msk.bf16.gmra.mrb[8].mxu0 %vm1181_vm3, %v4280_v38 }
 0x423   : > { %1256 = vmatprep.mubr.bf16.mxu0 %v7528_v23 }
 0x424   : > { %1153 = vperm.xlu1 %4201, %v5653_v41   ;;  %4204 = vset.pattern.permute.xlu0 %v7524_v43 }
 0x425   : > { %1457 = vperm.xlu0 %4204, %v5612_v33  }
 0x428   : > { %4203 = vset.pattern.permute.xlu1 %v7526_v28 }
 0x429   : > { %1304 = vperm.xlu1 %4203, %v5642_v39   ;;  %4206 = vset.pattern.permute.xlu0 %v7522_v44 }
 0x42a   : > { %3897 = vmatmul.mubr.msk.bf16.gmra.mrb[12].mxu0 %vm1181_vm3, %v4281_v42  ;;  %1505 = vperm.xlu0 %4206, %v5612_v33  }
 0x42b   : > { %3238 = vmatprep.mubr.bf16.mxu0 %v7528_v23 }
 0x42d   : > { %1308 = vperm.xlu1 %4203, %v5653_v41  }
 0x42e   : > { %1513 = vperm.xlu0 %4206, %v5607_v31  }
 0x431   : > { %1312 = vperm.xlu1 %4203, %v5650_v40  }
 0x432   : > { %1517 = vperm.xlu0 %4206, %v5621_v35  }
 0x435   : > { %4205 = vset.pattern.permute.xlu1 %v7524_v43 }
 0x436   : > { %1461 = vperm.xlu1 %4205, %v5615_v34   ;;  %1521 = vperm.xlu0 %4206, %v5624_v36  }
 0x43a   : > { %1465 = vperm.xlu1 %4205, %v5607_v31   ;;  %1525 = vperm.xlu0 %4206, %v5642_v39  }
 0x43e   : > { %4207 = vset.pattern.permute.xlu1 %v7522_v44  ;;  %1529 = vperm.xlu0 %4206, %v5653_v41  }
 0x43f   : > { %1509 = vperm.xlu1 %4207, %v5615_v34  }
 0x442   : > { %4210 = vset.pattern.permute.xlu0 %v7520_v45 }
 0x443   : > { %4208 = vset.pattern.permute.xlu1 %v7524_v43  ;;  %1569 = vperm.xlu0 %4210, %v5612_v33  }
 0x444   : > { %1469 = vperm.xlu1 %4208, %v5621_v35  }
 0x447   : > { %4212 = vset.pattern.permute.xlu0 %v7518_v46 }
 0x448   : > { %1473 = vperm.xlu1 %4208, %v5624_v36   ;;  %1617 = vperm.xlu0 %4212, %v5612_v33  }
 0x44c   : > { %1477 = vperm.xlu1 %4208, %v5642_v39   ;;  %1633 = vperm.xlu0 %4212, %v5624_v36  }
 0x450   : > { %1481 = vperm.xlu1 %4208, %v5653_v41   ;;  %1641 = vperm.xlu0 %4212, %v5653_v41  }
 0x454   : > { %1485 = vperm.xlu1 %4208, %v5650_v40   ;;  %4228 = vset.pattern.permute.xlu0 %v7516_v47 }
 0x455   : > { %1831 = vperm.xlu0 %4228, %v5615_v34  }
 0x458   : > { %4209 = vset.pattern.permute.xlu1 %v7522_v44 }
 0x459   : > { %1533 = vperm.xlu1 %4209, %v5650_v40   ;;  %1843 = vperm.xlu0 %4228, %v5624_v36  }
 0x45d   : > { %4211 = vset.pattern.permute.xlu1 %v7520_v45  ;;  %1847 = vperm.xlu0 %4228, %v5642_v39  }
 0x45e   : > { %1573 = vperm.xlu1 %4211, %v5615_v34  }
 0x461   : > { %1851 = vperm.xlu0 %4228, %v5653_v41  }
 0x462   : > { %1577 = vperm.xlu1 %4211, %v5607_v31  }
 0x465   : > { %4231 = vset.pattern.permute.xlu0 %v7514_v48 }
 0x466   : > { %4213 = vset.pattern.permute.xlu1 %v7518_v46  ;;  %1911 = vperm.xlu0 %4231, %v5615_v34  }
 0x467   : > { %1621 = vperm.xlu1 %4213, %v5615_v34  }
 0x46a   : > { %1927 = vperm.xlu0 %4231, %v5642_v39  }
 0x46b   : > { %4214 = vset.pattern.permute.xlu1 %v7528_v23 }
 0x46c   : > { %1714 = vperm.xlu1 %4214, %v5612_v33  }
 0x46e   : > { %1931 = vperm.xlu0 %4231, %v5653_v41  }
 0x470   : > { %4215 = vset.pattern.permute.xlu1 %v7520_v45 }
 0x471   : > { %1581 = vperm.xlu1 %4215, %v5621_v35  }
 0x472   : > { %4234 = vset.pattern.permute.xlu0 %v7528_v23 }
 0x473   : > { %1718 = vperm.xlu0 %4234, %v5615_v34  }
 0x475   : > { %4216 = vset.pattern.permute.xlu1 %v7518_v46 }
 0x476   : > { %1625 = vperm.xlu1 %4216, %v5607_v31  }
 0x477   : > { %1722 = vperm.xlu0 %4234, %v5607_v31  }
 0x47a   : > { %4217 = vset.pattern.permute.xlu1 %v7516_v47 }
 0x47b   : > { %1827 = vperm.xlu1 %4217, %v5612_v33   ;;  %1726 = vperm.xlu0 %4234, %v5621_v35  }
 0x47f   : > { %4218 = vset.pattern.permute.xlu1 %v7520_v45  ;;  %1730 = vperm.xlu0 %4234, %v5624_v36  }
 0x480   : > { %1585 = vperm.xlu1 %4218, %v5624_v36  }
 0x483   : > { %1734 = vperm.xlu0 %4234, %v5642_v39  }
 0x484   : > { %4219 = vset.pattern.permute.xlu1 %v7518_v46 }
 0x485   : > { %1629 = vperm.xlu1 %4219, %v5621_v35  }
 0x487   : > { %1738 = vperm.xlu0 %4234, %v5653_v41   ;;  %v1134_v49 = vpop.permute.xlu1 %1133 }
 0x488   : > { %v1289_v51 = vpop.permute.xlu0 %1288 }
 0x489   : > { %4220 = vset.pattern.permute.xlu1 %v7516_v47 }
 0x48a   : > { %1835 = vperm.xlu1 %4220, %v5607_v31  }
 0x48b   : > { %1742 = vperm.xlu0 %4234, %v5650_v40  }
 0x48c   : > { %v1285_v50 = vpop.permute.xlu1 %1284  ;;  %v5753_v53 = vpop.permute.xlu0 %1300 }
 0x48e   : > { %4221 = vset.pattern.permute.xlu1 %v7520_v45 }
 0x48f   : > { %1589 = vperm.xlu1 %4221, %v5642_v39  }
 0x491   : > { %v1139_v52 = vpop.permute.xlu1 %1138 }
 0x492   : > { %v1124_v55 = vpop.permute.xlu0 %1123 }
 0x493   : > { %4222 = vset.pattern.permute.xlu1 %v7516_v47 }
 0x494   : > { %1839 = vperm.xlu1 %4222, %v5621_v35  }
 0x496   : > { %v1293_v54 = vpop.permute.xlu1 %1292  ;;  %v1129_v58 = vpop.permute.xlu0 %1128 }
 0x498   : > { %4223 = vset.pattern.permute.xlu1 %v7514_v48 }
 0x499   : > { %1907 = vperm.xlu1 %4223, %v5612_v33  }
 0x49a   : > { %v1297_v56 = vpop.permute.xlu1 %1296 }
 0x49b   : > { %v1144_v37 = vpop.permute.xlu0 %1143 }
 0x49d   : > { %4224 = vset.pattern.permute.xlu1 %v7520_v45 }
 0x49e   : > { %1593 = vperm.xlu1 %4224, %v5653_v41  }
 0x49f   : > { %v1149_v61 = vpop.permute.xlu1 %1148 }
 0x4a2   : > { %4225 = vset.pattern.permute.xlu1 %v7518_v46 }
 0x4a3   : > { %1637 = vperm.xlu1 %4225, %v5642_v39   ;;  %v1154_v11 = vpop.permute.xlu1 %1153 }
 0x4a7   : > { %4226 = vset.pattern.permute.xlu1 %v7514_v48 }
 0x4a8   : > { %1915 = vperm.xlu1 %4226, %v5607_v31   ;;  %v1305_v31 = vpop.permute.xlu1 %1304 }
 0x4ac   : > { %4227 = vset.pattern.permute.xlu1 %v7520_v45 }
 0x4ad   : > { %1597 = vperm.xlu1 %4227, %v5650_v40  }
 0x4b1   : > { %4229 = vset.pattern.permute.xlu1 %v7514_v48 }
 0x4b2   : > { %1919 = vperm.xlu1 %4229, %v5621_v35  }
 0x4b6   : > { %4230 = vset.pattern.permute.xlu1 %v7518_v46 }
 0x4b7   : > { %1645 = vperm.xlu1 %4230, %v5650_v40  }
 0x4bb   : > { %4232 = vset.pattern.permute.xlu1 %v7514_v48 }
 0x4bc   : > { %1923 = vperm.xlu1 %4232, %v5624_v36  }
 0x4c0   : > { %4233 = vset.pattern.permute.xlu1 %v7516_v47 }
 0x4c1   : > { %1855 = vperm.xlu1 %4233, %v5650_v40  }
 0x4c5   : > { %4235 = vset.pattern.permute.xlu1 %v7514_v48 }
 0x4c6   : > { %1935 = vperm.xlu1 %4235, %v5650_v40  }
 0x4ca   : > { %4236 = vset.pattern.permute.xlu1 %v7528_v23 }
 0x4e5   : > { %v1228_v57 = vpop.f32.mrb[0].mxu0 }
 0x4e6   : > { %v1229_v59 = vadd.f32 %v1228_v57, %v1124_v55  ;;  %v1230_v60 = vpop.f32.mrb[1].mxu0 }
 0x4e7   : > { %v1231_v62 = vadd.f32 %v1230_v60, %v1124_v55  ;;  %v1232_v63 = vpop.f32.mrb[2].mxu0 }
 0x4e8   : > { %v1315_v0 = vmul.f32 %v1285_v50, %v1229_v59  ;;  %v1233_v2 = vadd.f32 %v1232_v63, %v1129_v58  ;;  %v1234_v4 = vpop.f32.mrb[3].mxu0  ;;  %vm1267_vm4 = vcmp.ge.f32.partialorder %v1229_v59, 0.0 }
 0x4e9   : > { %v1316_v5 = vmul.f32 %v1285_v50, %v1231_v62  ;;  %v1235_v7 = vadd.f32 %v1234_v4, %v1129_v58  ;;  %vm1268_vm5 = vcmp.ge.f32.partialorder %v1231_v62, 0.0 }
 0x4ea   : > { %vm1269_vm6 = vcmp.ge.f32.partialorder %v1233_v2, 0.0  ;;  %v1317_v8 = vmul.f32 %v1289_v51, %v1233_v2  ;;  %v5755_v6 = vsel %vm1267_vm4, %v1229_v59, %v1315_v0 }
 0x4eb   : > { %vm1270_vm7 = vcmp.ge.f32.partialorder %v1235_v7, 0.0  ;;  %v1318_v9 = vmul.f32 %v1289_v51, %v1235_v7  ;;  %v5759_v12 = vsel %vm1268_vm5, %v1231_v62, %v1316_v5  ;;  %vm1696_vm5 = vcmp.lt.s32.totalorder %v5578_v1, 1 }
 0x4ec   : > { %v5757_v10 = vsel %vm1269_vm6, %v1233_v2, %v1317_v8  ;;  %vm1809_vm6 = vcmp.lt.s32.totalorder %v5578_v1, 127 }
 0x4ed   : > { %v1347_v13 = vadd.f32 %v5757_v10, %v5755_v6  ;;  %v5763_v14 = vsel %vm1270_vm7, %v1235_v7, %v1318_v9  ;;  %v1238_v15 = vpop.f32.mrb[4].mxu0  ;;  %v1159_v9 = vpop.permute.xlu0 %1158 }
 0x4ee   : > { %v1360_v16 = vadd.f32 %v5763_v14, %v5759_v12  ;;  %v1239_v17 = vadd.f32 %v1238_v15, %v1134_v49  ;;  %v1240_v18 = vpop.f32.mrb[5].mxu0 }
 0x4ef   : > { %v1241_v19 = vadd.f32 %v1240_v18, %v1134_v49  ;;  %v1242_v20 = vpop.f32.mrb[6].mxu0 }
 0x4f0   : > { %vm1271_vm8 = vcmp.ge.f32.partialorder %v1239_v17, 0.0  ;;  %v1319_v21 = vmul.f32 %v1293_v54, %v1239_v17  ;;  %v1243_v22 = vadd.f32 %v1242_v20, %v1139_v52  ;;  %v1244_v24 = vpop.f32.mrb[7].mxu0 }
 0x4f1   : > { %vm1272_vm9 = vcmp.ge.f32.partialorder %v1241_v19, 0.0  ;;  %v1320_v26 = vmul.f32 %v1293_v54, %v1241_v19  ;;  %v1245_v27 = vadd.f32 %v1244_v24, %v1139_v52 }
 0x4f2   : > { %v5767_v29 = vsel %vm1271_vm8, %v1239_v17, %v1319_v21  ;;  %vm1273_vm10 = vcmp.ge.f32.partialorder %v1243_v22, 0.0  ;;  %v1321_v30 = vmul.f32 %v1297_v56, %v1243_v22 }
 0x4f3   : > { %v1348_v32 = vadd.f32 %v1347_v13, %v5767_v29  ;;  %v5770_v33 = vsel %vm1272_vm9, %v1241_v19, %v1320_v26  ;;  %vm1274_vm11 = vcmp.ge.f32.partialorder %v1245_v27, 0.0  ;;  %v1322_v34 = vmul.f32 %v1297_v56, %v1245_v27  ;;  %v1309_v56 = vpop.permute.xlu1 %1308 }
 0x4f4   : > { %v1361_v35 = vadd.f32 %v1360_v16, %v5770_v33  ;;  %v5773_v36 = vsel %vm1273_vm10, %v1243_v22, %v1321_v30 }
 0x4f5   : > { %v1349_v38 = vadd.f32 %v1348_v32, %v5773_v36  ;;  %v5776_v39 = vsel %vm1274_vm11, %v1245_v27, %v1322_v34  ;;  %v1248_v40 = vpop.f32.mrb[8].mxu0 }
 0x4f6   : > { %v1362_v41 = vadd.f32 %v1361_v35, %v5776_v39  ;;  %v1249_v42 = vadd.f32 %v1248_v40, %v1144_v37  ;;  %v1250_v49 = vpop.f32.mrb[9].mxu0 }
 0x4f7   : > { %v1251_v50 = vadd.f32 %v1250_v49, %v1144_v37  ;;  %v1252_v51 = vpop.f32.mrb[10].mxu0  ;;  %v1313_v15 = vpop.permute.xlu1 %1312 }
 0x4f8   : > { %vm1275_vm12 = vcmp.ge.f32.partialorder %v1249_v42, 0.0  ;;  %v1323_v52 = vmul.f32 %v5753_v53, %v1249_v42  ;;  %v1253_v54 = vadd.f32 %v1252_v51, %v1149_v61  ;;  %v1254_v55 = vpop.f32.mrb[11].mxu0 }
 0x4f9   : > { %vm1276_vm13 = vcmp.ge.f32.partialorder %v1251_v50, 0.0  ;;  %v1324_v57 = vmul.f32 %v5753_v53, %v1251_v50  ;;  %v1255_v58 = vadd.f32 %v1254_v55, %v1149_v61 }
 0x4fa   : > { %v1339_v59 = vsel %vm1275_vm12, %v1249_v42, %v1323_v52  ;;  %vm1277_vm14 = vcmp.ge.f32.partialorder %v1253_v54, 0.0  ;;  %v1325_v60 = vmul.f32 %v1305_v31, %v1253_v54 }
 0x4fb   : > { %v1350_v62 = vadd.f32 %v1349_v38, %v1339_v59  ;;  %v5781_v63 = vsel %vm1276_vm13, %v1251_v50, %v1324_v57  ;;  %vm1278_vm15 = vcmp.ge.f32.partialorder %v1255_v58, 0.0  ;;  %v1326_v0 = vmul.f32 %v1305_v31, %v1255_v58  ;;  %v5787_v35 = vpop.permute.xlu1 %1461 }
 0x4fc   : > { %v1363_v2 = vadd.f32 %v1362_v41, %v5781_v63  ;;  %v1341_v4 = vsel %vm1277_vm14, %v1253_v54, %v1325_v60 }
 0x4fd   : > { %v1351_v5 = vadd.f32 %v1350_v62, %v1341_v4  ;;  %v5784_v7 = vsel %vm1278_vm15, %v1255_v58, %v1326_v0  ;;  %v1258_v8 = vpop.f32.mrb[12].mxu0 }
 0x4fe   : > { %v1364_v13 = vadd.f32 %v1363_v2, %v5784_v7  ;;  %v1259_v53 = vadd.f32 %v1258_v8, %v1154_v11  ;;  %v1260_v61 = vpop.f32.mrb[13].mxu0 }
 0x4ff   : > { %v1261_v16 = vadd.f32 %v1260_v61, %v1154_v11  ;;  %v1262_v17 = vpop.f32.mrb[14].mxu0  ;;  %v5789_v50 = vpop.permute.xlu1 %1465 }
 0x500   : > { %vm1279_vm0 = vcmp.ge.f32.partialorder %v1259_v53, 0.0  ;;  %v1327_v18 = vmul.f32 %v1309_v56, %v1259_v53  ;;  %v1263_v19 = vadd.f32 %v1262_v17, %v1159_v9  ;;  %v1264_v20 = vpop.f32.mrb[15].mxu0 }
 0x501   : > { %vm1280_vm1 = vcmp.ge.f32.partialorder %v1261_v16, 0.0  ;;  %v1328_v21 = vmul.f32 %v1309_v56, %v1261_v16  ;;  %v1265_v22 = vadd.f32 %v1264_v20, %v1159_v9 }
 0x502   : > { %v1343_v24 = vsel %vm1279_vm0, %v1259_v53, %v1327_v18  ;;  %vm1281_vm2 = vcmp.ge.f32.partialorder %v1263_v19, 0.0  ;;  %v1329_v26 = vmul.f32 %v1313_v15, %v1263_v19 }
 0x503   : > { %v1352_v27 = vadd.f32 %v1351_v5, %v1343_v24  ;;  %v1344_v30 = vsel %vm1280_vm1, %v1261_v16, %v1328_v21  ;;  %vm1282_vm4 = vcmp.ge.f32.partialorder %v1265_v22, 0.0  ;;  %v1330_v31 = vmul.f32 %v1313_v15, %v1265_v22  ;;  %v5791_v58 = vpop.permute.xlu1 %1509 }
 0x504   : > { %v1365_v32 = vadd.f32 %v1364_v13, %v1344_v30  ;;  %v1345_v34 = vsel %vm1281_vm2, %v1263_v19, %v1329_v26 }
 0x505   : > { %v1353_v11 = vadd.f32 %v1352_v27, %v1345_v34  ;;  %v1346_v37 = vsel %vm1282_vm4, %v1265_v22, %v1330_v31 }
 0x506   : > { %v1366_v38 = vadd.f32 %v1365_v32, %v1346_v37 }
 0x507   : > { %v1354_v40 = vrot.slane %v1353_v11, 4  ;;  %v5813_v17 = vpop.permute.xlu1 %1469 }
 0x508   : > { %v1367_v41 = vrot.slane %v1366_v38, 4 }
 0x509   : > { %v1355_v42 = vadd.f32 %v1354_v40, %v1353_v11 }
 0x50a   : > { %v1368_v49 = vadd.f32 %v1367_v41, %v1366_v38 }
 0x50b   : > { %v1356_v51 = vrot.slane %v1355_v42, 2  ;;  %v5849_v27 = vpop.permute.xlu1 %1473 }
 0x50c   : > { %v1369_v52 = vrot.slane %v1368_v49, 2 }
 0x50d   : > { %v1357_v54 = vadd.f32 %v1356_v51, %v1355_v42 }
 0x50e   : > { %v1370_v55 = vadd.f32 %v1369_v52, %v1368_v49 }
 0x50f   : > { %v1358_v56 = vrot.slane %v1357_v54, 1  ;;  %v5863_v42 = vpop.permute.xlu1 %1477 }
 0x510   : > { %v1371_v57 = vrot.slane %v1370_v55, 1 }
 0x511   : > { %v1359_v60 = vadd.f32 %v1358_v56, %v1357_v54 }
 0x512   : > { %v1372_v62 = vadd.f32 %v1371_v57, %v1370_v55 }
 0x513   : > { %v1374_v0 = vmul.f32 0.015625, %v1359_v60 }
 0x514   : > { %v1375_v2 = vmul.f32 0.015625, %v1372_v62 }
 0x515   : > { %v5794_v5 = vsub.f32 %v5755_v6, %v1374_v0  ;;  %v5797_v8 = vsub.f32 %v5757_v10, %v1374_v0  ;;  %v5800_v9 = vsub.f32 %v5767_v29, %v1374_v0  ;;  %v5803_v13 = vsub.f32 %v5773_v36, %v1374_v0 }
 0x516   : > { %v5805_v53 = vsub.f32 %v1339_v59, %v1374_v0  ;;  %v5807_v61 = vsub.f32 %v1341_v4, %v1374_v0  ;;  %v5809_v15 = vsub.f32 %v1343_v24, %v1374_v0  ;;  %v5811_v16 = vsub.f32 %v1345_v34, %v1374_v0 }
 0x517   : > { %v1392_v6 = vmul.f32 %v5794_v5, %v5794_v5  ;;  %v1394_v10 = vmul.f32 %v5797_v8, %v5797_v8  ;;  %v1396_v29 = vmul.f32 %v5800_v9, %v5800_v9  ;;  %v1398_v36 = vmul.f32 %v5803_v13, %v5803_v13 }
 0x518   : > { %v5824_v4 = vsub.f32 %v5759_v12, %v1375_v2  ;;  %v5827_v18 = vsub.f32 %v5763_v14, %v1375_v2  ;;  %v5830_v19 = vsub.f32 %v5770_v33, %v1375_v2  ;;  %v5833_v20 = vsub.f32 %v5776_v39, %v1375_v2 }
 0x519   : > { %v1408_v59 = vadd.f32 %v1394_v10, %v1392_v6  ;;  %v5836_v21 = vsub.f32 %v5781_v63, %v1375_v2  ;;  %v5839_v22 = vsub.f32 %v5784_v7, %v1375_v2  ;;  %v5841_v24 = vsub.f32 %v1344_v30, %v1375_v2 }
 0x51a   : > { %v5843_v12 = vsub.f32 %v1346_v37, %v1375_v2  ;;  %v1393_v14 = vmul.f32 %v5824_v4, %v5824_v4  ;;  %v1395_v33 = vmul.f32 %v5827_v18, %v5827_v18  ;;  %v1400_v39 = vmul.f32 %v5805_v53, %v5805_v53  ;;  %v5873_v2 = vpop.permute.xlu1 %1481 }
 0x51b   : > { %v1409_v26 = vadd.f32 %v1408_v59, %v1396_v29  ;;  %v1397_v7 = vmul.f32 %v5830_v19, %v5830_v19  ;;  %v1402_v31 = vmul.f32 %v5807_v61, %v5807_v61  ;;  %v1399_v34 = vmul.f32 %v5833_v20, %v5833_v20 }
 0x51c   : > { %v1421_v30 = vadd.f32 %v1395_v33, %v1393_v14  ;;  %v1404_v37 = vmul.f32 %v5809_v15, %v5809_v15  ;;  %v1401_v40 = vmul.f32 %v5836_v21, %v5836_v21  ;;  %v1406_v49 = vmul.f32 %v5811_v16, %v5811_v16 }
 0x51d   : > { %v1410_v63 = vadd.f32 %v1409_v26, %v1398_v36  ;;  %v1403_v52 = vmul.f32 %v5839_v22, %v5839_v22  ;;  %v1405_v56 = vmul.f32 %v5841_v24, %v5841_v24  ;;  %v1407_v62 = vmul.f32 %v5843_v12, %v5843_v12 }
 0x51e   : > { %v1422_v11 = vadd.f32 %v1421_v30, %v1397_v7  ;;  %v5875_v14 = vpop.permute.xlu1 %1485 }
 0x51f   : > { %v1411_v32 = vadd.f32 %v1410_v63, %v1400_v39 }
 0x520   : > { %v1423_v41 = vadd.f32 %v1422_v11, %v1399_v34 }
 0x521   : > { %v1412_v38 = vadd.f32 %v1411_v32, %v1402_v31 }
 0x522   : > { %v1424_v54 = vadd.f32 %v1423_v41, %v1401_v40  ;;  %v5877_v32 = vpop.permute.xlu1 %1533  ;;  %v1458_v40 = vpop.permute.xlu0 %1457 }
 0x523   : > { %v1413_v51 = vadd.f32 %v1412_v38, %v1404_v37 }
 0x524   : > { %v1425_v57 = vadd.f32 %v1424_v54, %v1403_v52 }
 0x525   : > { %v1414_v55 = vadd.f32 %v1413_v51, %v1406_v49 }
 0x526   : > { %v1426_v0 = vadd.f32 %v1425_v57, %v1405_v56  ;;  %v5879_v41 = vpop.permute.xlu1 %1573  ;;  %v1506_v49 = vpop.permute.xlu0 %1505 }
 0x527   : > { %v1415_v60 = vrot.slane %v1414_v55, 4 }
 0x528   : > { %v1427_v10 = vadd.f32 %v1426_v0, %v1407_v62 }
 0x529   : > { %v1416_v6 = vadd.f32 %v1415_v60, %v1414_v55 }
 0x52a   : > { %v1428_v36 = vrot.slane %v1427_v10, 4  ;;  %v5881_v52 = vpop.permute.xlu1 %1577 }
 0x52b   : > { %v1417_v29 = vrot.slane %v1416_v6, 2 }
 0x52c   : > { %v1429_v26 = vadd.f32 %v1428_v36, %v1427_v10 }
 0x52d   : > { %v1418_v59 = vadd.f32 %v1417_v29, %v1416_v6 }
 0x52e   : > { %v1430_v39 = vrot.slane %v1429_v26, 2 }
 0x52f   : > { %v1419_v33 = vrot.slane %v1418_v59, 1 }
 0x530   : > { %v1431_v7 = vadd.f32 %v1430_v39, %v1429_v26 }
 0x531   : > { %v1420_v63 = vadd.f32 %v1419_v33, %v1418_v59 }
 0x532   : > { %v1432_v31 = vrot.slane %v1431_v7, 1 }
 0x533   : > { %v1434_v30 = vmul.f32 0.015625, %v1420_v63 }
 0x534   : > { %v1433_v11 = vadd.f32 %v1432_v31, %v1431_v7 }
 0x535   : > { %v1436_v34 = vadd.f32 1e-05, %v1434_v30 }
 0x536   : > { %v1435_v37 = vmul.f32 0.015625, %v1433_v11 }
 0x537   : > { %4290 = vrsqrt.f32 %v1436_v34 }
 0x538   : > { %v1437_v38 = vadd.f32 1e-05, %v1435_v37 }
 0x53a   : > { %4292 = vrsqrt.f32 %v1437_v38 }
 0x541   : > { %v4291_v51 = vpop.eup %4290 }
 0x542   : > { %v5884_v54 = vmul.f32 %v4291_v51, %v5811_v16  ;;  %v1442_v55 = vmul.f32 %v4291_v51, %v5797_v8  ;;  %v1440_v56 = vmul.f32 %v4291_v51, %v5794_v5  ;;  %v1444_v57 = vmul.f32 %v4291_v51, %v5800_v9  ;;  %v5899_v9 = vpop.permute.xlu0 %1513 }
 0x543   : > { %v1446_v60 = vmul.f32 %v4291_v51, %v5803_v13  ;;  %v1448_v62 = vmul.f32 %v4291_v51, %v5805_v53  ;;  %v1450_v0 = vmul.f32 %v4291_v51, %v5807_v61  ;;  %v1452_v6 = vmul.f32 %v4291_v51, %v5809_v15  ;;  %v5901_v13 = vpop.permute.xlu1 %1621 }
 0x544   : > { %v1488_v10 = vmul.f32 %v1458_v40, %v1440_v56  ;;  %v4293_v29 = vpop.eup %4292  ;;  %v1490_v36 = vmul.f32 %v5787_v35, %v1442_v55  ;;  %v1492_v33 = vmul.f32 %v5789_v50, %v1444_v57 }
 0x545   : > { %v1455_v16 = vmul.f32 %v4293_v29, %v5843_v12  ;;  %v5896_v8 = vmul.f32 %v4293_v29, %v5827_v18  ;;  %v1441_v5 = vmul.f32 %v4293_v29, %v5824_v4  ;;  %v5904_v61 = vmul.f32 %v4293_v29, %v5830_v19 }
 0x546   : > { %v1536_v53 = vadd.f32 %v1506_v49, %v1488_v10  ;;  %v5907_v15 = vmul.f32 %v4293_v29, %v5833_v20  ;;  %v1538_v59 = vadd.f32 %v5791_v58, %v1490_v36  ;;  %v1449_v18 = vmul.f32 %v4293_v29, %v5836_v21  ;;  %v5917_v26 = vpop.permute.xlu0 %1517 }
 0x547   : > { %v1451_v4 = vmul.f32 %v4293_v29, %v5839_v22  ;;  %v5922_v20 = vpop.permute.xlu1 %1714  ;;  %v1453_v39 = vmul.f32 %v4293_v29, %v5841_v24  ;;  %v1540_v21 = vadd.f32 %v5899_v9, %v1492_v33  ;;  %v1494_v22 = vmul.f32 %v5813_v17, %v1446_v60 }
 0x548   : > { %v5911_v12 = vmul.f32 %v5581_v3, %v1536_v53  ;;  %v5920_v19 = vmul.f32 %v5581_v3, %v1538_v59  ;;  %v1496_v63 = vmul.f32 %v5849_v27, %v1448_v62  ;;  %v1498_v24 = vmul.f32 %v5863_v42, %v1450_v0 }
 0x549   : > { %v1542_v31 = vadd.f32 %v5917_v26, %v1494_v22  ;;  %v5938_v11 = vmul.f32 %v5581_v3, %v1540_v21  ;;  %v1489_v51 = vmul.f32 %v1458_v40, %v1441_v5  ;;  %v1499_v29 = vmul.f32 %v5863_v42, %v1451_v4 }
 0x54a   : > { %1664 = vrot.lane.b32.xlu1 %v5911_v12, %s4877_s14  ;;  %v1522_v7 = vpop.permute.xlu0 %1521  ;;  %v1500_v53 = vmul.f32 %v5873_v2, %v1452_v6  ;;  %v1502_v4 = vmul.f32 %v5875_v14, %v5884_v54  ;;  %v1503_v33 = vmul.f32 %v5875_v14, %v1455_v16 }
 0x54b   : > { %v5931_v30 = vpop.permute.xlu1 %1581  ;;  %v1544_v34 = vadd.f32 %v1522_v7, %v1496_v63  ;;  %1668 = vrot.lane.b32.xlu0 %v5938_v11, %s4877_s14  ;;  %v5950_v57 = vmul.f32 %v5581_v3, %v1542_v31  ;;  %v1537_v60 = vadd.f32 %v1506_v49, %v1489_v51  ;;  %v1497_v49 = vmul.f32 %v5849_v27, %v1449_v18 }
 0x54c   : > { %v1501_v63 = vmul.f32 %v5873_v2, %v1453_v39  ;;  %v1550_v14 = vadd.f32 %v5877_v32, %v1502_v4  ;;  %v1551_v16 = vadd.f32 %v5877_v32, %v1503_v33 }
 0x54d   : > { %v5947_v55 = vmul.f32 %v5581_v3, %v1544_v34  ;;  %v5965_v10 = vmul.f32 0.0, %v1537_v60  ;;  %v1545_v42 = vadd.f32 %v1522_v7, %v1497_v49  ;;  %v1491_v7 = vmul.f32 %v5787_v35, %v5896_v8 }
 0x54e   : > { %1666 = vrot.lane.b32.xlu1 %v5920_v19, %s4877_s14  ;;  %v1526_v37 = vpop.permute.xlu0 %1525  ;;  %v6012_v2 = vmul.f32 %v5581_v3, %v1550_v14  ;;  %v6014_v39 = vmul.f32 0.0, %v1551_v16  ;;  %v1493_v35 = vmul.f32 %v5789_v50, %v5904_v61  ;;  %v2168_v61 = vld [vmem:[%s5583_s4] sm:$0xff] }
 0x54f   : > { %v5944_v38 = vpop.permute.xlu1 %1625  ;;  %v1546_v56 = vadd.f32 %v1526_v37, %v1498_v24  ;;  %1672 = vrot.lane.b32.xlu0 %v5947_v55, %s4877_s14  ;;  %v1547_v5 = vadd.f32 %v1526_v37, %v1499_v29  ;;  %v5995_v22 = vmul.f32 0.0, %v1545_v42  ;;  %v1539_v32 = vadd.f32 %v5791_v58, %v1491_v7 }
 0x550   : > { %v1541_v58 = vadd.f32 %v5899_v9, %v1493_v35  ;;  %v2171_v9 = vld [vmem:[%s5583_s4 + $0x18] sm:$0xff] }
 0x551   : > { %v5957_v62 = vmul.f32 %v5581_v3, %v1546_v56  ;;  %v5985_v27 = vmul.f32 0.0, %v1547_v5  ;;  %v6035_v56 = vmul.f32 0.0, %v1539_v32 }
 0x552   : > { %1777 = vrot.lane.b32.xlu1 %v5911_v12, %s4878_s9  ;;  %v1530_v40 = vpop.permute.xlu0 %1529  ;;  %v6045_v60 = vmul.f32 0.0, %v1541_v58 }
 0x553   : > { %v5959_v0 = vpop.permute.xlu1 %1827  ;;  %1787 = vrot.lane.b32.xlu0 %v5957_v62, %s4878_s9  ;;  %v1548_v18 = vadd.f32 %v1530_v40, %v1500_v53  ;;  %v1549_v34 = vadd.f32 %v1530_v40, %v1501_v63  ;;  %v1495_v40 = vmul.f32 %v5813_v17, %v5907_v15 }
 0x555   : > { %v5999_v54 = vmul.f32 %v5581_v3, %v1548_v18  ;;  %v6025_v8 = vmul.f32 0.0, %v1549_v34  ;;  %v1543_v49 = vadd.f32 %v5917_v26, %v1495_v40 }
 0x556   : > { %1779 = vrot.lane.b32.xlu1 %v5920_v19, %s4878_s9  ;;  %v5976_v59 = vpop.permute.xlu0 %1569 }
 0x557   : > { %1680 = vrot.lane.b32.xlu0 %v5965_v10, %s4877_s14  ;;  %v5973_v36 = vpop.permute.xlu1 %1585  ;;  %v6061_v42 = vmul.f32 0.0, %v1543_v49 }
 0x55a   : > { %1670 = vrot.lane.b32.xlu1 %v5950_v57, %s4877_s14  ;;  %v5989_v6 = vpop.permute.xlu0 %1617 }
 0x55b   : > { %1793 = vrot.lane.b32.xlu0 %v5965_v10, %s4878_s9  ;;  %v5987_v21 = vpop.permute.xlu1 %1629 }
 0x55e   : > { %1781 = vrot.lane.b32.xlu1 %v5938_v11, %s4878_s9  ;;  %v6016_v24 = vpop.permute.xlu0 %1633 }
 0x55f   : > { %1690 = vrot.lane.b32.xlu0 %v5985_v27, %s4877_s14  ;;  %v6009_v31 = vpop.permute.xlu1 %1835 }
 0x562   : > { %1783 = vrot.lane.b32.xlu1 %v5950_v57, %s4878_s9  ;;  %v6029_v51 = vpop.permute.xlu0 %1641 }
 0x563   : > { %1801 = vrot.lane.b32.xlu0 %v5995_v22, %s4878_s9  ;;  %v6027_v37 = vpop.permute.xlu1 %1589 }
 0x566   : > { %1674 = vrot.lane.b32.xlu1 %v5957_v62, %s4877_s14  ;;  %v6042_v50 = vpop.permute.xlu0 %1831 }
 0x567   : > { %1694 = vrot.lane.b32.xlu0 %v6014_v39, %s4877_s14  ;;  %v6049_v29 = vpop.permute.xlu1 %1839 }
 0x568   : > { %7667 = vst [vmem:[#allocation51_spill] sm:$0xff] %v6049_v29 }
 0x56a   : > { %1785 = vrot.lane.b32.xlu1 %v5947_v55, %s4878_s9  ;;  %v6055_v5 = vpop.permute.xlu0 %1843 }
 0x56b   : > { %1805 = vrot.lane.b32.xlu0 %v6025_v8, %s4878_s9  ;;  %v6057_v53 = vpop.permute.xlu1 %1907 }
 0x56e   : > { %1676 = vrot.lane.b32.xlu1 %v5999_v54, %s4877_s14  ;;  %v6065_v17 = vpop.permute.xlu0 %1847 }
 0x56f   : > { %1791 = vrot.lane.b32.xlu0 %v6012_v2, %s4878_s9  ;;  %7668 = vst [vmem:[#allocation52_spill] sm:$0xff] %v6065_v17  ;;  %v6068_v15 = vpop.permute.xlu1 %1593 }
 0x572   : > { %1678 = vrot.lane.b32.xlu1 %v6012_v2, %s4877_s14  ;;  %v6072_v26 = vpop.permute.xlu0 %1851 }
 0x573   : > { %2174 = vperm.xlu0 %4234, %v2168_v61   ;;  %7669 = vst [vmem:[#allocation53_spill] sm:$0xff] %v6072_v26  ;;  %v6074_v4 = vpop.permute.xlu1 %1637  ;;  %v1602_v26 = vmul.f32 %v5879_v41, %v5920_v19  ;;  %v1603_v19 = vmul.f32 %v5879_v41, %v6035_v56  ;;  %v1611_v41 = vmul.f32 %v6027_v37, %v5985_v27 }
 0x576   : > { %1789 = vrot.lane.b32.xlu1 %v5999_v54, %s4878_s9  ;;  %v6080_v33 = vpop.permute.xlu0 %1911 }
 0x577   : > { %2189 = vperm.xlu0 %4234, %v2171_v9   ;;  %v6082_v18 = vpop.permute.xlu1 %1915 }
 0x578   : > { %7670 = vst [vmem:[#allocation54_spill] sm:$0xff] %v6082_v18 }
 0x57a   : > { %1682 = vrot.lane.b32.xlu1 %v6035_v56, %s4877_s14  ;;  %v6086_v63 = vpop.permute.xlu0 %1927 }
 0x57b   : > { %4239 = vset.pattern.permute.xlu0 %v7526_v28  ;;  %7671 = vst [vmem:[#allocation55_spill] sm:$0xff] %v6086_v63  ;;  %v6088_v14 = vpop.permute.xlu1 %1597 }
 0x57e   : > { %1684 = vrot.lane.b32.xlu1 %v6045_v60, %s4877_s14  ;;  %v6092_v16 = vpop.permute.xlu0 %1931 }
 0x57f   : > { %7672 = vst [vmem:[#allocation56_spill] sm:$0xff] %v6092_v16  ;;  %v6096_v7 = vpop.permute.xlu1 %1919 }
 0x580   : > { %7673 = vst [vmem:[#allocation57_spill] sm:$0xff] %v6096_v7 }
 0x582   : > { %1795 = vrot.lane.b32.xlu1 %v6035_v56, %s4878_s9  ;;  %v6098_v34 = vpop.permute.xlu0 %1718  ;;  %v1608_v56 = vmul.f32 %v5973_v36, %v5947_v55  ;;  %v1651_v55 = vadd.f32 %v5901_v13, %v1603_v19 }
 0x583   : > { %v6100_v32 = vpop.permute.xlu1 %1645 }
 0x584   : > { %7674 = vst [vmem:[#allocation58_spill] sm:$0xff] %v6100_v32 }
 0x586   : > { %1686 = vrot.lane.b32.xlu1 %v6061_v42, %s4877_s14  ;;  %v6102_v35 = vpop.permute.xlu0 %1722 }
 0x587   : > { %v6104_v58 = vpop.permute.xlu1 %1923 }
 0x588   : > { %7675 = vst [vmem:[#allocation59_spill] sm:$0xff] %v6104_v58 }
 0x58a   : > { %1797 = vrot.lane.b32.xlu1 %v6045_v60, %s4878_s9  ;;  %v6106_v61 = vpop.permute.xlu0 %1726 }
 0x58b   : > { %v6108_v40 = vpop.permute.xlu1 %1855 }
 0x58c   : > { %7676 = vst [vmem:[#allocation60_spill] sm:$0xff] %v6108_v40 }
 0x58e   : > { %1688 = vrot.lane.b32.xlu1 %v5995_v22, %s4877_s14  ;;  %v6110_v9 = vpop.permute.xlu0 %1730 }
 0x58f   : > { %7677 = vst [vmem:[#allocation61_spill] sm:$0xff] %v6110_v9  ;;  %v6112_v49 = vpop.permute.xlu1 %1935 }
 0x590   : > { %7678 = vst [vmem:[#allocation62_spill] sm:$0xff] %v6112_v49 }
 0x592   : > { %1799 = vrot.lane.b32.xlu1 %v6061_v42, %s4878_s9  ;;  %v6114_v48 = vpop.permute.xlu0 %1734 }
 0x596   : > { %1692 = vrot.lane.b32.xlu1 %v6025_v8, %s4877_s14  ;;  %v6116_v45 = vpop.permute.xlu0 %1738 }
 0x597   : > { %7679 = vst [vmem:[#allocation63_spill] sm:$0xff] %v6116_v45 }
 0x59a   : > { %1803 = vrot.lane.b32.xlu1 %v5985_v27, %s4878_s9  ;;  %v6118_v43 = vpop.permute.xlu0 %1742 }
 0x59b   : > { %7680 = vst [vmem:[#allocation64_spill] sm:$0xff] %v6118_v43 }
 0x59e   : > { %1807 = vrot.lane.b32.xlu1 %v6014_v39, %s4878_s9 }
 0x5bc   : > { %v1665_v47 = vpop.permute.xlu1 %1664 }
 0x5bd   : > { %v6124_v25 = vpop.permute.xlu0 %1668 }
 0x5c0   : > { %v1667_v46 = vpop.permute.xlu1 %1666 }
 0x5c1   : > { %v6128_v40 = vpop.permute.xlu0 %1672 }
 0x5c2   : > { %7681 = vst [vmem:[#allocation65_spill] sm:$0xff] %v6128_v40  ;;  %v1650_v40 = vadd.f32 %v5901_v13, %v1602_v26 }
 0x5c4   : > { %v1778_v44 = vpop.permute.xlu1 %1777 }
 0x5c5   : > { %v6132_v16 = vpop.permute.xlu0 %1787 }
 0x5c6   : > { %7683 = vst [vmem:[#allocation67_spill] sm:$0xff] %v6132_v16  ;;  %v1601_v16 = vmul.f32 %v5976_v59, %v5965_v10  ;;  %v1605_v10 = vmul.f32 %v5881_v52, %v6045_v60 }
 0x5c8   : > { %v6120_v28 = vpop.permute.xlu1 %1779 }
 0x5c9   : > { %v1681_v17 = vpop.permute.xlu0 %1680 }
 0x5ca   : > { %v1697_v43 = vsel %vm1696_vm5, %v1665_v47, %v1681_v17  ;;  %v1705_v9 = vsel %vm1696_vm5, %v1681_v17, %v1665_v47  ;;  %v1609_v17 = vmul.f32 %v5973_v36, %v5995_v22  ;;  %v1604_v36 = vmul.f32 %v5881_v52, %v5938_v11 }
 0x5cb   : > { %v1746_v18 = vmul.f32 %v5922_v20, %v1697_v43  ;;  %v1607_v43 = vmul.f32 %v5931_v30, %v6061_v42  ;;  %v1745_v60 = vmul.f32 %v5922_v20, %v1705_v9  ;;  %v1613_v42 = vmul.f32 %v6068_v15, %v6025_v8 }
 0x5cc   : > { %v6122_v23 = vpop.permute.xlu1 %1670  ;;  %v6194_v8 = vadd.f32 %v6074_v4, %v1611_v41  ;;  %v6208_v52 = vadd.f32 %v6016_v24, %v1609_v17  ;;  %v2169_v41 = vld [vmem:[%s5583_s4 + $0x8] sm:$0xff] }
 0x5cd   : > { %v1794_v58 = vpop.permute.xlu0 %1793  ;;  %2179 = vperm.xlu1 %4236, %v2169_v41  }
 0x5d0   : > { %v6126_v3 = vpop.permute.xlu1 %1781 }
 0x5d4   : > { %v6130_v49 = vpop.permute.xlu1 %1783 }
 0x5d5   : > { %7682 = vst [vmem:[#allocation66_spill] sm:$0xff] %v6130_v49  ;;  %v1600_v49 = vmul.f32 %v5976_v59, %v5911_v12  ;;  %v1810_v12 = vsel %vm1809_vm6, %v1778_v44, %v1794_v58 }
 0x5d6   : > { %v1858_v26 = vmul.f32 %v5959_v0, %v1810_v12  ;;  %v1653_v12 = vadd.f32 %v5944_v38, %v1605_v10 }
 0x5d8   : > { %v1675_v63 = vpop.permute.xlu1 %1674 }
 0x5dc   : > { %v6134_v32 = vpop.permute.xlu1 %1785 }
 0x5e0   : > { %v6136_v45 = vpop.permute.xlu1 %1676 }
 0x5e1   : > { %7684 = vst [vmem:[#allocation68_spill] sm:$0xff] %v6136_v45  ;;  %v1818_v45 = vsel %vm1809_vm6, %v1794_v58, %v1778_v44  ;;  %v1612_v44 = vmul.f32 %v6068_v15, %v5999_v54  ;;  %v1691_v54 = vpop.permute.xlu0 %1690 }
 0x5e2   : > { %v1859_v47 = vmul.f32 %v5959_v0, %v1818_v45  ;;  %v6198_v0 = vmul.f32 %v6088_v14, %v6012_v2  ;;  %v6216_v2 = vadd.f32 %v6029_v51, %v1613_v42 }
 0x5e4   : > { %v6139_v7 = vpop.permute.xlu1 %1678 }
 0x5e5   : > { %7685 = vst [vmem:[#allocation69_spill] sm:$0xff] %v6139_v7  ;;  %v1649_v7 = vadd.f32 %v5989_v6, %v1601_v16 }
 0x5e7   : > { %v1762_v45 = vadd.f32 %v1746_v18, %v1649_v7  ;;  %v1606_v18 = vmul.f32 %v5931_v30, %v5950_v57 }
 0x5e8   : > { %v6148_v29 = vpop.permute.xlu1 %1789 }
 0x5e9   : > { %7686 = vst [vmem:[#allocation70_spill] sm:$0xff] %v6148_v29  ;;  %v1610_v29 = vmul.f32 %v6027_v37, %v5957_v62  ;;  %v1648_v62 = vadd.f32 %v5989_v6, %v1600_v49  ;;  %v1875_v22 = vadd.f32 %v1859_v47, %v1762_v45  ;;  %v1654_v10 = vadd.f32 %v5987_v21, %v1606_v18 }
 0x5eb   : > { %v6189_v6 = vadd.f32 %v6074_v4, %v1610_v29  ;;  %v1761_v13 = vadd.f32 %v1745_v60, %v1648_v62  ;;  %v6205_v29 = vmul.f32 %v6088_v14, %v6014_v39  ;;  %v6213_v4 = vadd.f32 %v6029_v51, %v1612_v44 }
 0x5ec   : > { %v1683_v59 = vpop.permute.xlu1 %1682  ;;  %v1702_v39 = vsel %vm1696_vm5, %v1675_v63, %v1691_v54  ;;  %v1652_v14 = vadd.f32 %v5944_v38, %v1604_v36  ;;  %vm1891_vm7 = vcmp.ge.f32.partialorder %v1875_v22, 0.0 }
 0x5ed   : > { %v1698_v27 = vsel %vm1696_vm5, %v1667_v46, %v1683_v59  ;;  %v1706_v20 = vsel %vm1696_vm5, %v1683_v59, %v1667_v46  ;;  %v6201_v46 = vadd.f32 %v6016_v24, %v1608_v56  ;;  %v1874_v16 = vadd.f32 %v1858_v26, %v1761_v13 }
 0x5ee   : > { %v1747_v11 = vmul.f32 %v6098_v34, %v1706_v20  ;;  %v1748_v15 = vmul.f32 %v6098_v34, %v1698_v27  ;;  %v1710_v24 = vsel %vm1696_vm5, %v1691_v54, %v1675_v63  ;;  %v1939_v34 = vmul.f32 %v6057_v53, %v1875_v22  ;;  %v1802_v63 = vpop.permute.xlu0 %1801 }
 0x5ef   : > { %v1655_v59 = vadd.f32 %v5987_v21, %v1607_v43  ;;  %vm1890_vm8 = vcmp.ge.f32.partialorder %v1874_v16, 0.0  ;;  %v1756_v38 = vmul.f32 %v6114_v48, %v1702_v39  ;;  %v2170_v43 = vld [vmem:[%s5583_s4 + $0x10] sm:$0xff]  ;;  %v1822_v45 = vsel %vm1809_vm6, %v1802_v63, %v6134_v32 }
 0x5f0   : > { %v1685_v37 = vpop.permute.xlu1 %1684  ;;  %v1763_v58 = vadd.f32 %v1747_v11, %v1650_v40  ;;  %v1764_v9 = vadd.f32 %v1748_v15, %v1651_v55  ;;  %2184 = vperm.xlu1 %4236, %v2170_v43   ;;  %v1867_v18 = vmul.f32 %v6055_v5, %v1822_v45  ;;  %v7693_v43 = vld [vmem:[#allocation66_spill] sm:$0xff] }
 0x5f1   : > { %v1707_v51 = vsel %vm1696_vm5, %v1685_v37, %v6124_v25  ;;  %v1699_v47 = vsel %vm1696_vm5, %v6124_v25, %v1685_v37  ;;  %v6249_v25 = vsel %vm1891_vm7, %v1875_v22, %v1939_v34  ;;  %v6289_v15 = vadd.f32 %v1756_v38, %v6194_v8  ;;  %v7690_v34 = vld [vmem:[#allocation54_spill] sm:$0xff] }
 0x5f2   : > { %v1749_v56 = vmul.f32 %v6102_v35, %v1707_v51  ;;  %v1750_v17 = vmul.f32 %v6102_v35, %v1699_v47  ;;  %v1695_v42 = vpop.permute.xlu0 %1694  ;;  %v7688_v51 = vld [vmem:[#allocation69_spill] sm:$0xff] }
 0x5f3   : > { %v1712_v8 = vsel %vm1696_vm5, %v1695_v42, %v7688_v51 }
 0x5f4   : > { %v1796_v7 = vpop.permute.xlu1 %1795  ;;  %v1765_v26 = vadd.f32 %v1749_v56, %v1652_v14  ;;  %v1766_v54 = vadd.f32 %v1750_v17, %v1653_v12  ;;  %v7692_v12 = vld [vmem:[#allocation61_spill] sm:$0xff] }
 0x5f5   : > { %v1811_v30 = vsel %vm1809_vm6, %v6120_v28, %v1796_v7  ;;  %v1819_v57 = vsel %vm1809_vm6, %v1796_v7, %v6120_v28  ;;  %v1938_v28 = vmul.f32 %v6057_v53, %v1874_v16  ;;  %v1814_v53 = vsel %vm1809_vm6, %v6134_v32, %v1802_v63 }
 0x5f6   : > { %v1860_v49 = vmul.f32 %v6042_v50, %v1811_v30  ;;  %v1861_v19 = vmul.f32 %v6042_v50, %v1819_v57  ;;  %v1755_v50 = vmul.f32 %v6114_v48, %v1710_v24  ;;  %v7687_v7 = vmov 4   ;;  %v7689_v30 = vld [vmem:[#allocation65_spill] sm:$0xff]  ;;  %v1806_v57 = vpop.permute.xlu0 %1805 }
 0x5f7   : > { %v6261_v21 = vsel %vm1890_vm8, %v1874_v16, %v1938_v28  ;;  %4237 = vset.pattern.permute.xlu1 %v7687_v7  ;;  %vm2100_vm8 = vcmask 523264  }
 0x5f8   : > { %v1876_v40 = vadd.f32 %v1860_v49, %v1763_v58  ;;  %v1877_v60 = vadd.f32 %v1861_v19, %v1764_v9  ;;  %v1687_v62 = vpop.permute.xlu1 %1686  ;;  %v6286_v11 = vadd.f32 %v1755_v50, %v6189_v6  ;;  %v1704_v6 = vsel %vm1696_vm5, %v7688_v51, %v1695_v42  ;;  %v7691_v9 = vld [vmem:[#allocation70_spill] sm:$0xff]  ;;  %v7695_v42 = vld [vmem:[#allocation64_spill] sm:$0xff] }
 0x5f9   : > { %v1700_v27 = vsel %vm1696_vm5, %v6122_v23, %v1687_v62  ;;  %v1708_v35 = vsel %vm1696_vm5, %v1687_v62, %v6122_v23  ;;  %v1816_v49 = vsel %vm1809_vm6, %v7691_v9, %v1806_v57  ;;  %v1824_v19 = vsel %vm1809_vm6, %v1806_v57, %v7691_v9 }
 0x5fa   : > { %vm1893_vm9 = vcmp.ge.f32.partialorder %v1877_v60, 0.0  ;;  %v1941_v44 = vmul.f32 %v6080_v33, %v1877_v60  ;;  %vm1892_vm10 = vcmp.ge.f32.partialorder %v1876_v40, 0.0  ;;  %v1940_v48 = vmul.f32 %v6080_v33, %v1876_v40 }
 0x5fb   : > { %v1751_v16 = vmul.f32 %v6106_v61, %v1708_v35  ;;  %v1752_v39 = vmul.f32 %v6106_v61, %v1700_v27  ;;  %v7696_v35 = vld [vmem:[#allocation53_spill] sm:$0xff] }
 0x5fc   : > { %v1798_v20 = vpop.permute.xlu1 %1797  ;;  %v6269_v55 = vsel %vm1893_vm9, %v1877_v60, %v1941_v44  ;;  %v6279_v22 = vsel %vm1892_vm10, %v1876_v40, %v1940_v48  ;;  %v7694_v44 = vld [vmem:[#allocation51_spill] sm:$0xff] }
 0x5fd   : > { %v1812_v33 = vsel %vm1809_vm6, %v6126_v3, %v1798_v20  ;;  %v1820_v32 = vsel %vm1809_vm6, %v1798_v20, %v6126_v3  ;;  %v1983_v36 = vadd.f32 %v6269_v55, %v6249_v25  ;;  %v1970_v13 = vadd.f32 %v6279_v22, %v6261_v21 }
 0x5fe   : > { %v1862_v23 = vmul.f32 %v6009_v31, %v1812_v33  ;;  %v1863_v37 = vmul.f32 %v6009_v31, %v1820_v32  ;;  %v1866_v3 = vmul.f32 %v6055_v5, %v1814_v53  ;;  %v1767_v41 = vadd.f32 %v1751_v16, %v1654_v10 }
 0x5ff   : > { %v1768_v56 = vadd.f32 %v1752_v39, %v1655_v59  ;;  %v1870_v20 = vmul.f32 %v7696_v35, %v1816_v49  ;;  %v1871_v33 = vmul.f32 %v7696_v35, %v1824_v19 }
 0x600   : > { %v1878_v24 = vadd.f32 %v1862_v23, %v1765_v26  ;;  %v1879_v14 = vadd.f32 %v1863_v37, %v1766_v54  ;;  %v1689_v31 = vpop.permute.xlu1 %1688  ;;  %v7697_v37 = vld [vmem:[#allocation59_spill] sm:$0xff] }
 0x601   : > { %v1701_v5 = vsel %vm1696_vm5, %v7689_v30, %v1689_v31  ;;  %v1709_v61 = vsel %vm1696_vm5, %v1689_v31, %v7689_v30 }
 0x602   : > { %vm1894_vm11 = vcmp.ge.f32.partialorder %v1878_v24, 0.0  ;;  %vm1895_vm12 = vcmp.ge.f32.partialorder %v1879_v14, 0.0  ;;  %v1942_v63 = vmul.f32 %v7690_v34, %v1878_v24  ;;  %v1943_v58 = vmul.f32 %v7690_v34, %v1879_v14  ;;  %v7701_v34 = vld [vmem:[#allocation67_spill] sm:$0xff] }
 0x603   : > { %v1753_v47 = vmul.f32 %v7692_v12, %v1709_v61  ;;  %v1754_v28 = vmul.f32 %v7692_v12, %v1701_v5 }
 0x604   : > { %v1800_v40 = vpop.permute.xlu1 %1799  ;;  %v6318_v60 = vsel %vm1895_vm12, %v1879_v14, %v1943_v58  ;;  %v6320_v62 = vsel %vm1894_vm11, %v1878_v24, %v1942_v63  ;;  %v7699_v24 = vld [vmem:[#allocation68_spill] sm:$0xff] }
 0x605   : > { %v1769_v50 = vadd.f32 %v1753_v47, %v6201_v46  ;;  %v1770_v38 = vadd.f32 %v1754_v28, %v6208_v52  ;;  %v1813_v53 = vsel %vm1809_vm6, %v7693_v43, %v1800_v40  ;;  %v1821_v17 = vsel %vm1809_vm6, %v1800_v40, %v7693_v43  ;;  %v7702_v47 = vld [vmem:[#allocation52_spill] sm:$0xff] }
 0x606   : > { %v1864_v10 = vmul.f32 %v7694_v44, %v1813_v53  ;;  %v1865_v59 = vmul.f32 %v7694_v44, %v1821_v17  ;;  %v1984_v45 = vadd.f32 %v1983_v36, %v6318_v60  ;;  %v1971_v48 = vadd.f32 %v1970_v13, %v6320_v62  ;;  %v7698_v13 = vld [vmem:[#allocation57_spill] sm:$0xff]  ;;  %v1792_v53 = vpop.permute.xlu0 %1791 }
 0x607   : > { %v1759_v46 = vmul.f32 %v7695_v42, %v1712_v8  ;;  %v1760_v52 = vmul.f32 %v7695_v42, %v1704_v6  ;;  %v1882_v26 = vadd.f32 %v1866_v3, %v1769_v50  ;;  %v1883_v27 = vadd.f32 %v1867_v18, %v1770_v38  ;;  %v7700_v8 = vld [vmem:[#allocation63_spill] sm:$0xff] }
 0x608   : > { %v1880_v32 = vadd.f32 %v1864_v10, %v1767_v41  ;;  %v1881_v54 = vadd.f32 %v1865_v59, %v1768_v56  ;;  %v1693_v23 = vpop.permute.xlu1 %1692  ;;  %v7703_v56 = vld [vmem:[#allocation58_spill] sm:$0xff] }
 0x609   : > { %vm1898_vm13 = vcmp.ge.f32.partialorder %v1882_v26, 0.0  ;;  %vm1899_vm14 = vcmp.ge.f32.partialorder %v1883_v27, 0.0  ;;  %v1946_v16 = vmul.f32 %v7697_v37, %v1882_v26  ;;  %v1947_v36 = vmul.f32 %v7697_v37, %v1883_v27 }
 0x60a   : > { %vm1896_vm15 = vcmp.ge.f32.partialorder %v1880_v32, 0.0  ;;  %vm1897_vm0 = vcmp.ge.f32.partialorder %v1881_v54, 0.0  ;;  %v1944_v39 = vmul.f32 %v7698_v13, %v1880_v32  ;;  %v1945_v3 = vmul.f32 %v7698_v13, %v1881_v54  ;;  %v7707_v13 = vld [vmem:[#allocation62_spill] sm:$0xff] }
 0x60b   : > { %v6342_v18 = vsel %vm1898_vm13, %v1882_v26, %v1946_v16  ;;  %v1703_v14 = vsel %vm1696_vm5, %v7699_v24, %v1693_v23  ;;  %v1711_v31 = vsel %vm1696_vm5, %v1693_v23, %v7699_v24  ;;  %v6350_v51 = vsel %vm1899_vm14, %v1883_v27, %v1947_v36  ;;  %v7705_v27 = vld [vmem:[#allocation55_spill] sm:$0xff] }
 0x60c   : > { %v6352_v6 = vsel %vm1896_vm15, %v1880_v32, %v1944_v39  ;;  %v1757_v30 = vmul.f32 %v7700_v8, %v1711_v31  ;;  %v1758_v5 = vmul.f32 %v7700_v8, %v1703_v14  ;;  %v1804_v61 = vpop.permute.xlu1 %1803  ;;  %v6356_v57 = vsel %vm1897_vm0, %v1881_v54, %v1945_v3 }
 0x60d   : > { %v1815_v63 = vsel %vm1809_vm6, %v7701_v34, %v1804_v61  ;;  %v1823_v58 = vsel %vm1809_vm6, %v1804_v61, %v7701_v34  ;;  %v1985_v9 = vadd.f32 %v1984_v45, %v6356_v57  ;;  %v1972_v49 = vadd.f32 %v1971_v48, %v6352_v6  ;;  %v7704_v48 = vld [vmem:[#allocation56_spill] sm:$0xff] }
 0x60e   : > { %v1773_v19 = vadd.f32 %v1757_v30, %v6213_v4  ;;  %v1774_v12 = vadd.f32 %v1758_v5, %v6216_v2  ;;  %v1868_v28 = vmul.f32 %v7702_v47, %v1815_v63  ;;  %v1869_v41 = vmul.f32 %v7702_v47, %v1823_v58 }
 0x60f   : > { %v1662_v40 = vadd.f32 %v7703_v56, %v6198_v0  ;;  %v1663_v50 = vadd.f32 %v7703_v56, %v6205_v29  ;;  %v1986_v38 = vadd.f32 %v1985_v9, %v6350_v51  ;;  %v1973_v43 = vadd.f32 %v1972_v49, %v6342_v18 }
 0x610   : > { %v1886_v17 = vadd.f32 %v1870_v20, %v1773_v19  ;;  %v1887_v44 = vadd.f32 %v1871_v33, %v1774_v12  ;;  %v1884_v4 = vadd.f32 %v1868_v28, %v6286_v11  ;;  %v1885_v2 = vadd.f32 %v1869_v41, %v6289_v15  ;;  %v1808_v10 = vpop.permute.xlu1 %1807  ;;  %v7706_v15 = vld [vmem:[#allocation60_spill] sm:$0xff] }
 0x611   : > { %v1817_v59 = vsel %vm1809_vm6, %v1792_v53, %v1808_v10  ;;  %v1825_v0 = vsel %vm1809_vm6, %v1808_v10, %v1792_v53  ;;  %v1775_v45 = vadd.f32 %v1759_v46, %v1662_v40  ;;  %v1776_v29 = vadd.f32 %v1760_v52, %v1663_v50 }
 0x612   : > { %v1950_v42 = vmul.f32 %v7704_v48, %v1886_v17  ;;  %v1951_v26 = vmul.f32 %v7704_v48, %v1887_v44  ;;  %vm1900_vm1 = vcmp.ge.f32.partialorder %v1884_v4, 0.0  ;;  %vm1901_vm2 = vcmp.ge.f32.partialorder %v1885_v2, 0.0 }
 0x613   : > { %v1948_v35 = vmul.f32 %v7705_v27, %v1884_v4  ;;  %v1949_v11 = vmul.f32 %v7705_v27, %v1885_v2  ;;  %vm1902_vm4 = vcmp.ge.f32.partialorder %v1886_v17, 0.0  ;;  %vm1903_vm5 = vcmp.ge.f32.partialorder %v1887_v44, 0.0 }
 0x614   : > { %v1872_v20 = vmul.f32 %v7706_v15, %v1817_v59  ;;  %v1873_v33 = vmul.f32 %v7706_v15, %v1825_v0  ;;  %v1966_v16 = vsel %vm1902_vm4, %v1886_v17, %v1950_v42  ;;  %v1967_v36 = vsel %vm1903_vm5, %v1887_v44, %v1951_v26 }
 0x615   : > { %v1964_v32 = vsel %vm1900_vm1, %v1884_v4, %v1948_v35  ;;  %v1965_v54 = vsel %vm1901_vm2, %v1885_v2, %v1949_v11 }
 0x616   : > { %v1888_v46 = vadd.f32 %v1872_v20, %v1775_v45  ;;  %v1889_v52 = vadd.f32 %v1873_v33, %v1776_v29  ;;  %v1987_v23 = vadd.f32 %v1986_v38, %v1965_v54  ;;  %v1974_v37 = vadd.f32 %v1973_v43, %v1964_v32 }
 0x618   : > { %vm1904_vm6 = vcmp.ge.f32.partialorder %v1888_v46, 0.0  ;;  %vm1905_vm7 = vcmp.ge.f32.partialorder %v1889_v52, 0.0  ;;  %v1952_v39 = vmul.f32 %v7707_v13, %v1888_v46  ;;  %v1953_v3 = vmul.f32 %v7707_v13, %v1889_v52 }
 0x619   : > { %v1988_v24 = vadd.f32 %v1987_v23, %v1967_v36  ;;  %v1975_v14 = vadd.f32 %v1974_v37, %v1966_v16 }
 0x61a   : > { %v1968_v31 = vsel %vm1904_vm6, %v1888_v46, %v1952_v39  ;;  %v1969_v8 = vsel %vm1905_vm7, %v1889_v52, %v1953_v3 }
 0x61b   : > { %v1989_v30 = vadd.f32 %v1988_v24, %v1969_v8  ;;  %v1976_v5 = vadd.f32 %v1975_v14, %v1968_v31 }
 0x61d   : > { %v1990_v61 = vrot.slane %v1989_v30, 4  ;;  %v1977_v34 = vrot.slane %v1976_v5, 4 }
 0x61f   : > { %v1991_v63 = vadd.f32 %v1990_v61, %v1989_v30  ;;  %v1978_v58 = vadd.f32 %v1977_v34, %v1976_v5 }
 0x621   : > { %v1992_v9 = vrot.slane %v1991_v63, 2  ;;  %v1979_v49 = vrot.slane %v1978_v58, 2 }
 0x623   : > { %v1993_v19 = vadd.f32 %v1992_v9, %v1991_v63  ;;  %v1980_v12 = vadd.f32 %v1979_v49, %v1978_v58 }
 0x625   : > { %v1994_v47 = vrot.slane %v1993_v19, 1  ;;  %v1981_v28 = vrot.slane %v1980_v12, 1 }
 0x627   : > { %v1995_v41 = vadd.f32 %v1994_v47, %v1993_v19  ;;  %v1982_v56 = vadd.f32 %v1981_v28, %v1980_v12 }
 0x629   : > { %v1997_v40 = vmul.f32 0.015625, %v1995_v41  ;;  %v1996_v50 = vmul.f32 0.015625, %v1982_v56 }
 0x62b   : > { %v6391_v38 = vsub.f32 %v6249_v25, %v1997_v40  ;;  %v6394_v43 = vsub.f32 %v6269_v55, %v1997_v40  ;;  %v6397_v53 = vsub.f32 %v6318_v60, %v1997_v40  ;;  %v6400_v17 = vsub.f32 %v6356_v57, %v1997_v40 }
 0x62c   : > { %v6403_v44 = vsub.f32 %v6350_v51, %v1997_v40  ;;  %v6409_v25 = vsub.f32 %v1965_v54, %v1997_v40  ;;  %v6416_v57 = vsub.f32 %v6261_v21, %v1996_v50  ;;  %v6419_v51 = vsub.f32 %v6279_v22, %v1996_v50 }
 0x62d   : > { %v2015_v4 = vmul.f32 %v6391_v38, %v6391_v38  ;;  %v2017_v2 = vmul.f32 %v6394_v43, %v6394_v43  ;;  %v2019_v55 = vmul.f32 %v6397_v53, %v6397_v53  ;;  %v2021_v60 = vmul.f32 %v6400_v17, %v6400_v17 }
 0x62e   : > { %v6422_v59 = vsub.f32 %v6320_v62, %v1996_v50  ;;  %v6425_v0 = vsub.f32 %v6352_v6, %v1996_v50  ;;  %v6428_v45 = vsub.f32 %v6342_v18, %v1996_v50  ;;  %v6430_v29 = vsub.f32 %v1964_v32, %v1996_v50 }
 0x62f   : > { %v2043_v10 = vadd.f32 %v2017_v2, %v2015_v4  ;;  %v6432_v48 = vsub.f32 %v1966_v16, %v1996_v50  ;;  %v6434_v26 = vsub.f32 %v1968_v31, %v1996_v50  ;;  %v2014_v21 = vmul.f32 %v6416_v57, %v6416_v57 }
 0x630   : > { %v2016_v22 = vmul.f32 %v6419_v51, %v6419_v51  ;;  %v2011_v62 = vsub.f32 %v1967_v36, %v1997_v40  ;;  %v2023_v6 = vmul.f32 %v6403_v44, %v6403_v44  ;;  %v2018_v18 = vmul.f32 %v6422_v59, %v6422_v59 }
 0x631   : > { %v2044_v42 = vadd.f32 %v2043_v10, %v2019_v55  ;;  %v2013_v11 = vsub.f32 %v1969_v8, %v1997_v40  ;;  %v2025_v15 = vmul.f32 %v6409_v25, %v6409_v25  ;;  %v2020_v33 = vmul.f32 %v6425_v0, %v6425_v0 }
 0x632   : > { %v2030_v35 = vadd.f32 %v2016_v22, %v2014_v21  ;;  %v2027_v54 = vmul.f32 %v2011_v62, %v2011_v62  ;;  %v2022_v52 = vmul.f32 %v6428_v45, %v6428_v45  ;;  %v2024_v36 = vmul.f32 %v6430_v29, %v6430_v29 }
 0x633   : > { %v2045_v27 = vadd.f32 %v2044_v42, %v2021_v60  ;;  %v2029_v37 = vmul.f32 %v2013_v11, %v2013_v11  ;;  %v2026_v3 = vmul.f32 %v6432_v48, %v6432_v48  ;;  %v2028_v31 = vmul.f32 %v6434_v26, %v6434_v26 }
 0x634   : > { %v2031_v32 = vadd.f32 %v2030_v35, %v2018_v18 }
 0x635   : > { %v2046_v20 = vadd.f32 %v2045_v27, %v2023_v6 }
 0x636   : > { %v2032_v23 = vadd.f32 %v2031_v32, %v2020_v33 }
 0x637   : > { %v2047_v46 = vadd.f32 %v2046_v20, %v2025_v15 }
 0x638   : > { %v2033_v13 = vadd.f32 %v2032_v23, %v2022_v52  ;;  %v6499_v52 = vld [vmem:[%s5570_s23 + $0x60] sm:$0xff]  ;;  %v6502_v23 = vld [vmem:[%s5570_s23 + $0x68] sm:$0xff] }
 0x639   : > { %v2048_v16 = vadd.f32 %v2047_v46, %v2027_v54  ;;  %v6494_v46 = vld [vmem:[%s5570_s23 + $0x48] sm:$0xff] }
 0x63a   : > { %v2034_v24 = vadd.f32 %v2033_v13, %v2024_v36  ;;  %2388 = vperm.xlu0 %4239, %v6494_v46   ;;  %v7710_v36 = vmov 5   ;;  %v7712_v13 = vmov 1  }
 0x63b   : > { %v2049_v39 = vadd.f32 %v2048_v16, %v2029_v37  ;;  %v6508_v37 = vld [vmem:[%s5570_s23 + $0x70] sm:$0xff]  ;;  %v6517_v16 = vld [vmem:[%s5570_s23 + $0x78] sm:$0xff] }
 0x63c   : > { %v2035_v8 = vadd.f32 %v2034_v24, %v2026_v3  ;;  %v7714_v3 = vmov 2  }
 0x63d   : > { %v2050_v14 = vrot.slane %v2049_v39, 4 }
 0x63e   : > { %v2036_v5 = vadd.f32 %v2035_v8, %v2028_v31  ;;  %2400 = vperm.xlu0 %4239, %v6499_v52   ;;  %v4306_v31 = vld [vmem:[#allocation2 + $0x8] sm:$0xff] }
 0x63f   : > { %v2051_v30 = vadd.f32 %v2050_v14, %v2049_v39  ;;  %v7713_v39 = vmov 3  }
 0x640   : > { %v2037_v34 = vrot.slane %v2036_v5, 4 }
 0x641   : > { %v2052_v61 = vrot.slane %v2051_v30, 2 }
 0x642   : > { %v2038_v58 = vadd.f32 %v2037_v34, %v2036_v5  ;;  %4243 = vset.pattern.permute.xlu0 %v7687_v7 }
 0x643   : > { %v2053_v63 = vadd.f32 %v2052_v61, %v2051_v30  ;;  %2229 = vperm.xlu0 %4243, %v6494_v46   ;;  %v4307_v61 = vld [vmem:[#allocation2] sm:$0xff] }
 0x644   : > { %v2039_v49 = vrot.slane %v2038_v58, 2 }
 0x645   : > { %v2054_v9 = vrot.slane %v2053_v63, 1 }
 0x646   : > { %v2040_v12 = vadd.f32 %v2039_v49, %v2038_v58  ;;  %v4309_v49 = vld [vmem:[#allocation2 + $0x18] sm:$0xff] }
 0x647   : > { %v2055_v19 = vadd.f32 %v2054_v9, %v2053_v63  ;;  %2244 = vperm.xlu0 %4243, %v6499_v52   ;;  %v4308_v63 = vld [vmem:[#allocation2 + $0x10] sm:$0xff] }
 0x648   : > { %v2041_v28 = vrot.slane %v2040_v12, 1 }
 0x649   : > { %v2057_v47 = vmul.f32 0.015625, %v2055_v19 }
 0x64a   : > { %v2042_v56 = vadd.f32 %v2041_v28, %v2040_v12  ;;  %v2175_v12 = vpop.permute.xlu0 %2174 }
 0x64b   : > { %v2059_v41 = vadd.f32 1e-05, %v2057_v47  ;;  %2259 = vperm.xlu0 %4243, %v6517_v16  }
 0x64c   : > { %v2056_v40 = vmul.f32 0.015625, %v2042_v56  ;;  %v2180_v5 = vpop.permute.xlu1 %2179  ;;  %v7718_v56 = vmov 8  }
 0x64d   : > { %4294 = vrsqrt.f32 %v2059_v41 }
 0x64e   : > { %v2058_v50 = vadd.f32 1e-05, %v2056_v40 }
 0x64f   : > { %4245 = vset.pattern.permute.xlu0 %v7710_v36 }
 0x650   : > { %4296 = vrsqrt.f32 %v2058_v50 }
 0x657   : > { %v4295_v4 = vpop.eup %4294 }
 0x658   : > { %v2063_v2 = vmul.f32 %v4295_v4, %v6391_v38  ;;  %v2065_v55 = vmul.f32 %v4295_v4, %v6394_v43  ;;  %v2067_v60 = vmul.f32 %v4295_v4, %v6397_v53  ;;  %v2069_v10 = vmul.f32 %v4295_v4, %v6400_v17 }
 0x659   : > { %v2071_v42 = vmul.f32 %v4295_v4, %v6403_v44  ;;  %v2073_v21 = vmul.f32 %v4295_v4, %v6409_v25  ;;  %v2075_v22 = vmul.f32 %v4295_v4, %v2011_v62  ;;  %v2077_v6 = vmul.f32 %v4295_v4, %v2013_v11 }
 0x65a   : > { %v2083_v27 = vpack.c.bf16 %v2065_v55, %v2063_v2  ;;  %v2085_v18 = vpack.c.bf16 %v2069_v10, %v2067_v60  ;;  %v4297_v35 = vpop.eup %4296  ;;  %v4310_v60 = vld [vmem:[#allocation2 + $0x28] sm:$0xff] }
 0x65b   : > { %v2087_v15 = vpack.c.bf16 %v2073_v21, %v2071_v42  ;;  %v2089_v20 = vpack.c.bf16 %v2077_v6, %v2075_v22  ;;  %v2062_v38 = vmul.f32 %v4297_v35, %v6416_v57  ;;  %v2064_v43 = vmul.f32 %v4297_v35, %v6419_v51  ;;  %v4282_v51 = vld [vmem:[%s5572_s19] sm:$0xff]   ;;  %v4311_v21 = vld [vmem:[#allocation2 + $0x20] sm:$0xff]  ;;  %v4312_v6 = vld [vmem:[#allocation2 + $0x30] sm:$0xff] }
 0x65c   : > { %2107 = vmatprep.subr.bf16.mxu1 %v2083_v27  ;;  %v2066_v53 = vmul.f32 %v4297_v35, %v6422_v59  ;;  %v2068_v17 = vmul.f32 %v4297_v35, %v6425_v0  ;;  %v2070_v44 = vmul.f32 %v4297_v35, %v6428_v45  ;;  %v2072_v25 = vmul.f32 %v4297_v35, %v6430_v29  ;;  %v4283_v0 = vld [vmem:[%s5572_s19 + $0x8] sm:$0xff]   ;;  %v6477_v45 = vld [vmem:[%s5570_s23 + $0x40] sm:$0xff]  ;;  %v6481_v29 = vld [vmem:[%s5570_s23 + $0x50] sm:$0xff] }
 0x65d   : > { %v2074_v62 = vmul.f32 %v4297_v35, %v6432_v48  ;;  %v2076_v11 = vmul.f32 %v4297_v35, %v6434_v26  ;;  %v2082_v33 = vpack.c.bf16 %v2064_v43, %v2062_v38  ;;  %v7708_v59 = vmov 0   ;;  %2224 = vperm.xlu1 %4237, %v6477_v45   ;;  %v6487_v26 = vld [vmem:[%s5570_s23 + $0x58] sm:$0xff]  ;;  %2556 = vperm.xlu0 %4245, %v6477_v45   ;;  %v2190_v35 = vpop.permute.xlu0 %2189 }
 0x65e   : > { %v2084_v32 = vpack.c.bf16 %v2068_v17, %v2066_v53  ;;  %v2086_v54 = vpack.c.bf16 %v2072_v25, %v2070_v44  ;;  %v7709_v48 = vmov 7  }
 0x65f   : > { %v2088_v57 = vpack.c.bf16 %v2076_v11, %v2074_v62  ;;  %2108 = vmatpush1.bf16.msra.mxu1 %v2082_v33  ;;  %v4284_v11 = vld [vmem:[%s5564_s8 + $0x20] sm:$0xff]   ;;  %v4285_v33 = vld [vmem:[%s5564_s8 + $0x28] sm:$0xff]  }
 0x660   : > { %2109 = vmatprep.subr.bf16.mxu1 %v2085_v18 }
 0x661   : > { %2234 = vperm.xlu1 %4237, %v6481_v29  }
 0x663   : > { %2110 = vmatpush1.bf16.msra.mxu1 %v2084_v32  ;;  %v4286_v32 = vld [vmem:[%s5564_s8 + $0x30] sm:$0xff]  }
 0x664   : > { %2111 = vmatprep.subr.bf16.mxu1 %v2087_v15 }
 0x665   : > { %4238 = vset.pattern.permute.xlu1 %v7709_v48 }
 0x666   : > { %2384 = vperm.xlu1 %4238, %v6477_v45  }
 0x667   : > { %2112 = vmatpush1.bf16.msra.mxu1 %v2086_v54  ;;  %v4287_v54 = vld [vmem:[%s5564_s8 + $0x38] sm:$0xff]  }
 0x668   : > { %2113 = vmatprep.subr.bf16.mxu1 %v2089_v20  ;;  %v4313_v20 = vld [vmem:[#allocation2 + $0x38] sm:$0xff] }
 0x66a   : > { %4240 = vset.pattern.permute.xlu1 %v7687_v7 }
 0x66b   : > { %2114 = vmatpush1.bf16.msra.mxu1 %v2088_v57  ;;  %2239 = vperm.xlu1 %4240, %v6487_v26  }
 0x66e   : > { %3900 = vmatmul.mubr.msk.bf16.vlgmr.msra.gmra.mrb[0].mxu1 %vm2100_vm8, %v4282_v51 }
 0x66f   : > { %2149 = vmatprep.mubr.bf16.mxu1 %v7708_v59  ;;  %4241 = vset.pattern.permute.xlu1 %v7709_v48  ;;  %v2185_v15 = vpop.permute.xlu1 %2184 }
 0x670   : > { %2392 = vperm.xlu1 %4241, %v6481_v29  }
 0x674   : > { %2396 = vperm.xlu1 %4241, %v6487_v26  }
 0x676   : > { %3901 = vmatmul.mubr.msk.bf16.gmra.mrb[4].mxu1 %vm2100_vm8, %v4283_v0 }
 0x677   : > { %2326 = vmatprep.mubr.bf16.mxu1 %v7708_v59 }
 0x678   : > { %4242 = vset.pattern.permute.xlu1 %v7687_v7  ;;  %v7711_v7 = vmov 6  }
 0x679   : > { %2249 = vperm.xlu1 %4242, %v6502_v23   ;;  %4247 = vset.pattern.permute.xlu0 %v7711_v7 }
 0x67a   : > { %2604 = vperm.xlu0 %4247, %v6477_v45  }
 0x67d   : > { %2254 = vperm.xlu1 %4242, %v6508_v37  }
 0x67e   : > { %2612 = vperm.xlu0 %4247, %v6481_v29  }
 0x681   : > { %4244 = vset.pattern.permute.xlu1 %v7709_v48 }
 0x682   : > { %2404 = vperm.xlu1 %4244, %v6502_v23   ;;  %2616 = vperm.xlu0 %4247, %v6487_v26  }
 0x686   : > { %2408 = vperm.xlu1 %4244, %v6508_v37   ;;  %2620 = vperm.xlu0 %4247, %v6499_v52  }
 0x68a   : > { %2412 = vperm.xlu1 %4244, %v6517_v16   ;;  %2624 = vperm.xlu0 %4247, %v6502_v23  }
 0x68e   : > { %4246 = vset.pattern.permute.xlu1 %v7710_v36  ;;  %2628 = vperm.xlu0 %4247, %v6508_v37  }
 0x68f   : > { %2560 = vperm.xlu1 %4246, %v6494_v46  }
 0x692   : > { %4251 = vset.pattern.permute.xlu0 %v7712_v13 }
 0x693   : > { %2564 = vperm.xlu1 %4246, %v6481_v29   ;;  %2668 = vperm.xlu0 %4251, %v6477_v45  }
 0x697   : > { %4248 = vset.pattern.permute.xlu1 %v7711_v7  ;;  %4253 = vset.pattern.permute.xlu0 %v7713_v39 }
 0x698   : > { %2608 = vperm.xlu1 %4248, %v6494_v46   ;;  %2716 = vperm.xlu0 %4253, %v6477_v45  }
 0x69c   : > { %4249 = vset.pattern.permute.xlu1 %v7710_v36  ;;  %2732 = vperm.xlu0 %4253, %v6499_v52  }
 0x69d   : > { %2568 = vperm.xlu1 %4249, %v6487_v26  }
 0x6a0   : > { %2740 = vperm.xlu0 %4253, %v6508_v37  }
 0x6a1   : > { %2572 = vperm.xlu1 %4249, %v6499_v52  }
 0x6a4   : > { %4269 = vset.pattern.permute.xlu0 %v7714_v3 }
 0x6a5   : > { %2576 = vperm.xlu1 %4249, %v6502_v23   ;;  %2930 = vperm.xlu0 %4269, %v6494_v46  }
 0x6a9   : > { %2580 = vperm.xlu1 %4249, %v6508_v37   ;;  %2942 = vperm.xlu0 %4269, %v6499_v52  }
 0x6ad   : > { %2584 = vperm.xlu1 %4249, %v6517_v16   ;;  %2946 = vperm.xlu0 %4269, %v6502_v23  }
 0x6b1   : > { %4250 = vset.pattern.permute.xlu1 %v7711_v7  ;;  %2950 = vperm.xlu0 %4269, %v6508_v37  }
 0x6b2   : > { %2632 = vperm.xlu1 %4250, %v6517_v16  }
 0x6b5   : > { %4272 = vset.pattern.permute.xlu0 %v7718_v56 }
 0x6b6   : > { %4252 = vset.pattern.permute.xlu1 %v7712_v13  ;;  %3010 = vperm.xlu0 %4272, %v6494_v46  }
 0x6b7   : > { %2672 = vperm.xlu1 %4252, %v6494_v46  }
 0x6ba   : > { %3026 = vperm.xlu0 %4272, %v6502_v23  }
 0x6bb   : > { %2676 = vperm.xlu1 %4252, %v6481_v29  }
 0x6be   : > { %3030 = vperm.xlu0 %4272, %v6508_v37  }
 0x6bf   : > { %4254 = vset.pattern.permute.xlu1 %v7713_v39 }
 0x6c0   : > { %2720 = vperm.xlu1 %4254, %v6494_v46  }
 0x6c2   : > { %4275 = vset.pattern.permute.xlu0 %v7708_v59 }
 0x6c3   : > { %2817 = vperm.xlu0 %4275, %v6494_v46  }
 0x6c4   : > { %4255 = vset.pattern.permute.xlu1 %v7708_v59 }
 0x6c5   : > { %2813 = vperm.xlu1 %4255, %v6477_v45  }
 0x6c7   : > { %2821 = vperm.xlu0 %4275, %v6481_v29  }
 0x6c9   : > { %4256 = vset.pattern.permute.xlu1 %v7712_v13 }
 0x6ca   : > { %2680 = vperm.xlu1 %4256, %v6487_v26  }
 0x6cb   : > { %2825 = vperm.xlu0 %4275, %v6487_v26  }
 0x6ce   : > { %4257 = vset.pattern.permute.xlu1 %v7713_v39 }
 0x6cf   : > { %2724 = vperm.xlu1 %4257, %v6481_v29   ;;  %2829 = vperm.xlu0 %4275, %v6499_v52  }
 0x6d3   : > { %4258 = vset.pattern.permute.xlu1 %v7714_v3  ;;  %2833 = vperm.xlu0 %4275, %v6502_v23  }
 0x6d4   : > { %2926 = vperm.xlu1 %4258, %v6477_v45  }
 0x6d7   : > { %2837 = vperm.xlu0 %4275, %v6508_v37  }
 0x6d8   : > { %4259 = vset.pattern.permute.xlu1 %v7712_v13 }
 0x6d9   : > { %2684 = vperm.xlu1 %4259, %v6499_v52  }
 0x6db   : > { %2841 = vperm.xlu0 %4275, %v6517_v16  }
 0x6dc   : > { %v2225_v57 = vpop.permute.xlu1 %2224 }
 0x6dd   : > { %4260 = vset.pattern.permute.xlu1 %v7713_v39 }
 0x6de   : > { %2728 = vperm.xlu1 %4260, %v6487_v26  }
 0x6e0   : > { %v2235_v51 = vpop.permute.xlu1 %2234 }
 0x6e2   : > { %4261 = vset.pattern.permute.xlu1 %v7714_v3 }
 0x6e3   : > { %2934 = vperm.xlu1 %4261, %v6481_v29  }
 0x6e5   : > { %v2385_v0 = vpop.permute.xlu1 %2384 }
 0x6e7   : > { %4262 = vset.pattern.permute.xlu1 %v7712_v13 }
 0x6e8   : > { %2688 = vperm.xlu1 %4262, %v6502_v23  }
 0x6ec   : > { %4263 = vset.pattern.permute.xlu1 %v7714_v3 }
 0x6ed   : > { %2938 = vperm.xlu1 %4263, %v6487_v26  }
 0x6f1   : > { %4264 = vset.pattern.permute.xlu1 %v7718_v56 }
 0x6f2   : > { %3006 = vperm.xlu1 %4264, %v6477_v45   ;;  %v2240_v45 = vpop.permute.xlu1 %2239 }
 0x6f6   : > { %4265 = vset.pattern.permute.xlu1 %v7712_v13 }
 0x6f7   : > { %2692 = vperm.xlu1 %4265, %v6508_v37  }
 0x6fb   : > { %4266 = vset.pattern.permute.xlu1 %v7713_v39 }
 0x6fc   : > { %2736 = vperm.xlu1 %4266, %v6502_v23  }
 0x700   : > { %4267 = vset.pattern.permute.xlu1 %v7718_v56 }
 0x701   : > { %3014 = vperm.xlu1 %4267, %v6481_v29   ;;  %v2393_v29 = vpop.permute.xlu1 %2392 }
 0x705   : > { %4268 = vset.pattern.permute.xlu1 %v7712_v13  ;;  %v2397_v48 = vpop.permute.xlu1 %2396 }
 0x706   : > { %2696 = vperm.xlu1 %4268, %v6517_v16  }
 0x70a   : > { %4270 = vset.pattern.permute.xlu1 %v7718_v56 }
 0x70b   : > { %3018 = vperm.xlu1 %4270, %v6487_v26   ;;  %v6646_v26 = vpop.permute.xlu1 %2249 }
 0x70f   : > { %4271 = vset.pattern.permute.xlu1 %v7713_v39  ;;  %v6648_v46 = vpop.permute.xlu1 %2254 }
 0x710   : > { %2744 = vperm.xlu1 %4271, %v6517_v16  }
 0x714   : > { %4273 = vset.pattern.permute.xlu1 %v7718_v56 }
 0x715   : > { %3022 = vperm.xlu1 %4273, %v6499_v52   ;;  %v6650_v52 = vpop.permute.xlu1 %2404 }
 0x719   : > { %4274 = vset.pattern.permute.xlu1 %v7714_v3  ;;  %v6652_v23 = vpop.permute.xlu1 %2408 }
 0x71a   : > { %2954 = vperm.xlu1 %4274, %v6517_v16  }
 0x71d   : > { %v6654_v37 = vpop.permute.xlu1 %2412 }
 0x71e   : > { %4276 = vset.pattern.permute.xlu1 %v7718_v56 }
 0x71f   : > { %3034 = vperm.xlu1 %4276, %v6517_v16  }
 0x721   : > { %v6656_v36 = vpop.permute.xlu1 %2560 }
 0x723   : > { %4277 = vset.pattern.permute.xlu1 %v7708_v59 }
 0x725   : > { %v6658_v16 = vpop.permute.xlu1 %2564 }
 0x729   : > { %v6660_v7 = vpop.permute.xlu1 %2608 }
 0x72d   : > { %v6662_v13 = vpop.permute.xlu1 %2568 }
 0x731   : > { %v6664_v39 = vpop.permute.xlu1 %2572 }
 0x735   : > { %v6666_v3 = vpop.permute.xlu1 %2576 }
 0x741   : > { %v2141_v24 = vpop.f32.mrb[0].mxu1 }
 0x742   : > { %v2143_v14 = vpop.f32.mrb[1].mxu1  ;;  %v2160_v34 = vadd.f32 %v4307_v61, %v2141_v24  ;;  %v6668_v24 = vpop.permute.xlu1 %2580 }
 0x743   : > { %v2161_v8 = vadd.f32 %v4306_v31, %v2143_v14  ;;  %v2145_v30 = vpop.f32.mrb[2].mxu1  ;;  %v2389_v14 = vpop.permute.xlu0 %2388 }
 0x744   : > { %v2162_v58 = vadd.f32 %v4308_v63, %v2145_v30  ;;  %v2147_v9 = vpop.f32.mrb[3].mxu1  ;;  %v6569_v40 = vadd.f32 %v2175_v12, %v2160_v34 }
 0x745   : > { %v2163_v19 = vadd.f32 %v4309_v49, %v2147_v9  ;;  %v6564_v28 = vadd.f32 %v2175_v12, %v2161_v8 }
 0x746   : > { %v6562_v47 = vadd.f32 %v2180_v5, %v2162_v58  ;;  %7719 = vst [vmem:[#allocation70_spill] sm:$0xff] %v6569_v40  ;;  %v6670_v31 = vpop.permute.xlu1 %2584 }
 0x747   : > { %7716 = vst [vmem:[#allocation65_spill] sm:$0xff] %v6564_v28  ;;  %v6566_v41 = vadd.f32 %v2180_v5, %v2163_v19  ;;  %v6672_v8 = vpop.permute.xlu0 %2400 }
 0x748   : > { %7715 = vst [vmem:[#allocation69_spill] sm:$0xff] %v6562_v47  ;;  %v2218_v2 = vpack.c.bf16 %v6562_v47, %v6569_v40 }
 0x749   : > { %7717 = vst [vmem:[#allocation54_spill] sm:$0xff] %v6566_v41  ;;  %v2151_v50 = vpop.f32.mrb[4].mxu1  ;;  %v2219_v4 = vpack.c.bf16 %v6566_v41, %v6564_v28 }
 0x74a   : > { %v2153_v55 = vpop.f32.mrb[5].mxu1  ;;  %v2164_v22 = vadd.f32 %v4311_v21, %v2151_v50  ;;  %v6674_v30 = vpop.permute.xlu1 %2632 }
 0x74b   : > { %v2165_v10 = vadd.f32 %v4310_v60, %v2153_v55  ;;  %v2155_v42 = vpop.f32.mrb[6].mxu1  ;;  %2294 = vmatprep.subr.bf16.mxu1 %v2219_v4  ;;  %v2230_v61 = vpop.permute.xlu0 %2229 }
 0x74c   : > { %v2166_v27 = vadd.f32 %v4312_v6, %v2155_v42  ;;  %v2157_v18 = vpop.f32.mrb[7].mxu1  ;;  %2295 = vmatpush1.bf16.msra.mxu1 %v2218_v2  ;;  %v6587_v44 = vadd.f32 %v2185_v15, %v2164_v22 }
 0x74d   : > { %v2167_v38 = vadd.f32 %v4313_v20, %v2157_v18  ;;  %v6583_v53 = vadd.f32 %v2185_v15, %v2165_v10 }
 0x74e   : > { %v6580_v43 = vadd.f32 %v2190_v35, %v2166_v27  ;;  %7723 = vst [vmem:[#allocation64_spill] sm:$0xff] %v6587_v44  ;;  %v6676_v2 = vpop.permute.xlu1 %2672 }
 0x74f   : > { %7721 = vst [vmem:[#allocation66_spill] sm:$0xff] %v6583_v53  ;;  %v6585_v17 = vadd.f32 %v2190_v35, %v2167_v38 }
 0x750   : > { %7720 = vst [vmem:[#allocation61_spill] sm:$0xff] %v6580_v43  ;;  %v2220_v62 = vpack.c.bf16 %v6580_v43, %v6587_v44 }
 0x751   : > { %7722 = vst [vmem:[#allocation51_spill] sm:$0xff] %v6585_v17  ;;  %v2221_v25 = vpack.c.bf16 %v6585_v17, %v6583_v53 }
 0x753   : > { %2296 = vmatprep.subr.bf16.mxu1 %v2221_v25 }
 0x754   : > { %2297 = vmatpush1.bf16.msra.mxu1 %v2220_v62 }
 0x757   : > { %3922 = vmatmul.mubr.msk.bf16.vlgmr.msra.gmra.mrb[8].mxu1 %vm1181_vm3, %v4284_v11  ;;  %v6690_v11 = vpop.permute.xlu1 %2676 }
 0x758   : > { %2336 = vmatprep.mubr.bf16.mxu1 %v7708_v59 }
 0x75f   : > { %3923 = vmatmul.mubr.msk.bf16.gmra.mrb[12].mxu1 %vm1181_vm3, %v4285_v33 }
 0x760   : > { %2346 = vmatprep.mubr.bf16.mxu1 %v7708_v59 }
 0x767   : > { %3924 = vmatmul.mubr.msk.bf16.gmra.mrb[16].mxu1 %vm1181_vm3, %v4286_v32 }
 0x768   : > { %2356 = vmatprep.mubr.bf16.mxu1 %v7708_v59 }
 0x76f   : > { %3925 = vmatmul.mubr.msk.bf16.gmra.mrb[20].mxu1 %vm1181_vm3, %v4287_v54 }
 0x82a   : > { %v2328_v5 = vpop.f32.mrb[8].mxu1 }
 0x82b   : > { %v2329_v34 = vadd.f32 %v2328_v5, %v2225_v57  ;;  %v2330_v63 = vpop.f32.mrb[9].mxu1 }
 0x82c   : > { %v2331_v58 = vadd.f32 %v2330_v63, %v2225_v57  ;;  %v2332_v9 = vpop.f32.mrb[10].mxu1 }
 0x82d   : > { %v2415_v49 = vmul.f32 %v2385_v0, %v2329_v34  ;;  %v2333_v19 = vadd.f32 %v2332_v9, %v2230_v61  ;;  %v2334_v12 = vpop.f32.mrb[11].mxu1  ;;  %vm2367_vm9 = vcmp.ge.f32.partialorder %v2329_v34, 0.0 }
 0x82e   : > { %v2416_v56 = vmul.f32 %v2385_v0, %v2331_v58  ;;  %v2335_v50 = vadd.f32 %v2334_v12, %v2230_v61  ;;  %vm2368_vm10 = vcmp.ge.f32.partialorder %v2331_v58, 0.0 }
 0x82f   : > { %vm2369_vm11 = vcmp.ge.f32.partialorder %v2333_v19, 0.0  ;;  %v2417_v4 = vmul.f32 %v2389_v14, %v2333_v19  ;;  %v6678_v60 = vsel %vm2367_vm9, %v2329_v34, %v2415_v49  ;;  %v2245_v34 = vpop.permute.xlu0 %2244 }
 0x830   : > { %vm2370_vm12 = vcmp.ge.f32.partialorder %v2335_v50, 0.0  ;;  %v2418_v55 = vmul.f32 %v2389_v14, %v2335_v50  ;;  %v6682_v42 = vsel %vm2368_vm10, %v2331_v58, %v2416_v56 }
 0x831   : > { %v6680_v10 = vsel %vm2369_vm11, %v2333_v19, %v2417_v4  ;;  %v6704_v19 = vpop.permute.xlu1 %2720  ;;  %vm2795_vm11 = vcmp.lt.s32.totalorder %v5578_v1, 2 }
 0x832   : > { %v2447_v21 = vadd.f32 %v6680_v10, %v6678_v60  ;;  %v6686_v22 = vsel %vm2370_vm12, %v2335_v50, %v2418_v55  ;;  %v2338_v6 = vpop.f32.mrb[12].mxu1  ;;  %vm2908_vm12 = vcmp.lt.s32.totalorder %v5578_v1, 126 }
 0x833   : > { %v2460_v27 = vadd.f32 %v6686_v22, %v6682_v42  ;;  %v2339_v18 = vadd.f32 %v2338_v6, %v2235_v51  ;;  %v2340_v35 = vpop.f32.mrb[13].mxu1 }
 0x834   : > { %v2341_v15 = vadd.f32 %v2340_v35, %v2235_v51  ;;  %v2342_v20 = vpop.f32.mrb[14].mxu1 }
 0x835   : > { %vm2371_vm13 = vcmp.ge.f32.partialorder %v2339_v18, 0.0  ;;  %v2419_v38 = vmul.f32 %v2393_v29, %v2339_v18  ;;  %v2343_v25 = vadd.f32 %v2342_v20, %v2240_v45  ;;  %v2344_v62 = vpop.f32.mrb[15].mxu1 }
 0x836   : > { %vm2372_vm14 = vcmp.ge.f32.partialorder %v2341_v15, 0.0  ;;  %v2420_v33 = vmul.f32 %v2393_v29, %v2341_v15  ;;  %v2345_v32 = vadd.f32 %v2344_v62, %v2240_v45 }
 0x837   : > { %v6692_v54 = vsel %vm2371_vm13, %v2339_v18, %v2419_v38  ;;  %vm2373_vm15 = vcmp.ge.f32.partialorder %v2343_v25, 0.0  ;;  %v2421_v57 = vmul.f32 %v2397_v48, %v2343_v25 }
 0x838   : > { %v2448_v0 = vadd.f32 %v2447_v21, %v6692_v54  ;;  %v6695_v14 = vsel %vm2372_vm14, %v2341_v15, %v2420_v33  ;;  %vm2374_vm0 = vcmp.ge.f32.partialorder %v2345_v32, 0.0  ;;  %v2422_v51 = vmul.f32 %v2397_v48, %v2345_v32 }
 0x839   : > { %v2461_v5 = vadd.f32 %v2460_v27, %v6695_v14  ;;  %v6698_v61 = vsel %vm2373_vm15, %v2343_v25, %v2421_v57  ;;  %v6715_v25 = vpop.permute.xlu1 %2813 }
 0x83a   : > { %v2449_v63 = vadd.f32 %v2448_v0, %v6698_v61  ;;  %v6701_v58 = vsel %vm2374_vm0, %v2345_v32, %v2422_v51  ;;  %v2348_v45 = vpop.f32.mrb[16].mxu1  ;;  %v2260_v0 = vpop.permute.xlu0 %2259 }
 0x83b   : > { %v2462_v29 = vadd.f32 %v2461_v5, %v6701_v58  ;;  %v2349_v9 = vadd.f32 %v2348_v45, %v2245_v34  ;;  %v2350_v49 = vpop.f32.mrb[17].mxu1 }
 0x83c   : > { %v2351_v12 = vadd.f32 %v2350_v49, %v2245_v34  ;;  %v2352_v56 = vpop.f32.mrb[18].mxu1 }
 0x83d   : > { %vm2375_vm1 = vcmp.ge.f32.partialorder %v2349_v9, 0.0  ;;  %v2423_v48 = vmul.f32 %v6672_v8, %v2349_v9  ;;  %v2353_v50 = vadd.f32 %v2352_v56, %v6646_v26  ;;  %v2354_v4 = vpop.f32.mrb[19].mxu1 }
 0x83e   : > { %vm2376_vm2 = vcmp.ge.f32.partialorder %v2351_v12, 0.0  ;;  %v2424_v55 = vmul.f32 %v6672_v8, %v2351_v12  ;;  %v2355_v21 = vadd.f32 %v2354_v4, %v6646_v26 }
 0x83f   : > { %v2439_v6 = vsel %vm2375_vm1, %v2349_v9, %v2423_v48  ;;  %vm2377_vm4 = vcmp.ge.f32.partialorder %v2353_v50, 0.0  ;;  %v2425_v27 = vmul.f32 %v6650_v52, %v2353_v50 }
 0x840   : > { %v2450_v18 = vadd.f32 %v2449_v63, %v2439_v6  ;;  %v6711_v35 = vsel %vm2376_vm2, %v2351_v12, %v2424_v55  ;;  %vm2378_vm5 = vcmp.ge.f32.partialorder %v2355_v21, 0.0  ;;  %v2426_v15 = vmul.f32 %v6650_v52, %v2355_v21  ;;  %v6725_v12 = vpop.permute.xlu1 %2680 }
 0x841   : > { %v2463_v20 = vadd.f32 %v2462_v29, %v6711_v35  ;;  %v2441_v38 = vsel %vm2377_vm4, %v2353_v50, %v2425_v27 }
 0x842   : > { %v2451_v62 = vadd.f32 %v2450_v18, %v2441_v38  ;;  %v6717_v33 = vsel %vm2378_vm5, %v2355_v21, %v2426_v15  ;;  %v2358_v8 = vpop.f32.mrb[20].mxu1 }
 0x843   : > { %v2464_v26 = vadd.f32 %v2463_v20, %v6717_v33  ;;  %v2359_v32 = vadd.f32 %v2358_v8, %v6648_v46  ;;  %v2360_v57 = vpop.f32.mrb[21].mxu1 }
 0x844   : > { %v2361_v51 = vadd.f32 %v2360_v57, %v6648_v46  ;;  %v2362_v5 = vpop.f32.mrb[22].mxu1 }
 0x845   : > { %vm2379_vm6 = vcmp.ge.f32.partialorder %v2359_v32, 0.0  ;;  %v2427_v52 = vmul.f32 %v6652_v23, %v2359_v32  ;;  %v2363_v34 = vadd.f32 %v2362_v5, %v2260_v0  ;;  %v2364_v63 = vpop.f32.mrb[23].mxu1 }
 0x846   : > { %vm2380_vm7 = vcmp.ge.f32.partialorder %v2361_v51, 0.0  ;;  %v2428_v45 = vmul.f32 %v6652_v23, %v2361_v51  ;;  %v2365_v29 = vadd.f32 %v2364_v63, %v2260_v0  ;;  %v6728_v23 = vpop.permute.xlu1 %2724 }
 0x847   : > { %v2443_v9 = vsel %vm2379_vm6, %v2359_v32, %v2427_v52  ;;  %vm2381_vm9 = vcmp.ge.f32.partialorder %v2363_v34, 0.0  ;;  %v2429_v49 = vmul.f32 %v6654_v37, %v2363_v34 }
 0x848   : > { %v2452_v56 = vadd.f32 %v2451_v62, %v2443_v9  ;;  %v2444_v48 = vsel %vm2380_vm7, %v2361_v51, %v2428_v45  ;;  %vm2382_vm10 = vcmp.ge.f32.partialorder %v2365_v29, 0.0  ;;  %v2430_v46 = vmul.f32 %v6654_v37, %v2365_v29 }
 0x849   : > { %v2465_v50 = vadd.f32 %v2464_v26, %v2444_v48  ;;  %v2445_v4 = vsel %vm2381_vm9, %v2363_v34, %v2429_v49 }
 0x84a   : > { %v2453_v55 = vadd.f32 %v2452_v56, %v2445_v4  ;;  %v2446_v21 = vsel %vm2382_vm10, %v2365_v29, %v2430_v46  ;;  %v6730_v62 = vpop.permute.xlu1 %2926 }
 0x84b   : > { %v2466_v27 = vadd.f32 %v2465_v50, %v2446_v21 }
 0x84c   : > { %v2454_v18 = vrot.slane %v2453_v55, 4 }
 0x84d   : > { %v2467_v15 = vrot.slane %v2466_v27, 4 }
 0x84e   : > { %v2455_v20 = vadd.f32 %v2454_v18, %v2453_v55  ;;  %v6732_v45 = vpop.permute.xlu1 %2684 }
 0x84f   : > { %v2468_v8 = vadd.f32 %v2467_v15, %v2466_v27 }
 0x850   : > { %v2456_v32 = vrot.slane %v2455_v20, 2 }
 0x851   : > { %v2469_v57 = vrot.slane %v2468_v8, 2 }
 0x852   : > { %v2457_v0 = vadd.f32 %v2456_v32, %v2455_v20 }
 0x853   : > { %v2470_v5 = vadd.f32 %v2469_v57, %v2468_v8  ;;  %v6782_v57 = vpop.permute.xlu1 %2728 }
 0x854   : > { %v2458_v51 = vrot.slane %v2457_v0, 1 }
 0x855   : > { %v2471_v52 = vrot.slane %v2470_v5, 1 }
 0x856   : > { %v2459_v37 = vadd.f32 %v2458_v51, %v2457_v0 }
 0x857   : > { %v2472_v26 = vadd.f32 %v2471_v52, %v2470_v5 }
 0x858   : > { %v2473_v34 = vmul.f32 0.015625, %v2459_v37  ;;  %v6798_v37 = vpop.permute.xlu1 %2934 }
 0x859   : > { %v2474_v63 = vmul.f32 0.015625, %v2472_v26 }
 0x85a   : > { %v6735_v29 = vsub.f32 %v6678_v60, %v2473_v34  ;;  %v6738_v49 = vsub.f32 %v6680_v10, %v2473_v34  ;;  %v6741_v56 = vsub.f32 %v6692_v54, %v2473_v34  ;;  %v6744_v46 = vsub.f32 %v6698_v61, %v2473_v34 }
 0x85b   : > { %v6746_v50 = vsub.f32 %v2439_v6, %v2473_v34  ;;  %v6748_v55 = vsub.f32 %v2441_v38, %v2473_v34  ;;  %v6750_v27 = vsub.f32 %v2443_v9, %v2473_v34  ;;  %v6752_v18 = vsub.f32 %v2445_v4, %v2473_v34 }
 0x85c   : > { %v2491_v60 = vmul.f32 %v6735_v29, %v6735_v29  ;;  %v2493_v10 = vmul.f32 %v6738_v49, %v6738_v49  ;;  %v2495_v54 = vmul.f32 %v6741_v56, %v6741_v56  ;;  %v2497_v61 = vmul.f32 %v6744_v46, %v6744_v46 }
 0x85d   : > { %v6763_v38 = vsub.f32 %v6682_v42, %v2474_v63  ;;  %v6766_v9 = vsub.f32 %v6686_v22, %v2474_v63  ;;  %v6769_v4 = vsub.f32 %v6695_v14, %v2474_v63  ;;  %v6772_v15 = vsub.f32 %v6701_v58, %v2474_v63 }
 0x85e   : > { %v2507_v6 = vadd.f32 %v2493_v10, %v2491_v60  ;;  %v6775_v20 = vsub.f32 %v6711_v35, %v2474_v63  ;;  %v6778_v8 = vsub.f32 %v6717_v33, %v2474_v63  ;;  %v6780_v32 = vsub.f32 %v2444_v48, %v2474_v63 }
 0x85f   : > { %v6784_v0 = vsub.f32 %v2446_v21, %v2474_v63  ;;  %v2492_v22 = vmul.f32 %v6763_v38, %v6763_v38  ;;  %v2494_v14 = vmul.f32 %v6766_v9, %v6766_v9  ;;  %v2499_v58 = vmul.f32 %v6746_v50, %v6746_v50 }
 0x860   : > { %v2508_v42 = vadd.f32 %v2507_v6, %v2495_v54  ;;  %v2496_v33 = vmul.f32 %v6769_v4, %v6769_v4  ;;  %v2501_v5 = vmul.f32 %v6748_v55, %v6748_v55  ;;  %v2498_v21 = vmul.f32 %v6772_v15, %v6772_v15 }
 0x861   : > { %v2520_v48 = vadd.f32 %v2494_v14, %v2492_v22  ;;  %v2503_v26 = vmul.f32 %v6750_v27, %v6750_v27  ;;  %v2500_v63 = vmul.f32 %v6775_v20, %v6775_v20  ;;  %v2505_v10 = vmul.f32 %v6752_v18, %v6752_v18 }
 0x862   : > { %v2509_v35 = vadd.f32 %v2508_v42, %v2497_v61  ;;  %v2502_v61 = vmul.f32 %v6778_v8, %v6778_v8  ;;  %v2504_v22 = vmul.f32 %v6780_v32, %v6780_v32 }
 0x863   : > { %v2521_v52 = vadd.f32 %v2520_v48, %v2496_v33  ;;  %v2506_v33 = vmul.f32 %v6784_v0, %v6784_v0 }
 0x864   : > { %v2510_v51 = vadd.f32 %v2509_v35, %v2499_v58  ;;  %v6810_v58 = vpop.permute.xlu1 %2688 }
 0x865   : > { %v2522_v60 = vadd.f32 %v2521_v52, %v2498_v21  ;;  %v2557_v21 = vpop.permute.xlu0 %2556 }
 0x866   : > { %v2511_v34 = vadd.f32 %v2510_v51, %v2501_v5 }
 0x867   : > { %v2523_v6 = vadd.f32 %v2522_v60, %v2500_v63 }
 0x868   : > { %v2512_v54 = vadd.f32 %v2511_v34, %v2503_v26  ;;  %v6814_v34 = vpop.permute.xlu1 %2938 }
 0x869   : > { %v2524_v14 = vadd.f32 %v2523_v6, %v2502_v61  ;;  %v2605_v17 = vpop.permute.xlu0 %2604 }
 0x86a   : > { %v2513_v42 = vadd.f32 %v2512_v54, %v2505_v10 }
 0x86b   : > { %v2525_v48 = vadd.f32 %v2524_v14, %v2504_v22 }
 0x86c   : > { %v2514_v35 = vrot.slane %v2513_v42, 4  ;;  %v6816_v43 = vpop.permute.xlu1 %3006 }
 0x86d   : > { %v2526_v51 = vadd.f32 %v2525_v48, %v2506_v33 }
 0x86e   : > { %v2515_v5 = vadd.f32 %v2514_v35, %v2513_v42  ;;  %v6818_v42 = vpop.permute.xlu0 %2612 }
 0x86f   : > { %v2527_v26 = vrot.slane %v2526_v51, 4 }
 0x870   : > { %v2516_v52 = vrot.slane %v2515_v5, 2  ;;  %v6820_v35 = vpop.permute.xlu1 %2692 }
 0x871   : > { %v2528_v60 = vadd.f32 %v2527_v26, %v2526_v51 }
 0x872   : > { %v2517_v63 = vadd.f32 %v2516_v52, %v2515_v5  ;;  %v6822_v48 = vpop.permute.xlu0 %2616 }
 0x873   : > { %v2529_v54 = vrot.slane %v2528_v60, 2 }
 0x874   : > { %v2518_v10 = vrot.slane %v2517_v63, 1  ;;  %v6824_v5 = vpop.permute.xlu1 %2736 }
 0x875   : > { %v2530_v6 = vadd.f32 %v2529_v54, %v2528_v60 }
 0x876   : > { %v2519_v61 = vadd.f32 %v2518_v10, %v2517_v63  ;;  %v6826_v52 = vpop.permute.xlu0 %2620 }
 0x877   : > { %v2531_v44 = vrot.slane %v2530_v6, 1 }
 0x878   : > { %v2533_v53 = vmul.f32 0.015625, %v2519_v61 }
 0x879   : > { %v2532_v22 = vadd.f32 %v2531_v44, %v2530_v6 }
 0x87a   : > { %v2535_v41 = vadd.f32 1e-05, %v2533_v53 }
 0x87b   : > { %v2534_v14 = vmul.f32 0.015625, %v2532_v22  ;;  %v6839_v22 = vpop.permute.xlu1 %3014 }
 0x87c   : > { %4298 = vrsqrt.f32 %v2535_v41 }
 0x87d   : > { %v2536_v33 = vadd.f32 1e-05, %v2534_v14 }
 0x87f   : > { %4300 = vrsqrt.f32 %v2536_v33  ;;  %v2625_v33 = vpop.permute.xlu0 %2624 }
 0x886   : > { %v4299_v51 = vpop.eup %4298 }
 0x887   : > { %v2553_v26 = vmul.f32 %v4299_v51, %v6752_v18  ;;  %v2541_v53 = vmul.f32 %v4299_v51, %v6738_v49  ;;  %v2539_v44 = vmul.f32 %v4299_v51, %v6735_v29  ;;  %v2543_v41 = vmul.f32 %v4299_v51, %v6741_v56 }
 0x888   : > { %v2545_v63 = vmul.f32 %v4299_v51, %v6744_v46  ;;  %v2547_v60 = vmul.f32 %v4299_v51, %v6746_v50  ;;  %v2549_v10 = vmul.f32 %v4299_v51, %v6748_v55  ;;  %v6836_v54 = vmul.f32 %v4299_v51, %v6750_v27  ;;  %v7724_v51 = vld [vmem:[#allocation50_spill] sm:$0xff] }
 0x889   : > { %v2587_v61 = vmul.f32 %v2557_v21, %v2539_v44  ;;  %v2591_v6 = vmul.f32 %v6658_v16, %v2543_v41  ;;  %v4301_v18 = vpop.eup %4300  ;;  %v2589_v56 = vmul.f32 %v6656_v36, %v2541_v53  ;;  %v6862_v53 = vpop.permute.xlu1 %2696 }
 0x88a   : > { %v2554_v49 = vmul.f32 %v4301_v18, %v6784_v0  ;;  %v6843_v29 = vmul.f32 %v4301_v18, %v6766_v9  ;;  %v2540_v46 = vmul.f32 %v4301_v18, %v6763_v38  ;;  %v6848_v55 = vmul.f32 %v4301_v18, %v6769_v4 }
 0x88b   : > { %v2635_v50 = vadd.f32 %v2605_v17, %v2587_v61  ;;  %v2639_v27 = vadd.f32 %v6818_v42, %v2591_v6  ;;  %v6852_v14 = vmul.f32 %v4301_v18, %v6772_v15  ;;  %v2595_v0 = vmul.f32 %v6664_v39, %v2547_v60  ;;  %v2629_v61 = vpop.permute.xlu0 %2628 }
 0x88c   : > { %v2637_v38 = vadd.f32 %v6660_v7, %v2589_v56  ;;  %v2548_v4 = vmul.f32 %v4301_v18, %v6775_v20  ;;  %v2597_v41 = vmul.f32 %v6666_v3, %v2549_v10  ;;  %v2550_v6 = vmul.f32 %v4301_v18, %v6778_v8 }
 0x88d   : > { %v6855_v44 = vmul.f32 %v7724_v51, %v2635_v50  ;;  %v6858_v9 = vmul.f32 %v7724_v51, %v2639_v27  ;;  %v2643_v15 = vadd.f32 %v6826_v52, %v2595_v0  ;;  %v2552_v56 = vmul.f32 %v4301_v18, %v6780_v32  ;;  %v6880_v47 = vpop.permute.xlu1 %3018 }
 0x88e   : > { %v6872_v60 = vmul.f32 %v7724_v51, %v2637_v38  ;;  %v2588_v20 = vmul.f32 %v2557_v21, %v2540_v46  ;;  %v2645_v50 = vadd.f32 %v2625_v33, %v2597_v41  ;;  %v2601_v27 = vmul.f32 %v6670_v31, %v2553_v26  ;;  %7725 = vst [vmem:[#allocation53_spill] sm:$0xff] %v6880_v47 }
 0x88f   : > { %2767 = vrot.lane.b32.xlu0 %v6858_v9, %s4879_s28  ;;  %2763 = vrot.lane.b32.xlu1 %v6855_v44, %s4879_s28  ;;  %v6877_v10 = vmul.f32 %v7724_v51, %v2643_v15  ;;  %v2593_v0 = vmul.f32 %v6662_v13, %v2545_v63  ;;  %v6890_v21 = vpop.permute.xlu0 %2668  ;;  %v2598_v38 = vmul.f32 %v6666_v3, %v2550_v6 }
 0x890   : > { %v2636_v8 = vadd.f32 %v2605_v17, %v2588_v20  ;;  %v6888_v32 = vmul.f32 %v7724_v51, %v2645_v50  ;;  %v2649_v18 = vadd.f32 %v6674_v30, %v2601_v27  ;;  %v2596_v27 = vmul.f32 %v6664_v39, %v2548_v4 }
 0x891   : > { %v2641_v46 = vadd.f32 %v6822_v48, %v2593_v0  ;;  %v6899_v63 = vpop.permute.xlu1 %2744  ;;  %v2646_v0 = vadd.f32 %v2625_v33, %v2598_v38  ;;  %v2600_v33 = vmul.f32 %v6668_v24, %v2552_v56  ;;  %v2699_v59 = vmul.f32 %v6890_v21, %v6855_v44 }
 0x892   : > { %v2665_v26 = vmul.f32 %v7724_v51, %v2649_v18  ;;  %v6901_v17 = vmul.f32 0.0, %v2636_v8  ;;  %v2644_v3 = vadd.f32 %v6826_v52, %v2596_v27  ;;  %v2602_v8 = vmul.f32 %v6670_v31, %v2554_v49 }
 0x893   : > { %2765 = vrot.lane.b32.xlu1 %v6872_v60, %s4879_s28  ;;  %2771 = vrot.lane.b32.xlu0 %v6877_v10, %s4879_s28  ;;  %v6907_v15 = vpop.permute.xlu0 %2716  ;;  %v6915_v50 = vmul.f32 %v7724_v51, %v2641_v46  ;;  %v6923_v6 = vmul.f32 0.0, %v2646_v0  ;;  %v2599_v31 = vmul.f32 %v6668_v24, %v6836_v54  ;;  %v2648_v49 = vadd.f32 %v2629_v61, %v2600_v33 }
 0x894   : > { %v2713_v41 = vmul.f32 %v6862_v53, %v2665_v26  ;;  %v6932_v39 = vmul.f32 0.0, %v2644_v3  ;;  %v2650_v4 = vadd.f32 %v6674_v30, %v2602_v8  ;;  %v3937_v3 = vld [vmem:[%s5583_s4 + $0x38] sm:$0xff] }
 0x895   : > { %v2647_v56 = vadd.f32 %v2629_v61, %v2599_v31  ;;  %v6952_v38 = vmul.f32 0.0, %v2648_v49  ;;  %v2590_v61 = vmul.f32 %v6656_v36, %v6843_v29 }
 0x896   : > { %v6910_v20 = vadd.f32 %v6899_v63, %v2713_v41  ;;  %v6944_v46 = vmul.f32 0.0, %v2650_v4  ;;  %v3934_v41 = vld [vmem:[%s5583_s4 + $0x20] sm:$0xff] }
 0x897   : > { %2876 = vrot.lane.b32.xlu1 %v6855_v44, %s4880_s21  ;;  %2886 = vrot.lane.b32.xlu0 %v6888_v32, %s4880_s21  ;;  %v6926_v18 = vpop.permute.xlu0 %2732  ;;  %v6959_v24 = vmul.f32 %v7724_v51, %v2647_v56  ;;  %v2638_v0 = vadd.f32 %v6660_v7, %v2590_v61  ;;  %v2592_v51 = vmul.f32 %v6658_v16, %v6848_v55  ;;  %v7024_v56 = vpop.permute.xlu1 %3022 }
 0x898   : > { %7726 = vst [vmem:[#allocation59_spill] sm:$0xff] %v6910_v20  ;;  %v2594_v7 = vmul.f32 %v6662_v13, %v6852_v14  ;;  %7731 = vst [vmem:[#allocation52_spill] sm:$0xff] %v7024_v56 }
 0x899   : > { %v6978_v8 = vmul.f32 0.0, %v2638_v0  ;;  %v2640_v36 = vadd.f32 %v6818_v42, %v2592_v51 }
 0x89a   : > { %v2642_v55 = vadd.f32 %v6822_v48, %v2594_v7 }
 0x89b   : > { %2878 = vrot.lane.b32.xlu1 %v6872_v60, %s4880_s21  ;;  %2779 = vrot.lane.b32.xlu0 %v6901_v17, %s4879_s28  ;;  %v6938_v52 = vpop.permute.xlu0 %2740 }
 0x89c   : > { %v6996_v42 = vmul.f32 0.0, %v2642_v55 }
 0x89f   : > { %2769 = vrot.lane.b32.xlu1 %v6915_v50, %s4879_s28  ;;  %2892 = vrot.lane.b32.xlu0 %v6901_v17, %s4880_s21  ;;  %v6950_v30 = vpop.permute.xlu0 %2930 }
 0x8a3   : > { %2880 = vrot.lane.b32.xlu1 %v6858_v9, %s4880_s21  ;;  %2789 = vrot.lane.b32.xlu0 %v6923_v6, %s4879_s28  ;;  %v6961_v54 = vpop.permute.xlu0 %2942 }
 0x8a7   : > { %2882 = vrot.lane.b32.xlu1 %v6915_v50, %s4880_s21  ;;  %2900 = vrot.lane.b32.xlu0 %v6932_v39, %s4880_s21  ;;  %v6970_v27 = vpop.permute.xlu0 %2946 }
 0x8a8   : > { %7727 = vst [vmem:[#allocation57_spill] sm:$0xff] %v6970_v27 }
 0x8ab   : > { %2773 = vrot.lane.b32.xlu1 %v6888_v32, %s4879_s28  ;;  %2793 = vrot.lane.b32.xlu0 %v6944_v46, %s4879_s28  ;;  %v6981_v29 = vpop.permute.xlu0 %2950 }
 0x8ac   : > { %7728 = vst [vmem:[#allocation68_spill] sm:$0xff] %v6981_v29 }
 0x8af   : > { %2884 = vrot.lane.b32.xlu1 %v6877_v10, %s4880_s21  ;;  %2904 = vrot.lane.b32.xlu0 %v6952_v38, %s4880_s21  ;;  %v6991_v16 = vpop.permute.xlu0 %3010 }
 0x8b3   : > { %2775 = vrot.lane.b32.xlu1 %v6959_v24, %s4879_s28  ;;  %2890 = vrot.lane.b32.xlu0 %v2665_v26, %s4880_s21  ;;  %v6998_v33 = vpop.permute.xlu0 %3026 }
 0x8b4   : > { %7729 = vst [vmem:[#allocation63_spill] sm:$0xff] %v6998_v33  ;;  %v2700_v33 = vmul.f32 %v6890_v21, %v6901_v17 }
 0x8b7   : > { %2777 = vrot.lane.b32.xlu1 %v2665_v26, %s4879_s28  ;;  %3274 = vperm.xlu0 %4275, %v3934_v41   ;;  %v6985_v26 = vmul.f32 0.0, %v2640_v36  ;;  %v7004_v13 = vpop.permute.xlu0 %3030  ;;  %v7028_v41 = vpop.permute.xlu1 %2954 }
 0x8b8   : > { %7730 = vst [vmem:[#allocation67_spill] sm:$0xff] %v7004_v13  ;;  %7733 = vst [vmem:[#allocation56_spill] sm:$0xff] %v7028_v41 }
 0x8bb   : > { %2888 = vrot.lane.b32.xlu1 %v6959_v24, %s4880_s21  ;;  %3289 = vperm.xlu0 %4275, %v3937_v3   ;;  %v2818_v14 = vpop.permute.xlu0 %2817  ;;  %v7032_v51 = vpop.permute.xlu1 %3034 }
 0x8bc   : > { %7735 = vst [vmem:[#allocation60_spill] sm:$0xff] %v7032_v51  ;;  %v2747_v51 = vadd.f32 %v6907_v15, %v2699_v59 }
 0x8bf   : > { %2781 = vrot.lane.b32.xlu1 %v6978_v8, %s4879_s28  ;;  %v7012_v48 = vpop.permute.xlu0 %2821 }
 0x8c3   : > { %2783 = vrot.lane.b32.xlu1 %v6985_v26, %s4879_s28  ;;  %v7016_v4 = vpop.permute.xlu0 %2825  ;;  %v7750_v1 = vld [vmem:[#allocation60_spill] sm:$0xff] }
 0x8c7   : > { %2894 = vrot.lane.b32.xlu1 %v6978_v8, %s4880_s21  ;;  %v7020_v31 = vpop.permute.xlu0 %2829 }
 0x8cb   : > { %2785 = vrot.lane.b32.xlu1 %v6996_v42, %s4879_s28  ;;  %v7022_v49 = vpop.permute.xlu0 %2833 }
 0x8cf   : > { %2896 = vrot.lane.b32.xlu1 %v6985_v26, %s4880_s21  ;;  %v7026_v61 = vpop.permute.xlu0 %2837 }
 0x8d0   : > { %7732 = vst [vmem:[#allocation58_spill] sm:$0xff] %v7026_v61 }
 0x8d3   : > { %2787 = vrot.lane.b32.xlu1 %v6932_v39, %s4879_s28  ;;  %v7030_v0 = vpop.permute.xlu0 %2841 }
 0x8d4   : > { %7734 = vst [vmem:[#allocation55_spill] sm:$0xff] %v7030_v0  ;;  %v2711_v0 = vmul.f32 %v6820_v35, %v6959_v24 }
 0x8d7   : > { %2898 = vrot.lane.b32.xlu1 %v6996_v42, %s4880_s21 }
 0x8db   : > { %2791 = vrot.lane.b32.xlu1 %v6952_v38, %s4879_s28 }
 0x8df   : > { %2902 = vrot.lane.b32.xlu1 %v6923_v6, %s4880_s21 }
 0x8e3   : > { %2906 = vrot.lane.b32.xlu1 %v6944_v46, %s4880_s21 }
 0x901   : > { %v7034_v3 = vpop.permute.xlu0 %2767  ;;  %v2764_v36 = vpop.permute.xlu1 %2763 }
 0x905   : > { %v2766_v7 = vpop.permute.xlu1 %2765  ;;  %v7036_v55 = vpop.permute.xlu0 %2771 }
 0x909   : > { %v2877_v28 = vpop.permute.xlu1 %2876  ;;  %v7038_v40 = vpop.permute.xlu0 %2886 }
 0x90a   : > { %7736 = vst [vmem:[#allocation62_spill] sm:$0xff] %v7038_v40  ;;  %v2748_v40 = vadd.f32 %v6907_v15, %v2700_v33 }
 0x90d   : > { %v2879_v41 = vpop.permute.xlu1 %2878  ;;  %v2780_v13 = vpop.permute.xlu0 %2779 }
 0x90e   : > { %v2796_v20 = vsel %vm2795_vm11, %v2764_v36, %v2780_v13  ;;  %v2804_v27 = vsel %vm2795_vm11, %v2780_v13, %v2764_v36 }
 0x90f   : > { %v2844_v56 = vmul.f32 %v6715_v25, %v2804_v27  ;;  %v2845_v44 = vmul.f32 %v6715_v25, %v2796_v20 }
 0x911   : > { %v7054_v21 = vpop.permute.xlu1 %2769  ;;  %v2860_v17 = vadd.f32 %v2844_v56, %v2747_v51  ;;  %v2861_v47 = vadd.f32 %v2845_v44, %v2748_v40  ;;  %v2893_v61 = vpop.permute.xlu0 %2892 }
 0x912   : > { %v2909_v59 = vsel %vm2908_vm12, %v2877_v28, %v2893_v61  ;;  %v2917_v29 = vsel %vm2908_vm12, %v2893_v61, %v2877_v28 }
 0x913   : > { %v2957_v13 = vmul.f32 %v6730_v62, %v2909_v59  ;;  %v2958_v15 = vmul.f32 %v6730_v62, %v2917_v29  ;;  %v2701_v62 = vmul.f32 %v6676_v2, %v6872_v60  ;;  %v2702_v29 = vmul.f32 %v6676_v2, %v6978_v8 }
 0x914   : > { %v2709_v60 = vmul.f32 %v6810_v58, %v6888_v32  ;;  %v2707_v2 = vmul.f32 %v6732_v45, %v6877_v10  ;;  %v2708_v8 = vmul.f32 %v6732_v45, %v6932_v39  ;;  %v2703_v32 = vmul.f32 %v6690_v11, %v6858_v9 }
 0x915   : > { %v7062_v27 = vpop.permute.xlu1 %2880  ;;  %v7064_v25 = vadd.f32 %v2957_v13, %v2860_v17  ;;  %v7066_v20 = vadd.f32 %v2958_v15, %v2861_v47  ;;  %v2749_v17 = vadd.f32 %v6704_v19, %v2701_v62  ;;  %v2750_v59 = vadd.f32 %v6704_v19, %v2702_v29  ;;  %v2790_v13 = vpop.permute.xlu0 %2789 }
 0x916   : > { %v2712_v19 = vmul.f32 %v6820_v35, %v6952_v38  ;;  %v2704_v10 = vmul.f32 %v6690_v11, %v6985_v26  ;;  %v2705_v45 = vmul.f32 %v6725_v12, %v6915_v50  ;;  %v2706_v39 = vmul.f32 %v6725_v12, %v6996_v42 }
 0x917   : > { %v2714_v35 = vmul.f32 %v6862_v53, %v6944_v46  ;;  %v7120_v11 = vadd.f32 %v6926_v18, %v2708_v8  ;;  %v7123_v50 = vadd.f32 %v6938_v52, %v2711_v0  ;;  %v2751_v53 = vadd.f32 %v6728_v23, %v2703_v32 }
 0x918   : > { %v7126_v12 = vadd.f32 %v6938_v52, %v2712_v19  ;;  %v2752_v46 = vadd.f32 %v6728_v23, %v2704_v10  ;;  %v7140_v0 = vadd.f32 %v6782_v57, %v2705_v45  ;;  %vm2989_vm13 = vcmp.ge.f32.partialorder %v7064_v25, 0.0 }
 0x919   : > { %v7068_v33 = vpop.permute.xlu1 %2882  ;;  %v2901_v38 = vpop.permute.xlu0 %2900  ;;  %v7144_v23 = vadd.f32 %v6899_v63, %v2714_v35  ;;  %vm2990_vm14 = vcmp.ge.f32.partialorder %v7066_v20, 0.0  ;;  %v3936_v63 = vld [vmem:[%s5583_s4 + $0x30] sm:$0xff] }
 0x91d   : > { %v2774_v40 = vpop.permute.xlu1 %2773 }
 0x921   : > { %v7070_v56 = vpop.permute.xlu1 %2884 }
 0x925   : > { %v7072_v51 = vpop.permute.xlu1 %2775 }
 0x926   : > { %7737 = vst [vmem:[#allocation50_spill] sm:$0xff] %v7072_v51 }
 0x929   : > { %v7074_v36 = vpop.permute.xlu1 %2777 }
 0x92d   : > { %v7076_v28 = vpop.permute.xlu1 %2888 }
 0x931   : > { %v2782_v61 = vpop.permute.xlu1 %2781 }
 0x932   : > { %v2797_v47 = vsel %vm2795_vm11, %v2766_v7, %v2782_v61  ;;  %v2805_v44 = vsel %vm2795_vm11, %v2782_v61, %v2766_v7  ;;  %v2710_v7 = vmul.f32 %v6810_v58, %v6923_v6  ;;  %v7109_v58 = vadd.f32 %v6824_v5, %v2709_v60 }
 0x933   : > { %v2846_v15 = vmul.f32 %v2818_v14, %v2805_v44  ;;  %v2847_v51 = vmul.f32 %v2818_v14, %v2797_v47  ;;  %v7114_v6 = vadd.f32 %v6926_v18, %v2707_v2  ;;  %v3038_v61 = vmul.f32 %v6816_v43, %v7066_v20  ;;  %v2794_v2 = vpop.permute.xlu0 %2793 }
 0x934   : > { %v7117_v9 = vadd.f32 %v6824_v5, %v2710_v7  ;;  %v2803_v35 = vsel %vm2795_vm11, %v7074_v36, %v2794_v2 }
 0x935   : > { %v2862_v62 = vadd.f32 %v2846_v15, %v2749_v17  ;;  %v2863_v14 = vadd.f32 %v2847_v51, %v2750_v59  ;;  %v2784_v29 = vpop.permute.xlu1 %2783  ;;  %v3935_v51 = vld [vmem:[%s5583_s4 + $0x28] sm:$0xff]  ;;  %v2801_v59 = vsel %vm2795_vm11, %v2774_v40, %v2790_v13  ;;  %v2809_v15 = vsel %vm2795_vm11, %v2790_v13, %v2774_v40 }
 0x936   : > { %v2806_v18 = vsel %vm2795_vm11, %v2784_v29, %v7034_v3  ;;  %3279 = vperm.xlu1 %4277, %v3935_v51   ;;  %v2754_v13 = vadd.f32 %v6782_v57, %v2706_v39  ;;  %v7176_v19 = vsel %vm2990_vm14, %v7066_v20, %v3038_v61 }
 0x937   : > { %v2848_v60 = vmul.f32 %v7012_v48, %v2806_v18 }
 0x939   : > { %v2895_v24 = vpop.permute.xlu1 %2894  ;;  %v2864_v10 = vadd.f32 %v2848_v60, %v2751_v53  ;;  %v2811_v53 = vsel %vm2795_vm11, %v2794_v2, %v7074_v36 }
 0x93a   : > { %v2910_v26 = vsel %vm2908_vm12, %v2879_v41, %v2895_v24  ;;  %v2918_v5 = vsel %vm2908_vm12, %v2895_v24, %v2879_v41  ;;  %v3037_v41 = vmul.f32 %v6816_v43, %v7064_v25  ;;  %v2913_v43 = vsel %vm2908_vm12, %v7070_v56, %v2901_v38  ;;  %3284 = vperm.xlu1 %4277, %v3936_v63  }
 0x93b   : > { %v2959_v52 = vmul.f32 %v6950_v30, %v2910_v26  ;;  %v2960_v42 = vmul.f32 %v6950_v30, %v2918_v5  ;;  %v2798_v30 = vsel %vm2795_vm11, %v7034_v3, %v2784_v29  ;;  %v2965_v57 = vmul.f32 %v6961_v54, %v2913_v43  ;;  %v2905_v26 = vpop.permute.xlu0 %2904 }
 0x93c   : > { %v7169_v7 = vsel %vm2989_vm13, %v7064_v25, %v3037_v41  ;;  %v2849_v40 = vmul.f32 %v7012_v48, %v2798_v30  ;;  %v7187_v48 = vmul.f32 %v7022_v49, %v2801_v59 }
 0x93d   : > { %v2975_v47 = vadd.f32 %v2959_v52, %v2862_v62  ;;  %v2976_v44 = vadd.f32 %v2960_v42, %v2863_v14  ;;  %v2786_v17 = vpop.permute.xlu1 %2785  ;;  %v2854_v62 = vmul.f32 %v7022_v49, %v2809_v15 }
 0x93f   : > { %vm2991_vm15 = vcmp.ge.f32.partialorder %v2975_v47, 0.0  ;;  %vm2992_vm0 = vcmp.ge.f32.partialorder %v2976_v44, 0.0  ;;  %v3039_v3 = vmul.f32 %v6991_v16, %v2975_v47  ;;  %v3040_v8 = vmul.f32 %v6991_v16, %v2976_v44 }
 0x940   : > { %v2921_v16 = vsel %vm2908_vm12, %v2901_v38, %v7070_v56  ;;  %v2865_v38 = vadd.f32 %v2849_v40, %v2752_v46  ;;  %v2915_v46 = vsel %vm2908_vm12, %v7076_v28, %v2905_v26 }
 0x941   : > { %v7182_v14 = vsel %vm2991_vm15, %v2975_v47, %v3039_v3  ;;  %v2897_v25 = vpop.permute.xlu1 %2896  ;;  %v7184_v29 = vsel %vm2992_vm0, %v2976_v44, %v3040_v8  ;;  %v2966_v39 = vmul.f32 %v6961_v54, %v2921_v16  ;;  %v2807_v54 = vsel %vm2795_vm11, %v2786_v17, %v7054_v21  ;;  %v7738_v8 = vld [vmem:[#allocation55_spill] sm:$0xff] }
 0x942   : > { %v3069_v20 = vadd.f32 %v7182_v14, %v7169_v7  ;;  %v2911_v32 = vsel %vm2908_vm12, %v7062_v27, %v2897_v25  ;;  %v2919_v56 = vsel %vm2908_vm12, %v2897_v25, %v7062_v27  ;;  %v3082_v49 = vadd.f32 %v7184_v29, %v7176_v19  ;;  %v7739_v25 = vld [vmem:[#allocation68_spill] sm:$0xff] }
 0x943   : > { %v2961_v45 = vmul.f32 %v6798_v37, %v2911_v32  ;;  %v2962_v24 = vmul.f32 %v6798_v37, %v2919_v56  ;;  %v2799_v27 = vsel %vm2795_vm11, %v7054_v21, %v2786_v17  ;;  %v2850_v41 = vmul.f32 %v7016_v4, %v2807_v54  ;;  %v7740_v56 = vld [vmem:[#allocation50_spill] sm:$0xff] }
 0x944   : > { %v2851_v61 = vmul.f32 %v7016_v4, %v2799_v27  ;;  %v2923_v47 = vsel %vm2908_vm12, %v2905_v26, %v7076_v28  ;;  %v2858_v40 = vmul.f32 %v7738_v8, %v2811_v53  ;;  %v2859_v16 = vmul.f32 %v7738_v8, %v2803_v35  ;;  %v7743_v35 = vld [vmem:[#allocation52_spill] sm:$0xff] }
 0x945   : > { %v2977_v5 = vadd.f32 %v2961_v45, %v2864_v10  ;;  %v2788_v18 = vpop.permute.xlu1 %2787  ;;  %v2978_v37 = vadd.f32 %v2962_v24, %v2865_v38  ;;  %v2866_v60 = vadd.f32 %v2850_v41, %v7140_v0  ;;  %v7741_v0 = vld [vmem:[#allocation58_spill] sm:$0xff]  ;;  %v7742_v45 = vld [vmem:[#allocation53_spill] sm:$0xff] }
 0x946   : > { %v2800_v52 = vsel %vm2795_vm11, %v7036_v55, %v2788_v18  ;;  %v2808_v36 = vsel %vm2795_vm11, %v2788_v18, %v7036_v55  ;;  %v2867_v2 = vadd.f32 %v2851_v61, %v2754_v13  ;;  %v7744_v18 = vld [vmem:[#allocation62_spill] sm:$0xff]  ;;  %v2875_v61 = vadd.f32 %v2859_v16, %v7144_v23  ;;  %v7747_v23 = vld [vmem:[#allocation67_spill] sm:$0xff] }
 0x947   : > { %vm2993_vm1 = vcmp.ge.f32.partialorder %v2977_v5, 0.0  ;;  %v3041_v42 = vmul.f32 %v6839_v22, %v2977_v5  ;;  %v2852_v21 = vmul.f32 %v7020_v31, %v2808_v36  ;;  %v2853_v51 = vmul.f32 %v7020_v31, %v2800_v52 }
 0x948   : > { %vm2994_vm2 = vcmp.ge.f32.partialorder %v2978_v37, 0.0  ;;  %v3042_v30 = vmul.f32 %v6839_v22, %v2978_v37 }
 0x949   : > { %v7233_v44 = vsel %vm2993_vm1, %v2977_v5, %v3041_v42  ;;  %v2868_v55 = vadd.f32 %v2852_v21, %v7114_v6  ;;  %v2869_v17 = vadd.f32 %v2853_v51, %v7120_v11  ;;  %v2899_v63 = vpop.permute.xlu1 %2898  ;;  %v2870_v11 = vadd.f32 %v2854_v62, %v7109_v58  ;;  %v7746_v51 = vld [vmem:[#allocation59_spill] sm:$0xff] }
 0x94a   : > { %v7237_v59 = vsel %vm2994_vm2, %v2978_v37, %v3042_v30  ;;  %v3070_v31 = vadd.f32 %v3069_v20, %v7233_v44  ;;  %v2912_v4 = vsel %vm2908_vm12, %v7068_v33, %v2899_v63  ;;  %v2920_v22 = vsel %vm2908_vm12, %v2899_v63, %v7068_v33 }
 0x94b   : > { %v2981_v28 = vadd.f32 %v2965_v57, %v2868_v55  ;;  %v2982_v15 = vadd.f32 %v2966_v39, %v2869_v17  ;;  %v2963_v43 = vmul.f32 %v6814_v34, %v2912_v4  ;;  %v2964_v6 = vmul.f32 %v6814_v34, %v2920_v22 }
 0x94c   : > { %v3083_v3 = vadd.f32 %v3082_v49, %v7237_v59  ;;  %v2969_v20 = vmul.f32 %v7739_v25, %v2915_v46  ;;  %v2970_v33 = vmul.f32 %v7739_v25, %v2923_v47  ;;  %v2874_v41 = vadd.f32 %v2858_v40, %v7746_v51  ;;  %v2891_v47 = vpop.permute.xlu0 %2890 }
 0x94d   : > { %v2792_v57 = vpop.permute.xlu1 %2791  ;;  %v2979_v32 = vadd.f32 %v2963_v43, %v2866_v60  ;;  %v2980_v10 = vadd.f32 %v2964_v6, %v2867_v2  ;;  %vm2997_vm4 = vcmp.ge.f32.partialorder %v2981_v28, 0.0  ;;  %vm2998_vm5 = vcmp.ge.f32.partialorder %v2982_v15, 0.0  ;;  %v7748_v60 = vld [vmem:[#allocation56_spill] sm:$0xff]  ;;  %v7749_v2 = vld [vmem:[#allocation63_spill] sm:$0xff] }
 0x94e   : > { %v2802_v34 = vsel %vm2795_vm11, %v7740_v56, %v2792_v57  ;;  %v2810_v58 = vsel %vm2795_vm11, %v2792_v57, %v7740_v56  ;;  %v3045_v38 = vmul.f32 %v7743_v35, %v2981_v28  ;;  %v3046_v24 = vmul.f32 %v7743_v35, %v2982_v15 }
 0x94f   : > { %v2856_v13 = vmul.f32 %v7741_v0, %v2810_v58  ;;  %v2857_v62 = vmul.f32 %v7741_v0, %v2802_v34  ;;  %vm2995_vm6 = vcmp.ge.f32.partialorder %v2979_v32, 0.0  ;;  %vm2996_vm7 = vcmp.ge.f32.partialorder %v2980_v10, 0.0 }
 0x950   : > { %v3043_v49 = vmul.f32 %v7742_v45, %v2979_v32  ;;  %v3044_v39 = vmul.f32 %v7742_v45, %v2980_v10  ;;  %v7287_v55 = vsel %vm2997_vm4, %v2981_v28, %v3045_v38  ;;  %v3062_v17 = vsel %vm2998_vm5, %v2982_v15, %v3046_v24 }
 0x951   : > { %v2872_v26 = vadd.f32 %v2856_v13, %v7123_v50  ;;  %v2873_v53 = vadd.f32 %v2857_v62, %v7126_v12  ;;  %v2903_v27 = vpop.permute.xlu1 %2902  ;;  %v7745_v50 = vld [vmem:[#allocation57_spill] sm:$0xff]  ;;  %v2871_v12 = vadd.f32 %v7187_v48, %v7117_v9 }
 0x952   : > { %v7269_v54 = vsel %vm2995_vm6, %v2979_v32, %v3043_v49  ;;  %v7271_v5 = vsel %vm2996_vm7, %v2980_v10, %v3044_v39  ;;  %v2914_v46 = vsel %vm2908_vm12, %v7744_v18, %v2903_v27  ;;  %v2922_v37 = vsel %vm2908_vm12, %v2903_v27, %v7744_v18 }
 0x953   : > { %v3071_v52 = vadd.f32 %v3070_v31, %v7269_v54  ;;  %v2985_v36 = vadd.f32 %v2969_v20, %v2872_v26  ;;  %v2986_v42 = vadd.f32 %v2970_v33, %v2873_v53  ;;  %v2967_v21 = vmul.f32 %v7745_v50, %v2914_v46 }
 0x954   : > { %v2968_v30 = vmul.f32 %v7745_v50, %v2922_v37  ;;  %v3084_v31 = vadd.f32 %v3083_v3, %v7271_v5 }
 0x955   : > { %vm3001_vm9 = vcmp.ge.f32.partialorder %v2985_v36, 0.0  ;;  %v2907_v63 = vpop.permute.xlu1 %2906  ;;  %v2983_v4 = vadd.f32 %v2967_v21, %v2870_v11  ;;  %v3072_v9 = vadd.f32 %v3071_v52, %v7287_v55  ;;  %v3049_v43 = vmul.f32 %v7747_v23, %v2985_v36 }
 0x956   : > { %v2984_v22 = vadd.f32 %v2968_v30, %v2871_v12  ;;  %v2916_v48 = vsel %vm2908_vm12, %v2891_v47, %v2907_v63  ;;  %v3050_v6 = vmul.f32 %v7747_v23, %v2986_v42  ;;  %v2924_v28 = vsel %vm2908_vm12, %v2907_v63, %v2891_v47 }
 0x957   : > { %v2971_v15 = vmul.f32 %v7748_v60, %v2916_v48  ;;  %vm2999_vm10 = vcmp.ge.f32.partialorder %v2983_v4, 0.0  ;;  %v3047_v3 = vmul.f32 %v7749_v2, %v2983_v4  ;;  %vm3002_vm13 = vcmp.ge.f32.partialorder %v2986_v42, 0.0 }
 0x958   : > { %vm3000_vm11 = vcmp.ge.f32.partialorder %v2984_v22, 0.0  ;;  %v3048_v11 = vmul.f32 %v7749_v2, %v2984_v22  ;;  %v2972_v8 = vmul.f32 %v7748_v60, %v2924_v28  ;;  %v3085_v16 = vadd.f32 %v3084_v31, %v3062_v17 }
 0x959   : > { %v2987_v40 = vadd.f32 %v2971_v15, %v2874_v41  ;;  %v3063_v25 = vsel %vm2999_vm10, %v2983_v4, %v3047_v3  ;;  %v3065_v10 = vsel %vm3001_vm9, %v2985_v36, %v3049_v43  ;;  %v3066_v56 = vsel %vm3002_vm13, %v2986_v42, %v3050_v6 }
 0x95a   : > { %v3064_v20 = vsel %vm3000_vm11, %v2984_v22, %v3048_v11  ;;  %v3073_v33 = vadd.f32 %v3072_v9, %v3063_v25  ;;  %v2988_v57 = vadd.f32 %v2972_v8, %v2875_v61 }
 0x95b   : > { %vm3003_vm14 = vcmp.ge.f32.partialorder %v2987_v40, 0.0  ;;  %v3051_v32 = vmul.f32 %v7750_v1, %v2987_v40  ;;  %v3086_v34 = vadd.f32 %v3085_v16, %v3064_v20 }
 0x95c   : > { %vm3004_vm12 = vcmp.ge.f32.partialorder %v2988_v57, 0.0  ;;  %v3052_v58 = vmul.f32 %v7750_v1, %v2988_v57  ;;  %v3074_v13 = vadd.f32 %v3073_v33, %v3065_v10 }
 0x95d   : > { %v3067_v0 = vsel %vm3003_vm14, %v2987_v40, %v3051_v32  ;;  %v3087_v62 = vadd.f32 %v3086_v34, %v3066_v56 }
 0x95e   : > { %v3068_v45 = vsel %vm3004_vm12, %v2988_v57, %v3052_v58  ;;  %v3075_v49 = vadd.f32 %v3074_v13, %v3067_v0 }
 0x95f   : > { %v3088_v39 = vadd.f32 %v3087_v62, %v3068_v45 }
 0x960   : > { %v3076_v35 = vrot.slane %v3075_v49, 4 }
 0x961   : > { %v3089_v38 = vrot.slane %v3088_v39, 4 }
 0x962   : > { %v3077_v24 = vadd.f32 %v3076_v35, %v3075_v49 }
 0x963   : > { %v3090_v26 = vadd.f32 %v3089_v38, %v3088_v39 }
 0x964   : > { %v3078_v53 = vrot.slane %v3077_v24, 2 }
 0x965   : > { %v3091_v27 = vrot.slane %v3090_v26, 2 }
 0x966   : > { %v3079_v18 = vadd.f32 %v3078_v53, %v3077_v24 }
 0x967   : > { %v3092_v46 = vadd.f32 %v3091_v27, %v3090_v26 }
 0x968   : > { %v3080_v37 = vrot.slane %v3079_v18, 1 }
 0x969   : > { %v3093_v52 = vrot.slane %v3092_v46, 1 }
 0x96a   : > { %v3081_v36 = vadd.f32 %v3080_v37, %v3079_v18 }
 0x96b   : > { %v3094_v42 = vadd.f32 %v3093_v52, %v3092_v46 }
 0x96c   : > { %v3095_v50 = vmul.f32 0.015625, %v3081_v36 }
 0x96d   : > { %v3096_v21 = vmul.f32 0.015625, %v3094_v42 }
 0x96e   : > { %v7305_v12 = vsub.f32 %v3067_v0, %v3095_v50  ;;  %v7308_v51 = vsub.f32 %v7169_v7, %v3095_v50  ;;  %v7311_v41 = vsub.f32 %v7182_v14, %v3095_v50  ;;  %v7314_v61 = vsub.f32 %v7233_v44, %v3095_v50 }
 0x96f   : > { %v3098_v30 = vsub.f32 %v7176_v19, %v3096_v21  ;;  %v3100_v47 = vsub.f32 %v7184_v29, %v3096_v21  ;;  %v3102_v63 = vsub.f32 %v7237_v59, %v3096_v21  ;;  %v3106_v31 = vsub.f32 %v3062_v17, %v3096_v21 }
 0x970   : > { %v3104_v4 = vsub.f32 %v7271_v5, %v3096_v21  ;;  %v7320_v22 = vsub.f32 %v3068_v45, %v3096_v21  ;;  %v7323_v14 = vsub.f32 %v7269_v54, %v3095_v50  ;;  %v7326_v44 = vsub.f32 %v7287_v55, %v3095_v50 }
 0x971   : > { %v3114_v9 = vmul.f32 %v3098_v30, %v3098_v30  ;;  %v3116_v7 = vmul.f32 %v3100_v47, %v3100_v47  ;;  %v3118_v48 = vmul.f32 %v3102_v63, %v3102_v63  ;;  %v7328_v19 = vsub.f32 %v3063_v25, %v3095_v50 }
 0x972   : > { %v7330_v29 = vsub.f32 %v3065_v10, %v3095_v50  ;;  %v3113_v59 = vmul.f32 %v7308_v51, %v7308_v51  ;;  %v3115_v5 = vmul.f32 %v7311_v41, %v7311_v41  ;;  %v3108_v17 = vsub.f32 %v3064_v20, %v3096_v21 }
 0x973   : > { %v3142_v23 = vadd.f32 %v3116_v7, %v3114_v9  ;;  %v3120_v43 = vmul.f32 %v3104_v4, %v3104_v4  ;;  %v3117_v54 = vmul.f32 %v7314_v61, %v7314_v61  ;;  %v3110_v60 = vsub.f32 %v3066_v56, %v3096_v21 }
 0x974   : > { %v3129_v28 = vadd.f32 %v3115_v5, %v3113_v59  ;;  %v3122_v55 = vmul.f32 %v3106_v31, %v3106_v31  ;;  %v3119_v2 = vmul.f32 %v7323_v14, %v7323_v14  ;;  %v3124_v11 = vmul.f32 %v3108_v17, %v3108_v17 }
 0x975   : > { %v3143_v6 = vadd.f32 %v3142_v23, %v3118_v48  ;;  %v3121_v40 = vmul.f32 %v7326_v44, %v7326_v44  ;;  %v3126_v25 = vmul.f32 %v3110_v60, %v3110_v60  ;;  %v3123_v33 = vmul.f32 %v7328_v19, %v7328_v19 }
 0x976   : > { %v3130_v3 = vadd.f32 %v3129_v28, %v3117_v54  ;;  %v3128_v1 = vmul.f32 %v7320_v22, %v7320_v22  ;;  %v3125_v10 = vmul.f32 %v7330_v29, %v7330_v29  ;;  %v3127_v58 = vmul.f32 %v7305_v12, %v7305_v12 }
 0x977   : > { %v3144_v15 = vadd.f32 %v3143_v6, %v3120_v43 }
 0x978   : > { %v3131_v16 = vadd.f32 %v3130_v3, %v3119_v2 }
 0x979   : > { %v3145_v8 = vadd.f32 %v3144_v15, %v3122_v55 }
 0x97a   : > { %v3132_v57 = vadd.f32 %v3131_v16, %v3121_v40  ;;  %v7753_v40 = vld [vmem:[#allocation65_spill] sm:$0xff] }
 0x97b   : > { %v3146_v20 = vadd.f32 %v3145_v8, %v3124_v11 }
 0x97c   : > { %v3133_v56 = vadd.f32 %v3132_v57, %v3123_v33  ;;  %v7754_v57 = vld [vmem:[#allocation69_spill] sm:$0xff] }
 0x97d   : > { %v3147_v32 = vadd.f32 %v3146_v20, %v3126_v25 }
 0x97e   : > { %v3134_v0 = vadd.f32 %v3133_v56, %v3125_v10  ;;  %v7755_v56 = vld [vmem:[#allocation54_spill] sm:$0xff] }
 0x97f   : > { %v3148_v34 = vadd.f32 %v3147_v32, %v3128_v1 }
 0x980   : > { %v3135_v62 = vadd.f32 %v3134_v0, %v3127_v58 }
 0x981   : > { %v3149_v13 = vrot.slane %v3148_v34, 4 }
 0x982   : > { %v3136_v49 = vrot.slane %v3135_v62, 4 }
 0x983   : > { %v3150_v45 = vadd.f32 %v3149_v13, %v3148_v34 }
 0x984   : > { %v3137_v35 = vadd.f32 %v3136_v49, %v3135_v62 }
 0x985   : > { %v3151_v39 = vrot.slane %v3150_v45, 2 }
 0x986   : > { %v3138_v24 = vrot.slane %v3137_v35, 2 }
 0x987   : > { %v3152_v38 = vadd.f32 %v3151_v39, %v3150_v45  ;;  %v7756_v45 = vld [vmem:[#allocation64_spill] sm:$0xff] }
 0x988   : > { %v3139_v53 = vadd.f32 %v3138_v24, %v3137_v35  ;;  %v7757_v35 = vld [vmem:[#allocation66_spill] sm:$0xff] }
 0x989   : > { %v3153_v26 = vrot.slane %v3152_v38, 1 }
 0x98a   : > { %v3140_v18 = vrot.slane %v3139_v53, 1 }
 0x98b   : > { %v3154_v27 = vadd.f32 %v3153_v26, %v3152_v38 }
 0x98c   : > { %v3141_v37 = vadd.f32 %v3140_v18, %v3139_v53  ;;  %v7758_v53 = vld [vmem:[#allocation61_spill] sm:$0xff] }
 0x98d   : > { %v3156_v46 = vmul.f32 0.015625, %v3154_v27 }
 0x98e   : > { %v3155_v36 = vmul.f32 0.015625, %v3141_v37 }
 0x98f   : > { %v3158_v52 = vadd.f32 1e-05, %v3156_v46 }
 0x990   : > { %v3157_v42 = vadd.f32 1e-05, %v3155_v36 }
 0x991   : > { %4302 = vrsqrt.f32 %v3158_v52  ;;  %v7759_v52 = vld [vmem:[#allocation51_spill] sm:$0xff] }
 0x992   : > { %4304 = vrsqrt.f32 %v3157_v42 }
 0x99b   : > { %v4303_v50 = vpop.eup %4302 }
 0x99c   : > { %v3162_v21 = vmul.f32 %v4303_v50, %v3098_v30  ;;  %v3164_v9 = vmul.f32 %v4303_v50, %v3100_v47  ;;  %v3166_v7 = vmul.f32 %v4303_v50, %v3102_v63  ;;  %v3168_v48 = vmul.f32 %v4303_v50, %v3104_v4  ;;  %v4305_v6 = vpop.eup %4304 }
 0x99d   : > { %v3170_v23 = vmul.f32 %v4303_v50, %v3106_v31  ;;  %v3172_v59 = vmul.f32 %v4303_v50, %v3108_v17  ;;  %v3174_v5 = vmul.f32 %v4303_v50, %v3110_v60  ;;  %v3176_v43 = vmul.f32 %v4303_v50, %v7320_v22  ;;  %v3275_v60 = vpop.permute.xlu0 %3274 }
 0x99e   : > { %v3183_v54 = vpack.c.bf16 %v3164_v9, %v3162_v21  ;;  %v3185_v28 = vpack.c.bf16 %v3168_v48, %v3166_v7  ;;  %v3161_v55 = vmul.f32 %v4305_v6, %v7308_v51  ;;  %v3163_v15 = vmul.f32 %v4305_v6, %v7311_v41  ;;  %v3321_v21 = vld [vmem:[%s5541_s10 + $0x10] sm:$0xff] (!%p3879_p1)  ;;  %v3319_v9 = vld [vmem:[%s5541_s10] sm:$0xff] (!%p3879_p1)  ;;  %v3322_v48 = vld [vmem:[%s5541_s10 + $0x18] sm:$0xff] (!%p3879_p1) }
 0x99f   : > { %v3165_v2 = vmul.f32 %v4305_v6, %v7314_v61  ;;  %v3167_v3 = vmul.f32 %v4305_v6, %v7323_v14  ;;  %v3187_v30 = vpack.c.bf16 %v3172_v59, %v3170_v23  ;;  %v3169_v47 = vmul.f32 %v4305_v6, %v7326_v44  ;;  %v4288_v14 = vld [vmem:[%s5572_s19 + $0x10] sm:$0xff]  }
 0x9a0   : > { %3206 = vmatprep.subr.bf16.mxu0 %v3183_v54  ;;  %v3171_v63 = vmul.f32 %v4305_v6, %v7328_v19  ;;  %v3189_v31 = vpack.c.bf16 %v3176_v43, %v3174_v5  ;;  %v3182_v4 = vpack.c.bf16 %v3163_v15, %v3161_v55  ;;  %v3173_v17 = vmul.f32 %v4305_v6, %v7330_v29  ;;  %v4289_v19 = vld [vmem:[%s5572_s19 + $0x18] sm:$0xff]   ;;  %v3320_v23 = vld [vmem:[%s5541_s10 + $0x8] sm:$0xff] (!%p3879_p1) }
 0x9a1   : > { %v3184_v22 = vpack.c.bf16 %v3167_v3, %v3165_v2  ;;  %v3175_v51 = vmul.f32 %v4305_v6, %v7305_v12  ;;  %v7751_v44 = vmov 0   ;;  %v7752_v12 = vld [vmem:[#allocation70_spill] sm:$0xff]  ;;  %v3290_v46 = vpop.permute.xlu0 %3289  ;;  %v4881_v7 = vmov (!%p3879_p1), 0  }
 0x9a2   : > { %v3186_v41 = vpack.c.bf16 %v3171_v63, %v3169_v47  ;;  %3207 = vmatpush1.bf16.msra.mxu0 %v3182_v4  ;;  %4315 = vset.pattern.permute.xlu1 (!%p3879_p1), %v4881_v7 }
 0x9a3   : > { %v3188_v61 = vpack.c.bf16 %v3175_v51, %v3173_v17  ;;  %3208 = vmatprep.subr.bf16.mxu0 %v3185_v28  ;;  %4314 = vset.pattern.permute.xlu0 (!%p3879_p1), %v4881_v7 }
 0x9a4   : > { %3335 = vperm.xlu1 (!%p3879_p1), %4315, %v3321_v21   ;;  %3325 = vperm.xlu0 (!%p3879_p1), %4314, %v3319_v9  }
 0x9a6   : > { %3209 = vmatpush1.bf16.msra.mxu0 %v3184_v22 }
 0x9a7   : > { %3210 = vmatprep.subr.bf16.mxu0 %v3187_v30 }
 0x9a8   : > { %3340 = vperm.xlu1 (!%p3879_p1), %4315, %v3322_v48   ;;  %3330 = vperm.xlu0 (!%p3879_p1), %4314, %v3320_v23  }
 0x9aa   : > { %3211 = vmatpush1.bf16.msra.mxu0 %v3186_v41 }
 0x9ab   : > { %3212 = vmatprep.subr.bf16.mxu0 %v3189_v31 }
 0x9ae   : > { %3213 = vmatpush1.bf16.msra.mxu0 %v3188_v61 }
 0x9b1   : > { %3932 = vmatmul.mubr.msk.bf16.vlgmr.msra.gmra.mrb[16].mxu0 %vm2100_vm8, %v4288_v14 }
 0x9b2   : > { %3248 = vmatprep.mubr.bf16.mxu0 %v7751_v44 }
 0x9b5   : > { %v3280_v20 = vpop.permute.xlu1 %3279 }
 0x9b9   : > { %3933 = vmatmul.mubr.msk.bf16.gmra.mrb[20].mxu0 %vm2100_vm8, %v4289_v19  ;;  %v3285_v62 = vpop.permute.xlu1 %3284 }
 0xa23   : > { %v3336_v54 = vpop.permute.xlu1 (!%p3879_p1), %3335  ;;  %v3326_v28 = vpop.permute.xlu0 (!%p3879_p1), %3325 }
 0xa27   : > { %v3341_v4 = vpop.permute.xlu1 (!%p3879_p1), %3340  ;;  %v3331_v22 = vpop.permute.xlu0 (!%p3879_p1), %3330 }
 0xa84   : > { %v3240_v29 = vpop.f32.mrb[16].mxu0 }
 0xa85   : > { %v3259_v11 = vadd.f32 %v3240_v29, %v7752_v12  ;;  %v3242_v8 = vpop.f32.mrb[17].mxu0 }
 0xa86   : > { %v3260_v16 = vadd.f32 %v3242_v8, %v7753_v40  ;;  %v3244_v25 = vpop.f32.mrb[18].mxu0 }
 0xa87   : > { %v3292_v33 = vadd.f32 %v3275_v60, %v3259_v11  ;;  %v3261_v1 = vadd.f32 %v3244_v25, %v7754_v57  ;;  %v3246_v32 = vpop.f32.mrb[19].mxu0 }
 0xa88   : > { %v3293_v10 = vadd.f32 %v3275_v60, %v3260_v16  ;;  %v3262_v34 = vadd.f32 %v3246_v32, %v7755_v56 }
 0xa89   : > { %3300 = vst [vmem:[#allocation2] sm:$0xff] %v3292_v33  ;;  %v3294_v58 = vadd.f32 %v3280_v20, %v3261_v1 }
 0xa8a   : > { %3301 = vst [vmem:[#allocation2 + $0x8] sm:$0xff] %v3293_v10  ;;  %v3295_v0 = vadd.f32 %v3280_v20, %v3262_v34 }
 0xa8b   : > { %3302 = vst [vmem:[#allocation2 + $0x10] sm:$0xff] %v3294_v58 }
 0xa8c   : > { %3303 = vst [vmem:[#allocation2 + $0x18] sm:$0xff] %v3295_v0  ;;  %v3250_v13 = vpop.f32.mrb[20].mxu0 }
 0xa8d   : > { %v3263_v49 = vadd.f32 %v3250_v13, %v7756_v45  ;;  %v3252_v39 = vpop.f32.mrb[21].mxu0 }
 0xa8e   : > { %v3264_v38 = vadd.f32 %v3252_v39, %v7757_v35  ;;  %v3254_v24 = vpop.f32.mrb[22].mxu0  ;;  %3310 = sbr.rel (%p3879_p1) target bundleno = 2719 (0xa9f), region = 132 }
 0xa8f   : > { %v3296_v26 = vadd.f32 %v3285_v62, %v3263_v49  ;;  %v3265_v27 = vadd.f32 %v3254_v24, %v7758_v53  ;;  %v3256_v18 = vpop.f32.mrb[23].mxu0 }
 0xa90   : > { %v3297_v37 = vadd.f32 %v3285_v62, %v3264_v38  ;;  %v3266_v36 = vadd.f32 %v3256_v18, %v7759_v52  ;;  %v3311_v43 = vld [vmem:[#allocation2] sm:$0xff] (!%p3879_p1) }
 0xa91   : > { %3304 = vst [vmem:[#allocation2 + $0x20] sm:$0xff] %v3296_v26  ;;  %v3298_v42 = vadd.f32 %v3290_v46, %v3265_v27  ;;  %v3312_v6 = vld [vmem:[#allocation2 + $0x8] sm:$0xff] (!%p3879_p1)  ;;  %v3343_v2 = vmul.f32 (!%p3879_p1), %v3326_v28, %v3311_v43 }
 0xa92   : > { %3305 = vst [vmem:[#allocation2 + $0x28] sm:$0xff] %v3297_v37  ;;  %v3299_v50 = vadd.f32 %v3290_v46, %v3266_v36  ;;  %v3344_v3 = vmul.f32 (!%p3879_p1), %v3326_v28, %v3312_v6  ;;  %v3313_v63 = vld [vmem:[#allocation2 + $0x10] sm:$0xff] (!%p3879_p1) }
 0xa93   : > { %3306 = vst [vmem:[#allocation2 + $0x30] sm:$0xff] %v3298_v42  ;;  %v3314_v31 = vld [vmem:[#allocation2 + $0x18] sm:$0xff] (!%p3879_p1)  ;;  %3351 = vst [vmem:[#allocation2] sm:$0xff] (!%p3879_p1), %v3343_v2  ;;  %v3345_v41 = vmul.f32 (!%p3879_p1), %v3331_v22, %v3313_v63 }
 0xa94   : > { %3307 = vst [vmem:[#allocation2 + $0x38] sm:$0xff] %v3299_v50  ;;  %3352 = vst [vmem:[#allocation2 + $0x8] sm:$0xff] (!%p3879_p1), %v3344_v3  ;;  %v3346_v61 = vmul.f32 (!%p3879_p1), %v3331_v22, %v3314_v31 }
 0xa95   : > { %3353 = vst [vmem:[#allocation2 + $0x10] sm:$0xff] %v3345_v41 }
 0xa96   : > { %3354 = vst [vmem:[#allocation2 + $0x18] sm:$0xff] %v3346_v61 }
 0xa98   : > { %v3315_v59 = vld [vmem:[#allocation2 + $0x20] sm:$0xff] }
 0xa99   : > { %v3316_v5 = vld [vmem:[#allocation2 + $0x28] sm:$0xff]  ;;  %v3347_v55 = vmul.f32 %v3336_v54, %v3315_v59 }
 0xa9a   : > { %v3348_v15 = vmul.f32 %v3336_v54, %v3316_v5  ;;  %v3317_v30 = vld [vmem:[#allocation2 + $0x30] sm:$0xff] }
 0xa9b   : > { %v3318_v47 = vld [vmem:[#allocation2 + $0x38] sm:$0xff]  ;;  %3355 = vst [vmem:[#allocation2 + $0x20] sm:$0xff] %v3347_v55  ;;  %v3349_v17 = vmul.f32 %v3341_v4, %v3317_v30 }
 0xa9c   : > { %3356 = vst [vmem:[#allocation2 + $0x28] sm:$0xff] %v3348_v15  ;;  %v3350_v51 = vmul.f32 %v3341_v4, %v3318_v47 }
 0xa9d   : > { %3357 = vst [vmem:[#allocation2 + $0x30] sm:$0xff] %v3349_v17 }
 0xa9e   : > { %3358 = vst [vmem:[#allocation2 + $0x38] sm:$0xff] %v3350_v51 }
 0xa9f PF: > { %s7761_s22 = sld [smem:[#allocation40_spill]] }
 0xaa5   : > { %p3939_p3 = scmp.ne.s32.totalorder %s7761_s22, 1 }
 0xaa6   : > { %v3368_v14 = vld [vmem:[#allocation2 + $0x8] sm:$0xff] (!%p3939_p3)  ;;  %v3370_v44 = vld [vmem:[#allocation2 + $0x18] sm:$0xff] (!%p3939_p3)  ;;  %v3367_v19 = vld [vmem:[#allocation2] sm:$0xff] (!%p3939_p3)  ;;  %v4882_v8 = vmov (!%p3939_p3), 0  }
 0xaa7   : > { %3362 = sbr.rel (%p3939_p3) target bundleno = 3188 (0xc74), region = 136  ;;  %v3376_v29 = vpack.c.bf16 (!%p3939_p3), %v3370_v44, %v3368_v14  ;;  %v3369_v60 = vld [vmem:[#allocation2 + $0x10] sm:$0xff] (!%p3939_p3)  ;;  %v3372_v12 = vld [vmem:[#allocation2 + $0x28] sm:$0xff] (!%p3939_p3)  ;;  %v3374_v11 = vld [vmem:[#allocation2 + $0x38] sm:$0xff] (!%p3939_p3)  ;;  %3451 = vmatprep.mubr.bf16.mxu0 (!%p3939_p3), %v4882_v8  ;;  %4316 = vset.pattern.permute.xlu0 (!%p3939_p3), %v4882_v8 }
 0xaa8   : > { %v3375_v40 = vpack.c.bf16 (!%p3939_p3), %v3369_v60, %v3367_v19  ;;  %v3378_v16 = vpack.c.bf16 (!%p3939_p3), %v3374_v11, %v3372_v12  ;;  %v3371_v25 = vld [vmem:[#allocation2 + $0x20] sm:$0xff] (!%p3939_p3)  ;;  %v3373_v20 = vld [vmem:[#allocation2 + $0x30] sm:$0xff] (!%p3939_p3)  ;;  %4317 = vset.pattern.permute.xlu1 (!%p3939_p3), %v4882_v8  ;;  %3542 = vmatprep.mubr.bf16.mxu1 (!%p3939_p3), %v4882_v8  ;;  %v3380_v32 = vld [vmem:[#allocation16 + $0x8] sm:$0xff] (!%p3939_p3) }
 0xaa9   : > { %3419 = vmatprep.subr.bf16.mxu0 (!%p3939_p3), %v3376_v29  ;;  %v3377_v33 = vpack.c.bf16 (!%p3939_p3), %v3373_v20, %v3371_v25  ;;  %v3379_v57 = vld [vmem:[#allocation16] sm:$0xff] (!%p3939_p3)  ;;  %v3381_v1 = vld [vmem:[#allocation16 + $0x10] sm:$0xff] (!%p3939_p3)  ;;  %v3382_v56 = vld [vmem:[#allocation16 + $0x18] sm:$0xff] (!%p3939_p3) }
 0xaaa   : > { %3420 = vmatpush1.bf16.msra.mxu0 (!%p3939_p3), %v3375_v40  ;;  %3385 = vperm.xlu0 (!%p3939_p3), %4316, %v3379_v57   ;;  %v4318_v10 = vld [vmem:[#allocation15] sm:$0xff] (!%p3939_p3)   ;;  %v4319_v34 = vld [vmem:[#allocation15 + $0x8] sm:$0xff] (!%p3939_p3)   ;;  %v3482_v27 = vld [vmem:[#allocation3 + $0x10] sm:$0xff] (!%p3939_p3) }
 0xaab   : > { %3421 = vmatprep.subr.bf16.mxu0 (!%p3939_p3), %v3378_v16  ;;  %3395 = vperm.xlu1 (!%p3939_p3), %4317, %v3381_v1   ;;  %v3480_v26 = vld [vmem:[#allocation3] sm:$0xff] (!%p3939_p3)  ;;  %v3481_v52 = vld [vmem:[#allocation3 + $0x8] sm:$0xff] (!%p3939_p3)  ;;  %v3483_v36 = vld [vmem:[#allocation3 + $0x18] sm:$0xff] (!%p3939_p3) }
 0xaac   : > { %v3484_v3 = vld [vmem:[#allocation3 + $0x20] sm:$0xff] (!%p3939_p3)  ;;  %v3486_v47 = vld [vmem:[#allocation3 + $0x30] sm:$0xff] (!%p3939_p3)  ;;  %v3485_v31 = vld [vmem:[#allocation3 + $0x28] sm:$0xff] (!%p3939_p3) }
 0xaad   : > { %v3487_v22 = vld [vmem:[#allocation3 + $0x38] sm:$0xff] (!%p3939_p3)  ;;  %v4320_v29 = vld [vmem:[#allocation18] sm:$0xff] (!%p3939_p3)  }
 0xaae   : > { %3422 = vmatpush1.bf16.msra.mxu0 %v3377_v33  ;;  %3390 = vperm.xlu0 %4316, %v3380_v32  }
 0xaaf   : > { %3400 = vperm.xlu1 %4317, %v3382_v56  }
 0xab1   : > { %3942 = vmatmul.mubr.msk.bf16.vlgmr.msra.gmra.mrb[0].mxu0 %vm1181_vm3, %v4318_v10 }
 0xab2   : > { %3461 = vmatprep.mubr.bf16.mxu0 %v4882_v8 }
 0xab9   : > { %3943 = vmatmul.mubr.msk.bf16.gmra.mrb[4].mxu0 %vm1181_vm3, %v4319_v34 }
 0xb29   : > { %v3386_v58 = vpop.permute.xlu0 %3385 }
 0xb2a   : > { %v3396_v18 = vpop.permute.xlu1 %3395 }
 0xb2d   : > { %v3391_v13 = vpop.permute.xlu0 %3390 }
 0xb2e   : > { %v3401_v43 = vpop.permute.xlu1 %3400 }
 0xb84   : > { %v3453_v0 = vpop.f32.mrb[0].mxu0 }
 0xb85   : > { %v3454_v62 = vadd.f32 %v3453_v0, %v3386_v58  ;;  %v3455_v45 = vpop.f32.mrb[1].mxu0 }
 0xb86   : > { %v3456_v49 = vadd.f32 %v3455_v45, %v3386_v58  ;;  %v3457_v39 = vpop.f32.mrb[2].mxu0 }
 0xb87   : > { %v3472_v35 = vmax.f32 %v3454_v62, 0.0  ;;  %v3458_v38 = vadd.f32 %v3457_v39, %v3391_v13  ;;  %v3459_v24 = vpop.f32.mrb[3].mxu0 }
 0xb88   : > { %v3473_v53 = vmax.f32 %v3456_v49, 0.0  ;;  %v3460_v46 = vadd.f32 %v3459_v24, %v3391_v13 }
 0xb89   : > { %v3474_v37 = vmax.f32 %v3458_v38, 0.0  ;;  %v3488_v50 = vmul.f32 %v3480_v26, %v3472_v35 }
 0xb8a   : > { %v3475_v42 = vmax.f32 %v3460_v46, 0.0  ;;  %v3489_v7 = vmul.f32 %v3481_v52, %v3473_v53 }
 0xb8b   : > { %v3490_v21 = vmul.f32 %v3482_v27, %v3474_v37 }
 0xb8c   : > { %v3463_v9 = vpop.f32.mrb[4].mxu0  ;;  %v3491_v48 = vmul.f32 %v3483_v36, %v3475_v42 }
 0xb8d   : > { %v3464_v23 = vadd.f32 %v3463_v9, %v3396_v18  ;;  %v3465_v59 = vpop.f32.mrb[5].mxu0  ;;  %v3498_v5 = vpack.c.bf16 %v3490_v21, %v3488_v50 }
 0xb8e   : > { %v3466_v6 = vadd.f32 %v3465_v59, %v3396_v18  ;;  %v3467_v54 = vpop.f32.mrb[6].mxu0  ;;  %v3499_v28 = vpack.c.bf16 %v3491_v48, %v3489_v7 }
 0xb8f   : > { %v3476_v55 = vmax.f32 %v3464_v23, 0.0  ;;  %v3468_v15 = vadd.f32 %v3467_v54, %v3401_v43  ;;  %v3469_v2 = vpop.f32.mrb[7].mxu0 }
 0xb90   : > { %v3477_v30 = vmax.f32 %v3466_v6, 0.0  ;;  %v3470_v63 = vadd.f32 %v3469_v2, %v3401_v43  ;;  %3510 = vmatprep.subr.bf16.mxu1 %v3499_v28 }
 0xb91   : > { %v3478_v4 = vmax.f32 %v3468_v15, 0.0  ;;  %3511 = vmatpush1.bf16.msra.mxu1 %v3498_v5  ;;  %v3492_v51 = vmul.f32 %v3484_v3, %v3476_v55 }
 0xb92   : > { %v3479_v17 = vmax.f32 %v3470_v63, 0.0  ;;  %v3493_v61 = vmul.f32 %v3485_v31, %v3477_v30 }
 0xb93   : > { %v3494_v41 = vmul.f32 %v3486_v47, %v3478_v4 }
 0xb94   : > { %v3495_v14 = vmul.f32 %v3487_v22, %v3479_v17 }
 0xb95   : > { %v3500_v44 = vpack.c.bf16 %v3494_v41, %v3492_v51 }
 0xb96   : > { %v3501_v19 = vpack.c.bf16 %v3495_v14, %v3493_v61 }
 0xb98   : > { %3512 = vmatprep.subr.bf16.mxu1 %v3501_v19 }
 0xb99   : > { %3513 = vmatpush1.bf16.msra.mxu1 %v3500_v44 }
 0xb9c   : > { %3945 = vmatmul.mubr.msk.bf16.vlgmr.msra.gmra.mrb[0].mxu1 %vm1181_vm3, %v4320_v29 }
 0xc6f   : > { %v3544_v60 = vpop.f32.mrb[0].mxu1 }
 0xc70   : > { %3553 = vst [vmem:[%s5587_s6] sm:$0xff] %v3544_v60  ;;  %v3546_v12 = vpop.f32.mrb[1].mxu1 }
 0xc71   : > { %3554 = vst [vmem:[%s5587_s6 + $0x8] sm:$0xff] %v3546_v12  ;;  %v3548_v11 = vpop.f32.mrb[2].mxu1 }
 0xc72   : > { %3555 = vst [vmem:[%s5587_s6 + $0x10] sm:$0xff] %v3548_v11  ;;  %v3550_v8 = vpop.f32.mrb[3].mxu1 }
 0xc73   : > { %3556 = vst [vmem:[%s5587_s6 + $0x18] sm:$0xff] %v3550_v8 }
 0xc74 PF: > { %s7762_s2 = sld [smem:[#allocation41_spill]]  ;;  %s7763_s17 = sld [smem:[#allocation83_spill]] }
 0xc75   : > { %s3571_s30 = sshll.u32 %s5587_s6, 4  ;;  %s3558_s8 = scalar_lea.sflag [#allocation6], %s5527_s27  ;;  %s7393_s30 = int_to_ptr.vmem [resolvable:$true] %s3571_s30 }
 0xc76   : > { %s4697_s15 = scalar_lea.vmem %s7393_s30, 512  ;;  %p7765_p13 = scmp.ne.s32.totalorder %s7634_s7, 0 }
 0xc77   : > { %p4698_p5 = scmp.ne.s32.totalorder %s7393_s30, %s4697_s15  ;;  %s4883_s11 = smov [#allocation25]  }
 0xc78   : > { %s4701_s23 = sshll.u32 %s4883_s11, 4  ;;  %s4702_s23 = int_to_ptr.vmem [resolvable:$false] %s4701_s23 }
 0xc79   : > { %p4699_p9 = pnand %p4698_p5, %p7765_p13  ;;  %s4703_s29 = scalar_lea.vmem %s4702_s23, 1024 }
 0xc7a   : > { %s3961_s20 = sshll.u32 %s7762_s2, 9  ;;  %s7764_s0 = smov %s7763_s17 }
 0xc7b   : > { %s7390_s26 = scalar_lea.hbm %s7763_s17, %s3961_s20  ;;  %p4700_p12 = pneg %p4699_p9 }
 0xc7c   : > { %p4704_p10 = scmp.lt.s32.totalorder %s7393_s30, %s4702_s23  ;;  %p4705_p7 = scmp.lt.s32.totalorder %s4703_s29, %s4697_s15 }
 0xc7e   : > { %p4706_p11 = por %p4705_p7, %p4704_p10 }
 0xc80   : > { %p4707_p8 = pnand %p4706_p11, %p4700_p12 }
 0xc82   : > { %4710 = shalt.err (!%p4707_p8)
}
 0xc83   : > { %s4711_s19 = scalar_lea.hbm %s7390_s26, 512  ;;  %s4715_s25 = scalar_lea.hbm %s7764_s0, 1024 }
 0xc84   : > { %p4712_p4 = scmp.ne.s32.totalorder %s7390_s26, %s4711_s19  ;;  %p4716_p6 = scmp.lt.u32.totalorder %s7390_s26, %s7764_s0 }
 0xc85   : > { %p4717_p1 = scmp.lt.u32.totalorder %s4715_s25, %s4711_s19  ;;  %p4719_p5 = scmp.lt.u32.totalorder %s4711_s19, %s7390_s26 }
 0xc86   : > { %p4713_p0 = pnand %p4712_p4, %p7765_p13 }
 0xc87   : > { %p4718_p3 = por %p4717_p1, %p4716_p6 }
 0xc88   : > { %p4714_p2 = pneg %p4713_p0 }
 0xc89   : > { %p4720_p9 = por %p4719_p5, %p4718_p3 }
 0xc8b   : > { %p4721_p12 = pnand %p4720_p9, %p4714_p2 }
 0xc8d   : > { %4724 = shalt.err (!%p4721_p12)
}
 0xc8e   : > { %s4884_s28 = smov 256   ;;  %s4885_s21 = smov 16  }
 0xc8f   : > { %4002 = dma.vmem_to_hbm [thread:$0]  (%p7765_p13), %s7393_s30, 512, %s7390_s26, %s3558_s8, %s4884_s28, %s4884_s28, %s4885_s21  }
 0xc90 PF: > { %s7766_s3 = sld [smem:[#allocation37_spill]]  ;;  %p4064_p10 = scmp.ge.s32.totalorder %s4847_s18, 2 }
 0xc91   : > { %p7767_p7 = scmp.ne.s32.totalorder %s7635_s24, 0 }
 0xc93   : > { %p4046_p11 = pnand %p4064_p10, %p7767_p7 }
 0xc96   : > { %s3586_s22 = sand.u32 1, %s7766_s3  }
 0xc97   : > { %s3587_s2 = scalar_lea.sflag [#allocation6], %s3586_s22 }
 0xc98   : > { %4802 = dma.done.wait (!%p4046_p11), %s3587_s2, 512  }
 0xc99   : > { %4804 = vsyncadd (!%p4046_p11), %s3587_s2, 4294966784  ;;  %s41_s18 = sadd.s32 1, %s4847_s18   ;;  %s7768_s25 = sld [smem:[#allocation35_spill]] }
 0xc9a   : > { %p38_p8 = scmp.ge.s32.totalorder %s41_s18, 6   ;;  %s7769_s26 = sld [smem:[#allocation36_spill]] }
 0xc9b   : > { %s7770_s27 = sld [smem:[#allocation46_spill]]  ;;  %s7771_s28 = sld [smem:[#allocation38_spill]] }
 0xc9c   : > { %s7772_s29 = sld [smem:[#allocation39_spill]]  ;;  %s7773_s30 = sld [smem:[#allocation49_spill]] }
 0xc9d   : > { %s7774_s15 = sld [smem:[#allocation42_spill]]  ;;  %s7775_s7 = sld [smem:[#allocation44_spill]] }
 0xc9e   : > { %s7776_s17 = sld [smem:[#allocation48_spill]]  ;;  %s7777_s14 = smov %s4839_s16 }
 0xc9f   :  { %40 = sbr.rel (!%p38_p8) target bundleno = 32 (0x20), region = 222 }
 0xca3   : > { %s7778_s16 = smov %s7775_s7 }
 0xca6   :  { %3592 = vsyncpa [#allocation5], 1 }
 0xca7   :  { %3594 = vsyncpa [#allocation5 + $0x1], 1 }
 0xca8   :  { %3595 = vsyncpa [#allocation8], 1 }
 0xca9   :  { %3597 = vsyncpa [#allocation8 + $0x1], 1 }
 0xcaa   :  { %3598 = vsyncpa [#allocation11], 1 }
 0xcab   :  { %3599 = vsyncpa [#allocation14], 1 }
 0xcac   :  { %3600 = vsyncpa [#allocation17], 1 }
 0xcad   :  { %3601 = vsyncpa [#allocation20], 1 }
 0xcae   :  { %3603 = vsyncpa [#allocation20 + $0x1], 1 }
 0xcaf   :  { %3604 = vsyncpa [#allocation23], 1 }
 0xcb0   :  { %3606 = vsyncpa [#allocation23 + $0x1], 1 }
 0xcb1   :  { %3607 = vsyncpa [#allocation6], 1 }
 0xcb2   :  { %3609 = vsyncpa [#allocation6 + $0x1], 1 }

</bundles_post_ra>
